<compile_context>
chip_gen: v6e
topology: v6e:2x2x1
jax: 0.10.0
libtpu: 0.0.40
codegen_flags: <defaults>
</compile_context>

<pallas_src>
import functools

import numpy as np
import jax
import jax.numpy as jnp
from jax import lax
from jax.experimental import pallas as pl
from jax.experimental.pallas import tpu as pltpu


# -----------------------------------------------------------------------------
# Tiling helpers
# -----------------------------------------------------------------------------
def _round_up(x, m):
    return ((x + m - 1) // m) * m


def _row_tiling(m, cap=256):
    """Row tile for the matmul M axis -> (tile, padded_m).

    Prefers an exact divisor of m (multiple of 16, then 8) so no padding is
    needed; caps the tile so the parallel grid axis has >=2 blocks whenever m
    allows (v7x dual TensorCore); otherwise pads m up to a tile multiple
    (never one giant full-M block).
    """
    if m <= 8:
        return 8, 8
    half = _round_up(-(-m // 2), 8)
    cap = min(cap, half)
    for step in (16, 8):
        t = (cap // step) * step
        while t >= step:
            if m % t == 0:
                return t, m
            t -= step
    return cap, _round_up(m, cap)


# -----------------------------------------------------------------------------
# Pallas kernels (single full-K / full-N block per grid step; f32 epilogue)
# -----------------------------------------------------------------------------
def _mm_kernel(a_ref, b_ref, s_ref, t_ref, o_ref, *, relu):
    y = jnp.dot(a_ref[...], b_ref[...], preferred_element_type=jnp.float32)
    y = y * s_ref[...] + t_ref[...]
    if relu:
        y = jnp.maximum(y, 0.0)
    o_ref[...] = y.astype(o_ref.dtype)


def _mm_residual_kernel(a_ref, b_ref, s_ref, t_ref, r_ref, o_ref):
    # conv + BN (no ReLU), + residual, then ReLU -- fused SSnbt tail.
    y = jnp.dot(a_ref[...], b_ref[...], preferred_element_type=jnp.float32)
    y = y * s_ref[...] + t_ref[...] + r_ref[...].astype(jnp.float32)
    o_ref[...] = jnp.maximum(y, 0.0).astype(o_ref.dtype)


def _mm_pool_kernel(a_ref, b_ref, p_ref, sc_ref, tc_ref, sp_ref, tp_ref,
                    oc_ref, op_ref):
    # DownSampling: conv half (matmul + BN + ReLU) and pooled half
    # (BN + ReLU) in one pallas_call / grid pass.
    yc = jnp.dot(a_ref[...], b_ref[...], preferred_element_type=jnp.float32)
    yc = yc * sc_ref[...] + tc_ref[...]
    oc_ref[...] = jnp.maximum(yc, 0.0).astype(oc_ref.dtype)
    yp = p_ref[...].astype(jnp.float32) * sp_ref[...] + tp_ref[...]
    op_ref[...] = jnp.maximum(yp, 0.0).astype(op_ref.dtype)


# -----------------------------------------------------------------------------
# Fused matmul wrapper
# -----------------------------------------------------------------------------
def fused_matmul(a, b, scale, shift, *, relu=True, residual=None,
                 pool=None, pool_scale=None, pool_shift=None,
                 out_dtype=jnp.float32):
    """act((a @ b) * scale + shift [+ residual]); optional fused pool affine.

    a: (M, K) bf16; b: (K, N) bf16; scale/shift: (N,) f32.
    Grid is over M only (full-K / full-N blocks), so there is no accumulator
    scratch and exactly one store per output tile.
    """
    m, k = a.shape
    n = b.shape[1]
    tm, mp = _row_tiling(m)
    if mp != m:
        rp = ((0, mp - m), (0, 0))
        a = jnp.pad(a, rp)
        if residual is not None:
            residual = jnp.pad(residual, rp)
        if pool is not None:
            pool = jnp.pad(pool, rp)
    grid = (mp // tm,)

    a_spec = pl.BlockSpec((tm, k), lambda i: (i, 0))
    b_spec = pl.BlockSpec((k, n), lambda i: (0, 0))        # resident across grid

    def row_spec(width):
        return pl.BlockSpec((tm, width), lambda i: (i, 0))

    def vec_spec(width):
        return pl.BlockSpec((1, width), lambda i: (0, 0))

    cparams = pltpu.CompilerParams(dimension_semantics=("parallel",))
    nbytes = lambda arr: int(arr.size) * arr.dtype.itemsize
    out_isz = jnp.dtype(out_dtype).itemsize

    if pool is not None:
        cp = pool.shape[1]
        cost = pl.CostEstimate(
            flops=2 * mp * n * k + 2 * mp * (n + cp),
            transcendentals=0,
            bytes_accessed=nbytes(a) + nbytes(b) + nbytes(pool)
                           + mp * (n + cp) * out_isz)
        yc, yp = pl.pallas_call(
            _mm_pool_kernel,
            out_shape=(jax.ShapeDtypeStruct((mp, n), out_dtype),
                       jax.ShapeDtypeStruct((mp, cp), out_dtype)),
            grid_spec=pltpu.PrefetchScalarGridSpec(
                num_scalar_prefetch=0, grid=grid,
                in_specs=[a_spec, b_spec, row_spec(cp),
                          vec_spec(n), vec_spec(n), vec_spec(cp), vec_spec(cp)],
                out_specs=[row_spec(n), row_spec(cp)]),
            compiler_params=cparams,
            cost_estimate=cost,
        )(a, b, pool, scale.reshape(1, n), shift.reshape(1, n),
          pool_scale.reshape(1, cp), pool_shift.reshape(1, cp))
        y = jnp.concatenate([yc, yp], axis=1)
        return y[:m] if mp != m else y

    extra = nbytes(residual) if residual is not None else 0
    cost = pl.CostEstimate(flops=2 * mp * n * k, transcendentals=0,
                           bytes_accessed=nbytes(a) + nbytes(b) + extra
                                          + mp * n * out_isz)

    if residual is not None:
        y = pl.pallas_call(
            _mm_residual_kernel,
            out_shape=jax.ShapeDtypeStruct((mp, n), out_dtype),
            grid_spec=pltpu.PrefetchScalarGridSpec(
                num_scalar_prefetch=0, grid=grid,
                in_specs=[a_spec, b_spec, vec_spec(n), vec_spec(n), row_spec(n)],
                out_specs=row_spec(n)),
            compiler_params=cparams,
            cost_estimate=cost,
        )(a, b, scale.reshape(1, n), shift.reshape(1, n), residual)
    else:
        y = pl.pallas_call(
            functools.partial(_mm_kernel, relu=relu),
            out_shape=jax.ShapeDtypeStruct((mp, n), out_dtype),
            grid_spec=pltpu.PrefetchScalarGridSpec(
                num_scalar_prefetch=0, grid=grid,
                in_specs=[a_spec, b_spec, vec_spec(n), vec_spec(n)],
                out_specs=row_spec(n)),
            compiler_params=cparams,
            cost_estimate=cost,
        )(a, b, scale.reshape(1, n), shift.reshape(1, n))
    return y[:m] if mp != m else y


# -----------------------------------------------------------------------------
# Convolution = bf16 im2col (XLA glue, fused under the outer jit) + Pallas matmul
# -----------------------------------------------------------------------------
def _im2col(x, kh, kw, stride=(1, 1), padding=(0, 0), dilation=(1, 1)):
    """x: NHWC -> (N*Hout*Wout, kh*kw*Cin) bf16 patches."""
    n, h, w, cin = x.shape
    sh, sw = stride
    ph, pw = padding
    dh, dw = dilation
    hout = (h + 2 * ph - dh * (kh - 1) - 1) // sh + 1
    wout = (w + 2 * pw - dw * (kw - 1) - 1) // sw + 1
    xpad = jnp.pad(x, ((0, 0), (ph, ph), (pw, pw), (0, 0))) if (ph or pw) else x
    cols = []
    for i in range(kh):
        for j in range(kw):
            h0, w0 = i * dh, j * dw
            cols.append(lax.slice(
                xpad, (0, h0, w0, 0),
                (n, h0 + (hout - 1) * sh + 1, w0 + (wout - 1) * sw + 1, cin),
                (1, sh, sw, 1)))
    patches = cols[0] if len(cols) == 1 else jnp.concatenate(cols, axis=-1)
    # TODO(synk): im2col is still HBM-materialized (bf16); replace with
    # in-kernel shift-and-accumulate (manual-DMA halo blocks) for the
    # remaining kh*kw bandwidth factor.
    a = patches.reshape(n * hout * wout, kh * kw * cin).astype(jnp.bfloat16)
    return a, hout, wout


def conv2d(x, prm, kh, kw, stride=(1, 1), padding=(0, 0), dilation=(1, 1),
           relu=True, out_dtype=jnp.bfloat16):
    a, hout, wout = _im2col(x, kh, kw, stride=stride, padding=padding,
                            dilation=dilation)
    y = fused_matmul(a, prm['wm'], prm['scale'], prm['shift'],
                     relu=relu, out_dtype=out_dtype)
    return y.reshape(x.shape[0], hout, wout, -1)


# -----------------------------------------------------------------------------
# Plain-JAX glue ops (fused by XLA under the outer jit)
# -----------------------------------------------------------------------------
def maxpool2x2(x):
    # TODO(synk): assumes even H/W (true for all strides of the test input),
    # matching the PyTorch reference for even sizes.
    n, h, w, c = x.shape
    return x.reshape(n, h // 2, 2, w // 2, 2, c).max(axis=(2, 4))


def _interp_matrix(out_size, in_size):
    """Bilinear (align_corners=True) interpolation matrix, constant numpy."""
    m = np.zeros((out_size, in_size), np.float32)
    if in_size == 1 or out_size == 1:
        m[:, 0] = 1.0
        return jnp.asarray(m)
    s = np.arange(out_size, dtype=np.float64) * ((in_size - 1) / (out_size - 1))
    i0 = np.clip(np.floor(s).astype(np.int64), 0, in_size - 1)
    i1 = np.minimum(i0 + 1, in_size - 1)
    frac = (s - i0).astype(np.float32)
    rows = np.arange(out_size)
    m[rows, i0] += 1.0 - frac
    m[rows, i1] += frac
    return jnp.asarray(m)


def bilinear_resize(x, out_h, out_w):
    """F.interpolate(mode='bilinear', align_corners=True) via two small matmuls."""
    n, h, w, c = x.shape
    mh = _interp_matrix(out_h, h)
    mw = _interp_matrix(out_w, w)
    y = jnp.einsum('ph,nhwc->npwc', mh, x.astype(jnp.float32))
    y = jnp.einsum('qw,npwc->npqc', mw, y)
    return y


# -----------------------------------------------------------------------------
# Parameter initialization (deterministic, synthetic, PyTorch layout)
# -----------------------------------------------------------------------------
def conv_params(key, cin, cout, kh, kw, bias=True):
    k1, k2 = jax.random.split(key)
    fan_in = cin * kh * kw
    w = jax.random.normal(k1, (cout, cin, kh, kw), jnp.float32) / jnp.sqrt(float(fan_in))
    b = (0.01 * jax.random.normal(k2, (cout,), jnp.float32)) if bias else None
    return {'w': w, 'b': b}


def bn_params(key, c):
    k1, k2, k3, k4 = jax.random.split(key, 4)
    return {'gamma': 1.0 + 0.1 * jax.random.normal(k1, (c,), jnp.float32),
            'beta': 0.1 * jax.random.normal(k2, (c,), jnp.float32),
            'mean': 0.1 * jax.random.normal(k3, (c,), jnp.float32),
            'var': 1.0 + 0.1 * jnp.abs(jax.random.normal(k4, (c,), jnp.float32))}


def init_downsampling(key, cin, cout):
    k1, k2 = jax.random.split(key)
    return {'conv': conv_params(k1, cin, cout, 3, 3, bias=True),
            'bn': bn_params(k2, cin + cout)}


def init_ssnbt(key, channels, dilation):
    inter = channels // 2
    ks = jax.random.split(key, 12)
    c31 = lambda k: conv_params(k, inter, inter, 3, 1, bias=False)
    c13 = lambda k: conv_params(k, inter, inter, 1, 3, bias=False)
    return {'b1': {'c1': c31(ks[0]), 'c2': c13(ks[1]), 'bn1': bn_params(ks[2], inter),
                   'c3': c31(ks[3]), 'c4': c13(ks[4]), 'bn2': bn_params(ks[5], inter)},
            'b2': {'c1': c13(ks[6]), 'c2': c31(ks[7]), 'bn1': bn_params(ks[8], inter),
                   'c3': c13(ks[9]), 'c4': c31(ks[10]), 'bn2': bn_params(ks[11], inter)}}


def convbnrelu_params(key, cin, cout, k):
    k1, k2 = jax.random.split(key)
    return {'conv': conv_params(k1, cin, cout, k, k, bias=False),
            'bn': bn_params(k2, cout)}


def init_apn(key, cin, nclass):
    ks = jax.random.split(key, 8)
    return {'conv1': convbnrelu_params(ks[0], cin, cin, 3),
            'conv2': convbnrelu_params(ks[1], cin, cin, 5),
            'conv3': convbnrelu_params(ks[2], cin, cin, 7),
            'level1': convbnrelu_params(ks[3], cin, nclass, 1),
            'level2': convbnrelu_params(ks[4], cin, nclass, 1),
            'level3': convbnrelu_params(ks[5], cin, nclass, 1),
            'level4': convbnrelu_params(ks[6], cin, nclass, 1),
            'level5': convbnrelu_params(ks[7], cin, nclass, 1)}


ENC_CFG = [('down', 3, 29),
           ('ssnbt', 32, 1), ('ssnbt', 32, 1), ('ssnbt', 32, 1),
           ('down', 32, 32),
           ('ssnbt', 64, 1), ('ssnbt', 64, 1),
           ('down', 64, 64),
           ('ssnbt', 128, 1), ('ssnbt', 128, 2), ('ssnbt', 128, 5), ('ssnbt', 128, 9),
           ('ssnbt', 128, 2), ('ssnbt', 128, 5), ('ssnbt', 128, 9), ('ssnbt', 128, 17)]


def init_lednet(key, nclass):
    keys = jax.random.split(key, len(ENC_CFG) + 1)
    enc = []
    for cfg, k in zip(ENC_CFG, keys[:-1]):
        enc.append(init_downsampling(k, cfg[1], cfg[2]) if cfg[0] == 'down'
                   else init_ssnbt(k, cfg[1], cfg[2]))
    return {'enc': enc, 'dec': init_apn(keys[-1], 128, nclass)}


# -----------------------------------------------------------------------------
# One-time parameter preprocessing: weight layout, BN/bias folding, branch
# fusion (block-diagonal SSnbt stage weights), bf16 cast.
# -----------------------------------------------------------------------------
def _weight_matrix(w):
    cout, cin, kh, kw = w.shape
    return jnp.transpose(w, (2, 3, 1, 0)).reshape(kh * kw * cin, cout)


def _fold_bn(conv, bn):
    cout = conv['w'].shape[0]
    if bn is None:
        s = jnp.ones((cout,), jnp.float32)
        t = conv['b'] if conv.get('b') is not None else jnp.zeros((cout,), jnp.float32)
    else:
        s = bn['gamma'] / jnp.sqrt(bn['var'] + 1e-5)
        t = bn['beta'] - bn['mean'] * s
        if conv.get('b') is not None:
            t = t + conv['b'] * s
    return s, t


def _block_diag(w1, w2):
    k1, n1 = w1.shape
    k2, n2 = w2.shape
    top = jnp.concatenate([w1, jnp.zeros((k1, n2), w1.dtype)], axis=1)
    bot = jnp.concatenate([jnp.zeros((k2, n1), w2.dtype), w2], axis=1)
    return jnp.concatenate([top, bot], axis=0)


def _prep_single(conv, bn=None):
    s, t = _fold_bn(conv, bn)
    return {'wm': _weight_matrix(conv['w']).astype(jnp.bfloat16),
            'scale': s, 'shift': t}


def prep_downsampling(p):
    cout = p['conv']['w'].shape[0]
    bn = p['bn']
    s = bn['gamma'] / jnp.sqrt(bn['var'] + 1e-5)
    t = bn['beta'] - bn['mean'] * s
    return {'wm': _weight_matrix(p['conv']['w']).astype(jnp.bfloat16),
            'conv_scale': s[:cout],
            'conv_shift': t[:cout] + p['conv']['b'] * s[:cout],
            'pool_scale': s[cout:],
            'pool_shift': t[cout:]}


def prep_ssnbt(p):
    b1, b2 = p['b1'], p['b2']

    def stage(cname, bnname=None):
        w1 = _weight_matrix(b1[cname]['w'])
        w2 = _weight_matrix(b2[cname]['w'])
        s1, t1 = _fold_bn(b1[cname], b1[bnname] if bnname else None)
        s2, t2 = _fold_bn(b2[cname], b2[bnname] if bnname else None)
        return {'wm': _block_diag(w1, w2).astype(jnp.bfloat16),
                'scale': jnp.concatenate([s1, s2]),
                'shift': jnp.concatenate([t1, t2])}

    return {'s1': stage('c1'), 's2': stage('c2', 'bn1'),
            's3': stage('c3'), 's4': stage('c4', 'bn2')}


def prepare_params(params):
    enc = []
    for cfg, p in zip(ENC_CFG, params['enc']):
        enc.append(prep_downsampling(p) if cfg[0] == 'down' else prep_ssnbt(p))
    dec = {name: _prep_single(v['conv'], v['bn']) for name, v in params['dec'].items()}
    return {'enc': enc, 'dec': dec}


# -----------------------------------------------------------------------------
# Module forwards
# -----------------------------------------------------------------------------
def downsampling_fwd(p, x):
    n, h, w, cin = x.shape
    a, hout, wout = _im2col(x, 3, 3, stride=(2, 2), padding=(1, 1))
    pool = maxpool2x2(x).reshape(n * hout * wout, cin)
    # Conv half (matmul + BN + ReLU) and pool half (BN + ReLU) in one call.
    y = fused_matmul(a, p['wm'], p['conv_scale'], p['conv_shift'],
                     pool=pool, pool_scale=p['pool_scale'],
                     pool_shift=p['pool_shift'], out_dtype=jnp.bfloat16)
    return y.reshape(n, hout, wout, -1)


def ssnbt_fwd(p, x, d):
    n, h, w, c = x.shape
    inter = c // 2
    m = n * h * w

    def split(y2d):
        y = y2d.reshape(n, h, w, c)
        return y[..., :inter], y[..., inter:]

    def stage(sp, a1, a2, spec1, spec2, residual=None):
        # spec = (kh, kw, padding, dilation); stride is always 1 inside SSnbt.
        p1, _, _ = _im2col(a1, spec1[0], spec1[1], padding=spec1[2], dilation=spec1[3])
        p2, _, _ = _im2col(a2, spec2[0], spec2[1], padding=spec2[2], dilation=spec2[3])
        return fused_matmul(jnp.concatenate([p1, p2], axis=1),
                            sp['wm'], sp['scale'], sp['shift'],
                            relu=True, residual=residual, out_dtype=jnp.bfloat16)

    v = lambda pad, dil: (3, 1, (pad, 0), (dil, 1))   # kx1 (vertical) conv
    hz = lambda pad, dil: (1, 3, (0, pad), (1, dil))  # 1xk (horizontal) conv

    x1, x2 = x[..., :inter], x[..., inter:]
    y = stage(p['s1'], x1, x2, v(1, 1), hz(1, 1))
    y1, y2 = split(y)
    y = stage(p['s2'], y1, y2, hz(1, 1), v(1, 1))
    y1, y2 = split(y)
    y = stage(p['s3'], y1, y2, v(d, d), hz(d, d))
    y1, y2 = split(y)
    # TODO(synk): Dropout / Dropout2d omitted (inference / eval -> identity).
    # Last stage: conv + BN (NO ReLU), + residual, ReLU -- all in the epilogue.
    y = stage(p['s4'], y1, y2, hz(d, d), v(d, d), residual=x.reshape(m, c))
    # channel_shuffle(groups=2) == pairwise interleave of the two branch halves.
    # TODO(synk): folding this permutation into downstream weights needs a
    # whole-network channel-permutation propagation; kept as fused XLA glue.
    y = y.reshape(m, 2, inter).transpose(0, 2, 1).reshape(n, h, w, c)
    return y


def convbnrelu_fwd(p, x, k, stride=1, pad=0, out_dtype=jnp.bfloat16):
    return conv2d(x, p, k, k, stride=(stride, stride), padding=(pad, pad),
                  relu=True, out_dtype=out_dtype)


def apn_fwd(p, x):
    n, h, w, c = x.shape
    branch3 = convbnrelu_fwd(p['conv1'], x, 3, stride=2, pad=1)         # bf16
    branch2 = convbnrelu_fwd(p['conv2'], branch3, 5, stride=2, pad=2)   # bf16
    branch1 = convbnrelu_fwd(p['conv3'], branch2, 7, stride=2, pad=3)   # bf16

    branch1 = convbnrelu_fwd(p['level1'], branch1, 1, out_dtype=jnp.float32)
    branch1 = bilinear_resize(branch1, (h + 3) // 4, (w + 3) // 4)

    branch2 = convbnrelu_fwd(p['level2'], branch2, 1, out_dtype=jnp.float32)
    branch2 = branch2 + branch1
    branch2 = bilinear_resize(branch2, (h + 1) // 2, (w + 1) // 2)

    branch3 = convbnrelu_fwd(p['level3'], branch3, 1, out_dtype=jnp.float32)
    branch3 = branch3 + branch2
    branch3 = bilinear_resize(branch3, h, w)

    out = convbnrelu_fwd(p['level4'], x, 1, out_dtype=jnp.float32)
    out = out * branch3

    gp = jnp.mean(x.astype(jnp.float32), axis=(1, 2), keepdims=True)    # AdaptiveAvgPool2d(1)
    out = out + convbnrelu_fwd(p['level5'], gp, 1, out_dtype=jnp.float32)
    return out


def lednet_forward(params, x_nchw):
    """x_nchw: [N, 3, H, W]  ->  [N, nclass, H, W]  (float32)."""
    n, _, h, w = x_nchw.shape
    x = jnp.transpose(x_nchw, (0, 2, 3, 1)).astype(jnp.bfloat16)   # NHWC bf16
    for cfg, p in zip(ENC_CFG, params['enc']):
        x = downsampling_fwd(p, x) if cfg[0] == 'down' else ssnbt_fwd(p, x, cfg[2])
    x = apn_fwd(params['dec'], x)
    x = bilinear_resize(x, h, w)
    return jnp.transpose(x, (0, 3, 1, 2))


# -----------------------------------------------------------------------------
if __name__ == "__main__":
    nclass = 4
    key = jax.random.PRNGKey(0)
    pkey, xkey = jax.random.split(key)

    params = prepare_params(init_lednet(pkey, nclass))    # one-time preprocessing
    x = jax.random.normal(xkey, (2, 3, 16, 16), jnp.float32)

    fwd = jax.jit(lednet_forward)                          # single outer jit
    out = jax.block_until_ready(fwd(params, x))

    assert out.shape == (2, nclass, 16, 16), out.shape
    assert bool(jnp.all(jnp.isfinite(out)))
    print("KERNEL_OK")
</pallas_src>

<mosaic_0001>
module attributes {stable_mosaic.version = 11 : i64} {
  func.func @_mm_pool_kernel(%arg0: i32, %arg1: memref<64x27xbf16, #tpu.memory_space<vmem>>, %arg2: memref<27x29xbf16, #tpu.memory_space<vmem>>, %arg3: memref<64x3xbf16, #tpu.memory_space<vmem>>, %arg4: memref<1x29xf32, #tpu.memory_space<vmem>>, %arg5: memref<1x29xf32, #tpu.memory_space<vmem>>, %arg6: memref<1x3xf32, #tpu.memory_space<vmem>>, %arg7: memref<1x3xf32, #tpu.memory_space<vmem>>, %arg8: memref<64x29xbf16, #tpu.memory_space<vmem>>, %arg9: memref<64x3xbf16, #tpu.memory_space<vmem>>) attributes {dimension_semantics = [#tpu.dimension_semantics<parallel>], iteration_bounds = array<i64: 2>, scalar_prefetch = 0 : i64, scratch_operands = 0 : i64, tpu.core_type = #tpu.core_type<tc>, window_params = [{transform_indices = @transform_0, window_bounds = array<i64: 64, 27>}, {pipeline_mode = #tpu.pipeline_mode<synchronous>, transform_indices = @transform_1, window_bounds = array<i64: 27, 29>}, {transform_indices = @transform_2, window_bounds = array<i64: 64, 3>}, {pipeline_mode = #tpu.pipeline_mode<synchronous>, transform_indices = @transform_3, window_bounds = array<i64: 1, 29>}, {pipeline_mode = #tpu.pipeline_mode<synchronous>, transform_indices = @transform_4, window_bounds = array<i64: 1, 29>}, {pipeline_mode = #tpu.pipeline_mode<synchronous>, transform_indices = @transform_5, window_bounds = array<i64: 1, 3>}, {pipeline_mode = #tpu.pipeline_mode<synchronous>, transform_indices = @transform_6, window_bounds = array<i64: 1, 3>}, {transform_indices = @transform_7, window_bounds = array<i64: 64, 29>}, {transform_indices = @transform_8, window_bounds = array<i64: 64, 3>}]} {
    %c0 = arith.constant 0 : index
    %c0_0 = arith.constant 0 : index
    %0 = vector.load %arg1[%c0, %c0_0] : memref<64x27xbf16, #tpu.memory_space<vmem>>, vector<64x27xbf16>
    %c0_1 = arith.constant 0 : index
    %c0_2 = arith.constant 0 : index
    %1 = vector.load %arg2[%c0_1, %c0_2] : memref<27x29xbf16, #tpu.memory_space<vmem>>, vector<27x29xbf16>
    %cst = arith.constant dense<0.000000e+00> : vector<64x29xf32>
    %2 = tpu.matmul %0, %1, %cst {dimension_numbers = #tpu.dot_dimension_numbers<[1], [0], [0], [1], [0, 0, 1, 1], [], []>} : vector<64x27xbf16>, vector<27x29xbf16>, vector<64x29xf32> -> vector<64x29xf32>
    %c0_3 = arith.constant 0 : index
    %c0_4 = arith.constant 0 : index
    %3 = vector.load %arg4[%c0_3, %c0_4] : memref<1x29xf32, #tpu.memory_space<vmem>>, vector<1x29xf32>
    %4 = vector.broadcast %3 : vector<1x29xf32> to vector<64x29xf32>
    %5 = arith.mulf %2, %4 : vector<64x29xf32>
    %c0_5 = arith.constant 0 : index
    %c0_6 = arith.constant 0 : index
    %6 = vector.load %arg5[%c0_5, %c0_6] : memref<1x29xf32, #tpu.memory_space<vmem>>, vector<1x29xf32>
    %7 = vector.broadcast %6 : vector<1x29xf32> to vector<64x29xf32>
    %8 = arith.addf %5, %7 : vector<64x29xf32>
    %cst_7 = arith.constant 0.000000e+00 : f32
    %9 = vector.broadcast %cst_7 : f32 to vector<64x29xf32>
    %10 = arith.maximumf %8, %9 : vector<64x29xf32>
    %11 = arith.truncf %10 : vector<64x29xf32> to vector<64x29xbf16>
    %c0_8 = arith.constant 0 : index
    %c0_9 = arith.constant 0 : index
    %12 = vector.load %arg8[%c0_8, %c0_9] : memref<64x29xbf16, #tpu.memory_space<vmem>>, vector<64x29xbf16>
    tpu.vector_store %arg8[%c0_8, %c0_9], %11 {strides = array<i32>} : memref<64x29xbf16, #tpu.memory_space<vmem>>, vector<64x29xbf16>,
    %c0_10 = arith.constant 0 : index
    %c0_11 = arith.constant 0 : index
    %13 = vector.load %arg3[%c0_10, %c0_11] : memref<64x3xbf16, #tpu.memory_space<vmem>>, vector<64x3xbf16>
    %14 = arith.extf %13 : vector<64x3xbf16> to vector<64x3xf32>
    %c0_12 = arith.constant 0 : index
    %c0_13 = arith.constant 0 : index
    %15 = vector.load %arg6[%c0_12, %c0_13] : memref<1x3xf32, #tpu.memory_space<vmem>>, vector<1x3xf32>
    %16 = vector.broadcast %15 : vector<1x3xf32> to vector<64x3xf32>
    %17 = arith.mulf %14, %16 : vector<64x3xf32>
    %c0_14 = arith.constant 0 : index
    %c0_15 = arith.constant 0 : index
    %18 = vector.load %arg7[%c0_14, %c0_15] : memref<1x3xf32, #tpu.memory_space<vmem>>, vector<1x3xf32>
    %19 = vector.broadcast %18 : vector<1x3xf32> to vector<64x3xf32>
    %20 = arith.addf %17, %19 : vector<64x3xf32>
    %cst_16 = arith.constant 0.000000e+00 : f32
    %21 = vector.broadcast %cst_16 : f32 to vector<64x3xf32>
    %22 = arith.maximumf %20, %21 : vector<64x3xf32>
    %23 = arith.truncf %22 : vector<64x3xf32> to vector<64x3xbf16>
    %c0_17 = arith.constant 0 : index
    %c0_18 = arith.constant 0 : index
    %24 = vector.load %arg9[%c0_17, %c0_18] : memref<64x3xbf16, #tpu.memory_space<vmem>>, vector<64x3xbf16>
    tpu.vector_store %arg9[%c0_17, %c0_18], %23 {strides = array<i32>} : memref<64x3xbf16, #tpu.memory_space<vmem>>, vector<64x3xbf16>,
    return
  }
  func.func @transform_0(%arg0: i32) -> (i32, i32) {
    %c0_i32 = arith.constant 0 : i32
    %c0_i32_0 = arith.constant 0 : i32
    return %arg0, %c0_i32 : i32, i32
  }
  func.func @transform_1(%arg0: i32) -> (i32, i32) {
    %c0_i32 = arith.constant 0 : i32
    %c0_i32_0 = arith.constant 0 : i32
    %c0_i32_1 = arith.constant 0 : i32
    return %c0_i32, %c0_i32_0 : i32, i32
  }
  func.func @transform_2(%arg0: i32) -> (i32, i32) {
    %c0_i32 = arith.constant 0 : i32
    %c0_i32_0 = arith.constant 0 : i32
    return %arg0, %c0_i32 : i32, i32
  }
  func.func @transform_3(%arg0: i32) -> (i32, i32) {
    %c0_i32 = arith.constant 0 : i32
    %c0_i32_0 = arith.constant 0 : i32
    %c0_i32_1 = arith.constant 0 : i32
    return %c0_i32, %c0_i32_0 : i32, i32
  }
  func.func @transform_4(%arg0: i32) -> (i32, i32) {
    %c0_i32 = arith.constant 0 : i32
    %c0_i32_0 = arith.constant 0 : i32
    %c0_i32_1 = arith.constant 0 : i32
    return %c0_i32, %c0_i32_0 : i32, i32
  }
  func.func @transform_5(%arg0: i32) -> (i32, i32) {
    %c0_i32 = arith.constant 0 : i32
    %c0_i32_0 = arith.constant 0 : i32
    %c0_i32_1 = arith.constant 0 : i32
    return %c0_i32, %c0_i32_0 : i32, i32
  }
  func.func @transform_6(%arg0: i32) -> (i32, i32) {
    %c0_i32 = arith.constant 0 : i32
    %c0_i32_0 = arith.constant 0 : i32
    %c0_i32_1 = arith.constant 0 : i32
    return %c0_i32, %c0_i32_0 : i32, i32
  }
  func.func @transform_7(%arg0: i32) -> (i32, i32) {
    %c0_i32 = arith.constant 0 : i32
    %c0_i32_0 = arith.constant 0 : i32
    return %arg0, %c0_i32 : i32, i32
  }
  func.func @transform_8(%arg0: i32) -> (i32, i32) {
    %c0_i32 = arith.constant 0 : i32
    %c0_i32_0 = arith.constant 0 : i32
    return %arg0, %c0_i32 : i32, i32
  }
}

module attributes {stable_mosaic.version = 11 : i64} {
  func.func @_mm_kernel(%arg0: i32, %arg1: memref<64x96xbf16, #tpu.memory_space<vmem>>, %arg2: memref<96x32xbf16, #tpu.memory_space<vmem>>, %arg3: memref<1x32xf32, #tpu.memory_space<vmem>>, %arg4: memref<1x32xf32, #tpu.memory_space<vmem>>, %arg5: memref<64x32xbf16, #tpu.memory_space<vmem>>) attributes {dimension_semantics = [#tpu.dimension_semantics<parallel>], iteration_bounds = array<i64: 2>, scalar_prefetch = 0 : i64, scratch_operands = 0 : i64, tpu.core_type = #tpu.core_type<tc>, window_params = [{transform_indices = @transform_0, window_bounds = array<i64: 64, 96>}, {pipeline_mode = #tpu.pipeline_mode<synchronous>, transform_indices = @transform_1, window_bounds = array<i64: 96, 32>}, {pipeline_mode = #tpu.pipeline_mode<synchronous>, transform_indices = @transform_2, window_bounds = array<i64: 1, 32>}, {pipeline_mode = #tpu.pipeline_mode<synchronous>, transform_indices = @transform_3, window_bounds = array<i64: 1, 32>}, {transform_indices = @transform_4, window_bounds = array<i64: 64, 32>}]} {
    %c0 = arith.constant 0 : index
    %c0_0 = arith.constant 0 : index
    %0 = vector.load %arg1[%c0, %c0_0] : memref<64x96xbf16, #tpu.memory_space<vmem>>, vector<64x96xbf16>
    %c0_1 = arith.constant 0 : index
    %c0_2 = arith.constant 0 : index
    %1 = vector.load %arg2[%c0_1, %c0_2] : memref<96x32xbf16, #tpu.memory_space<vmem>>, vector<96x32xbf16>
    %cst = arith.constant dense<0.000000e+00> : vector<64x32xf32>
    %2 = tpu.matmul %0, %1, %cst {dimension_numbers = #tpu.dot_dimension_numbers<[1], [0], [0], [1], [0, 0, 1, 1], [], []>} : vector<64x96xbf16>, vector<96x32xbf16>, vector<64x32xf32> -> vector<64x32xf32>
    %c0_3 = arith.constant 0 : index
    %c0_4 = arith.constant 0 : index
    %3 = vector.load %arg3[%c0_3, %c0_4] : memref<1x32xf32, #tpu.memory_space<vmem>>, vector<1x32xf32>
    %4 = vector.broadcast %3 : vector<1x32xf32> to vector<64x32xf32>
    %5 = arith.mulf %2, %4 : vector<64x32xf32>
    %c0_5 = arith.constant 0 : index
    %c0_6 = arith.constant 0 : index
    %6 = vector.load %arg4[%c0_5, %c0_6] : memref<1x32xf32, #tpu.memory_space<vmem>>, vector<1x32xf32>
    %7 = vector.broadcast %6 : vector<1x32xf32> to vector<64x32xf32>
    %8 = arith.addf %5, %7 : vector<64x32xf32>
    %cst_7 = arith.constant 0.000000e+00 : f32
    %9 = vector.broadcast %cst_7 : f32 to vector<64x32xf32>
    %10 = arith.maximumf %8, %9 : vector<64x32xf32>
    %11 = arith.truncf %10 : vector<64x32xf32> to vector<64x32xbf16>
    %c0_8 = arith.constant 0 : index
    %c0_9 = arith.constant 0 : index
    %12 = vector.load %arg5[%c0_8, %c0_9] : memref<64x32xbf16, #tpu.memory_space<vmem>>, vector<64x32xbf16>
    tpu.vector_store %arg5[%c0_8, %c0_9], %11 {strides = array<i32>} : memref<64x32xbf16, #tpu.memory_space<vmem>>, vector<64x32xbf16>,
    return
  }
  func.func @transform_0(%arg0: i32) -> (i32, i32) {
    %c0_i32 = arith.constant 0 : i32
    %c0_i32_0 = arith.constant 0 : i32
    return %arg0, %c0_i32 : i32, i32
  }
  func.func @transform_1(%arg0: i32) -> (i32, i32) {
    %c0_i32 = arith.constant 0 : i32
    %c0_i32_0 = arith.constant 0 : i32
    %c0_i32_1 = arith.constant 0 : i32
    return %c0_i32, %c0_i32_0 : i32, i32
  }
  func.func @transform_2(%arg0: i32) -> (i32, i32) {
    %c0_i32 = arith.constant 0 : i32
    %c0_i32_0 = arith.constant 0 : i32
    %c0_i32_1 = arith.constant 0 : i32
    return %c0_i32, %c0_i32_0 : i32, i32
  }
  func.func @transform_3(%arg0: i32) -> (i32, i32) {
    %c0_i32 = arith.constant 0 : i32
    %c0_i32_0 = arith.constant 0 : i32
    %c0_i32_1 = arith.constant 0 : i32
    return %c0_i32, %c0_i32_0 : i32, i32
  }
  func.func @transform_4(%arg0: i32) -> (i32, i32) {
    %c0_i32 = arith.constant 0 : i32
    %c0_i32_0 = arith.constant 0 : i32
    return %arg0, %c0_i32 : i32, i32
  }
}

module attributes {stable_mosaic.version = 11 : i64} {
  func.func @_mm_residual_kernel(%arg0: i32, %arg1: memref<64x96xbf16, #tpu.memory_space<vmem>>, %arg2: memref<96x32xbf16, #tpu.memory_space<vmem>>, %arg3: memref<1x32xf32, #tpu.memory_space<vmem>>, %arg4: memref<1x32xf32, #tpu.memory_space<vmem>>, %arg5: memref<64x32xbf16, #tpu.memory_space<vmem>>, %arg6: memref<64x32xbf16, #tpu.memory_space<vmem>>) attributes {dimension_semantics = [#tpu.dimension_semantics<parallel>], iteration_bounds = array<i64: 2>, scalar_prefetch = 0 : i64, scratch_operands = 0 : i64, tpu.core_type = #tpu.core_type<tc>, window_params = [{transform_indices = @transform_0, window_bounds = array<i64: 64, 96>}, {pipeline_mode = #tpu.pipeline_mode<synchronous>, transform_indices = @transform_1, window_bounds = array<i64: 96, 32>}, {pipeline_mode = #tpu.pipeline_mode<synchronous>, transform_indices = @transform_2, window_bounds = array<i64: 1, 32>}, {pipeline_mode = #tpu.pipeline_mode<synchronous>, transform_indices = @transform_3, window_bounds = array<i64: 1, 32>}, {transform_indices = @transform_4, window_bounds = array<i64: 64, 32>}, {transform_indices = @transform_5, window_bounds = array<i64: 64, 32>}]} {
    %c0 = arith.constant 0 : index
    %c0_0 = arith.constant 0 : index
    %0 = vector.load %arg1[%c0, %c0_0] : memref<64x96xbf16, #tpu.memory_space<vmem>>, vector<64x96xbf16>
    %c0_1 = arith.constant 0 : index
    %c0_2 = arith.constant 0 : index
    %1 = vector.load %arg2[%c0_1, %c0_2] : memref<96x32xbf16, #tpu.memory_space<vmem>>, vector<96x32xbf16>
    %cst = arith.constant dense<0.000000e+00> : vector<64x32xf32>
    %2 = tpu.matmul %0, %1, %cst {dimension_numbers = #tpu.dot_dimension_numbers<[1], [0], [0], [1], [0, 0, 1, 1], [], []>} : vector<64x96xbf16>, vector<96x32xbf16>, vector<64x32xf32> -> vector<64x32xf32>
    %c0_3 = arith.constant 0 : index
    %c0_4 = arith.constant 0 : index
    %3 = vector.load %arg3[%c0_3, %c0_4] : memref<1x32xf32, #tpu.memory_space<vmem>>, vector<1x32xf32>
    %4 = vector.broadcast %3 : vector<1x32xf32> to vector<64x32xf32>
    %5 = arith.mulf %2, %4 : vector<64x32xf32>
    %c0_5 = arith.constant 0 : index
    %c0_6 = arith.constant 0 : index
    %6 = vector.load %arg4[%c0_5, %c0_6] : memref<1x32xf32, #tpu.memory_space<vmem>>, vector<1x32xf32>
    %7 = vector.broadcast %6 : vector<1x32xf32> to vector<64x32xf32>
    %8 = arith.addf %5, %7 : vector<64x32xf32>
    %c0_7 = arith.constant 0 : index
    %c0_8 = arith.constant 0 : index
    %9 = vector.load %arg5[%c0_7, %c0_8] : memref<64x32xbf16, #tpu.memory_space<vmem>>, vector<64x32xbf16>
    %10 = arith.extf %9 : vector<64x32xbf16> to vector<64x32xf32>
    %11 = arith.addf %8, %10 : vector<64x32xf32>
    %cst_9 = arith.constant 0.000000e+00 : f32
    %12 = vector.broadcast %cst_9 : f32 to vector<64x32xf32>
    %13 = arith.maximumf %11, %12 : vector<64x32xf32>
    %14 = arith.truncf %13 : vector<64x32xf32> to vector<64x32xbf16>
    %c0_10 = arith.constant 0 : index
    %c0_11 = arith.constant 0 : index
    %15 = vector.load %arg6[%c0_10, %c0_11] : memref<64x32xbf16, #tpu.memory_space<vmem>>, vector<64x32xbf16>
    tpu.vector_store %arg6[%c0_10, %c0_11], %14 {strides = array<i32>} : memref<64x32xbf16, #tpu.memory_space<vmem>>, vector<64x32xbf16>,
    return
  }
  func.func @transform_0(%arg0: i32) -> (i32, i32) {
    %c0_i32 = arith.constant 0 : i32
    %c0_i32_0 = arith.constant 0 : i32
    return %arg0, %c0_i32 : i32, i32
  }
  func.func @transform_1(%arg0: i32) -> (i32, i32) {
    %c0_i32 = arith.constant 0 : i32
    %c0_i32_0 = arith.constant 0 : i32
    %c0_i32_1 = arith.constant 0 : i32
    return %c0_i32, %c0_i32_0 : i32, i32
  }
  func.func @transform_2(%arg0: i32) -> (i32, i32) {
    %c0_i32 = arith.constant 0 : i32
    %c0_i32_0 = arith.constant 0 : i32
    %c0_i32_1 = arith.constant 0 : i32
    return %c0_i32, %c0_i32_0 : i32, i32
  }
  func.func @transform_3(%arg0: i32) -> (i32, i32) {
    %c0_i32 = arith.constant 0 : i32
    %c0_i32_0 = arith.constant 0 : i32
    %c0_i32_1 = arith.constant 0 : i32
    return %c0_i32, %c0_i32_0 : i32, i32
  }
  func.func @transform_4(%arg0: i32) -> (i32, i32) {
    %c0_i32 = arith.constant 0 : i32
    %c0_i32_0 = arith.constant 0 : i32
    return %arg0, %c0_i32 : i32, i32
  }
  func.func @transform_5(%arg0: i32) -> (i32, i32) {
    %c0_i32 = arith.constant 0 : i32
    %c0_i32_0 = arith.constant 0 : i32
    return %arg0, %c0_i32 : i32, i32
  }
}

module attributes {stable_mosaic.version = 11 : i64} {
  func.func @_mm_pool_kernel(%arg0: i32, %arg1: memref<16x288xbf16, #tpu.memory_space<vmem>>, %arg2: memref<288x32xbf16, #tpu.memory_space<vmem>>, %arg3: memref<16x32xbf16, #tpu.memory_space<vmem>>, %arg4: memref<1x32xf32, #tpu.memory_space<vmem>>, %arg5: memref<1x32xf32, #tpu.memory_space<vmem>>, %arg6: memref<1x32xf32, #tpu.memory_space<vmem>>, %arg7: memref<1x32xf32, #tpu.memory_space<vmem>>, %arg8: memref<16x32xbf16, #tpu.memory_space<vmem>>, %arg9: memref<16x32xbf16, #tpu.memory_space<vmem>>) attributes {dimension_semantics = [#tpu.dimension_semantics<parallel>], iteration_bounds = array<i64: 2>, scalar_prefetch = 0 : i64, scratch_operands = 0 : i64, tpu.core_type = #tpu.core_type<tc>, window_params = [{transform_indices = @transform_0, window_bounds = array<i64: 16, 288>}, {pipeline_mode = #tpu.pipeline_mode<synchronous>, transform_indices = @transform_1, window_bounds = array<i64: 288, 32>}, {transform_indices = @transform_2, window_bounds = array<i64: 16, 32>}, {pipeline_mode = #tpu.pipeline_mode<synchronous>, transform_indices = @transform_3, window_bounds = array<i64: 1, 32>}, {pipeline_mode = #tpu.pipeline_mode<synchronous>, transform_indices = @transform_4, window_bounds = array<i64: 1, 32>}, {pipeline_mode = #tpu.pipeline_mode<synchronous>, transform_indices = @transform_5, window_bounds = array<i64: 1, 32>}, {pipeline_mode = #tpu.pipeline_mode<synchronous>, transform_indices = @transform_6, window_bounds = array<i64: 1, 32>}, {transform_indices = @transform_7, window_bounds = array<i64: 16, 32>}, {transform_indices = @transform_8, window_bounds = array<i64: 16, 32>}]} {
    %c0 = arith.constant 0 : index
    %c0_0 = arith.constant 0 : index
    %0 = vector.load %arg1[%c0, %c0_0] : memref<16x288xbf16, #tpu.memory_space<vmem>>, vector<16x288xbf16>
    %c0_1 = arith.constant 0 : index
    %c0_2 = arith.constant 0 : index
    %1 = vector.load %arg2[%c0_1, %c0_2] : memref<288x32xbf16, #tpu.memory_space<vmem>>, vector<288x32xbf16>
    %cst = arith.constant dense<0.000000e+00> : vector<16x32xf32>
    %2 = tpu.matmul %0, %1, %cst {dimension_numbers = #tpu.dot_dimension_numbers<[1], [0], [0], [1], [0, 0, 1, 1], [], []>} : vector<16x288xbf16>, vector<288x32xbf16>, vector<16x32xf32> -> vector<16x32xf32>
    %c0_3 = arith.constant 0 : index
    %c0_4 = arith.constant 0 : index
    %3 = vector.load %arg4[%c0_3, %c0_4] : memref<1x32xf32, #tpu.memory_space<vmem>>, vector<1x32xf32>
    %4 = vector.broadcast %3 : vector<1x32xf32> to vector<16x32xf32>
    %5 = arith.mulf %2, %4 : vector<16x32xf32>
    %c0_5 = arith.constant 0 : index
    %c0_6 = arith.constant 0 : index
    %6 = vector.load %arg5[%c0_5, %c0_6] : memref<1x32xf32, #tpu.memory_space<vmem>>, vector<1x32xf32>
    %7 = vector.broadcast %6 : vector<1x32xf32> to vector<16x32xf32>
    %8 = arith.addf %5, %7 : vector<16x32xf32>
    %cst_7 = arith.constant 0.000000e+00 : f32
    %9 = vector.broadcast %cst_7 : f32 to vector<16x32xf32>
    %10 = arith.maximumf %8, %9 : vector<16x32xf32>
    %11 = arith.truncf %10 : vector<16x32xf32> to vector<16x32xbf16>
    %c0_8 = arith.constant 0 : index
    %c0_9 = arith.constant 0 : index
    %12 = vector.load %arg8[%c0_8, %c0_9] : memref<16x32xbf16, #tpu.memory_space<vmem>>, vector<16x32xbf16>
    tpu.vector_store %arg8[%c0_8, %c0_9], %11 {strides = array<i32>} : memref<16x32xbf16, #tpu.memory_space<vmem>>, vector<16x32xbf16>,
    %c0_10 = arith.constant 0 : index
    %c0_11 = arith.constant 0 : index
    %13 = vector.load %arg3[%c0_10, %c0_11] : memref<16x32xbf16, #tpu.memory_space<vmem>>, vector<16x32xbf16>
    %14 = arith.extf %13 : vector<16x32xbf16> to vector<16x32xf32>
    %c0_12 = arith.constant 0 : index
    %c0_13 = arith.constant 0 : index
    %15 = vector.load %arg6[%c0_12, %c0_13] : memref<1x32xf32, #tpu.memory_space<vmem>>, vector<1x32xf32>
    %16 = vector.broadcast %15 : vector<1x32xf32> to vector<16x32xf32>
    %17 = arith.mulf %14, %16 : vector<16x32xf32>
    %c0_14 = arith.constant 0 : index
    %c0_15 = arith.constant 0 : index
    %18 = vector.load %arg7[%c0_14, %c0_15] : memref<1x32xf32, #tpu.memory_space<vmem>>, vector<1x32xf32>
    %19 = vector.broadcast %18 : vector<1x32xf32> to vector<16x32xf32>
    %20 = arith.addf %17, %19 : vector<16x32xf32>
    %cst_16 = arith.constant 0.000000e+00 : f32
    %21 = vector.broadcast %cst_16 : f32 to vector<16x32xf32>
    %22 = arith.maximumf %20, %21 : vector<16x32xf32>
    %23 = arith.truncf %22 : vector<16x32xf32> to vector<16x32xbf16>
    %c0_17 = arith.constant 0 : index
    %c0_18 = arith.constant 0 : index
    %24 = vector.load %arg9[%c0_17, %c0_18] : memref<16x32xbf16, #tpu.memory_space<vmem>>, vector<16x32xbf16>
    tpu.vector_store %arg9[%c0_17, %c0_18], %23 {strides = array<i32>} : memref<16x32xbf16, #tpu.memory_space<vmem>>, vector<16x32xbf16>,
    return
  }
  func.func @transform_0(%arg0: i32) -> (i32, i32) {
    %c0_i32 = arith.constant 0 : i32
    %c0_i32_0 = arith.constant 0 : i32
    return %arg0, %c0_i32 : i32, i32
  }
  func.func @transform_1(%arg0: i32) -> (i32, i32) {
    %c0_i32 = arith.constant 0 : i32
    %c0_i32_0 = arith.constant 0 : i32
    %c0_i32_1 = arith.constant 0 : i32
    return %c0_i32, %c0_i32_0 : i32, i32
  }
  func.func @transform_2(%arg0: i32) -> (i32, i32) {
    %c0_i32 = arith.constant 0 : i32
    %c0_i32_0 = arith.constant 0 : i32
    return %arg0, %c0_i32 : i32, i32
  }
  func.func @transform_3(%arg0: i32) -> (i32, i32) {
    %c0_i32 = arith.constant 0 : i32
    %c0_i32_0 = arith.constant 0 : i32
    %c0_i32_1 = arith.constant 0 : i32
    return %c0_i32, %c0_i32_0 : i32, i32
  }
  func.func @transform_4(%arg0: i32) -> (i32, i32) {
    %c0_i32 = arith.constant 0 : i32
    %c0_i32_0 = arith.constant 0 : i32
    %c0_i32_1 = arith.constant 0 : i32
    return %c0_i32, %c0_i32_0 : i32, i32
  }
  func.func @transform_5(%arg0: i32) -> (i32, i32) {
    %c0_i32 = arith.constant 0 : i32
    %c0_i32_0 = arith.constant 0 : i32
    %c0_i32_1 = arith.constant 0 : i32
    return %c0_i32, %c0_i32_0 : i32, i32
  }
  func.func @transform_6(%arg0: i32) -> (i32, i32) {
    %c0_i32 = arith.constant 0 : i32
    %c0_i32_0 = arith.constant 0 : i32
    %c0_i32_1 = arith.constant 0 : i32
    return %c0_i32, %c0_i32_0 : i32, i32
  }
  func.func @transform_7(%arg0: i32) -> (i32, i32) {
    %c0_i32 = arith.constant 0 : i32
    %c0_i32_0 = arith.constant 0 : i32
    return %arg0, %c0_i32 : i32, i32
  }
  func.func @transform_8(%arg0: i32) -> (i32, i32) {
    %c0_i32 = arith.constant 0 : i32
    %c0_i32_0 = arith.constant 0 : i32
    return %arg0, %c0_i32 : i32, i32
  }
}

module attributes {stable_mosaic.version = 11 : i64} {
  func.func @_mm_kernel(%arg0: i32, %arg1: memref<16x192xbf16, #tpu.memory_space<vmem>>, %arg2: memref<192x64xbf16, #tpu.memory_space<vmem>>, %arg3: memref<1x64xf32, #tpu.memory_space<vmem>>, %arg4: memref<1x64xf32, #tpu.memory_space<vmem>>, %arg5: memref<16x64xbf16, #tpu.memory_space<vmem>>) attributes {dimension_semantics = [#tpu.dimension_semantics<parallel>], iteration_bounds = array<i64: 2>, scalar_prefetch = 0 : i64, scratch_operands = 0 : i64, tpu.core_type = #tpu.core_type<tc>, window_params = [{transform_indices = @transform_0, window_bounds = array<i64: 16, 192>}, {pipeline_mode = #tpu.pipeline_mode<synchronous>, transform_indices = @transform_1, window_bounds = array<i64: 192, 64>}, {pipeline_mode = #tpu.pipeline_mode<synchronous>, transform_indices = @transform_2, window_bounds = array<i64: 1, 64>}, {pipeline_mode = #tpu.pipeline_mode<synchronous>, transform_indices = @transform_3, window_bounds = array<i64: 1, 64>}, {transform_indices = @transform_4, window_bounds = array<i64: 16, 64>}]} {
    %c0 = arith.constant 0 : index
    %c0_0 = arith.constant 0 : index
    %0 = vector.load %arg1[%c0, %c0_0] : memref<16x192xbf16, #tpu.memory_space<vmem>>, vector<16x192xbf16>
    %c0_1 = arith.constant 0 : index
    %c0_2 = arith.constant 0 : index
    %1 = vector.load %arg2[%c0_1, %c0_2] : memref<192x64xbf16, #tpu.memory_space<vmem>>, vector<192x64xbf16>
    %cst = arith.constant dense<0.000000e+00> : vector<16x64xf32>
    %2 = tpu.matmul %0, %1, %cst {dimension_numbers = #tpu.dot_dimension_numbers<[1], [0], [0], [1], [0, 0, 1, 1], [], []>} : vector<16x192xbf16>, vector<192x64xbf16>, vector<16x64xf32> -> vector<16x64xf32>
    %c0_3 = arith.constant 0 : index
    %c0_4 = arith.constant 0 : index
    %3 = vector.load %arg3[%c0_3, %c0_4] : memref<1x64xf32, #tpu.memory_space<vmem>>, vector<1x64xf32>
    %4 = vector.broadcast %3 : vector<1x64xf32> to vector<16x64xf32>
    %5 = arith.mulf %2, %4 : vector<16x64xf32>
    %c0_5 = arith.constant 0 : index
    %c0_6 = arith.constant 0 : index
    %6 = vector.load %arg4[%c0_5, %c0_6] : memref<1x64xf32, #tpu.memory_space<vmem>>, vector<1x64xf32>
    %7 = vector.broadcast %6 : vector<1x64xf32> to vector<16x64xf32>
    %8 = arith.addf %5, %7 : vector<16x64xf32>
    %cst_7 = arith.constant 0.000000e+00 : f32
    %9 = vector.broadcast %cst_7 : f32 to vector<16x64xf32>
    %10 = arith.maximumf %8, %9 : vector<16x64xf32>
    %11 = arith.truncf %10 : vector<16x64xf32> to vector<16x64xbf16>
    %c0_8 = arith.constant 0 : index
    %c0_9 = arith.constant 0 : index
    %12 = vector.load %arg5[%c0_8, %c0_9] : memref<16x64xbf16, #tpu.memory_space<vmem>>, vector<16x64xbf16>
    tpu.vector_store %arg5[%c0_8, %c0_9], %11 {strides = array<i32>} : memref<16x64xbf16, #tpu.memory_space<vmem>>, vector<16x64xbf16>,
    return
  }
  func.func @transform_0(%arg0: i32) -> (i32, i32) {
    %c0_i32 = arith.constant 0 : i32
    %c0_i32_0 = arith.constant 0 : i32
    return %arg0, %c0_i32 : i32, i32
  }
  func.func @transform_1(%arg0: i32) -> (i32, i32) {
    %c0_i32 = arith.constant 0 : i32
    %c0_i32_0 = arith.constant 0 : i32
    %c0_i32_1 = arith.constant 0 : i32
    return %c0_i32, %c0_i32_0 : i32, i32
  }
  func.func @transform_2(%arg0: i32) -> (i32, i32) {
    %c0_i32 = arith.constant 0 : i32
    %c0_i32_0 = arith.constant 0 : i32
    %c0_i32_1 = arith.constant 0 : i32
    return %c0_i32, %c0_i32_0 : i32, i32
  }
  func.func @transform_3(%arg0: i32) -> (i32, i32) {
    %c0_i32 = arith.constant 0 : i32
    %c0_i32_0 = arith.constant 0 : i32
    %c0_i32_1 = arith.constant 0 : i32
    return %c0_i32, %c0_i32_0 : i32, i32
  }
  func.func @transform_4(%arg0: i32) -> (i32, i32) {
    %c0_i32 = arith.constant 0 : i32
    %c0_i32_0 = arith.constant 0 : i32
    return %arg0, %c0_i32 : i32, i32
  }
}

module attributes {stable_mosaic.version = 11 : i64} {
  func.func @_mm_residual_kernel(%arg0: i32, %arg1: memref<16x192xbf16, #tpu.memory_space<vmem>>, %arg2: memref<192x64xbf16, #tpu.memory_space<vmem>>, %arg3: memref<1x64xf32, #tpu.memory_space<vmem>>, %arg4: memref<1x64xf32, #tpu.memory_space<vmem>>, %arg5: memref<16x64xbf16, #tpu.memory_space<vmem>>, %arg6: memref<16x64xbf16, #tpu.memory_space<vmem>>) attributes {dimension_semantics = [#tpu.dimension_semantics<parallel>], iteration_bounds = array<i64: 2>, scalar_prefetch = 0 : i64, scratch_operands = 0 : i64, tpu.core_type = #tpu.core_type<tc>, window_params = [{transform_indices = @transform_0, window_bounds = array<i64: 16, 192>}, {pipeline_mode = #tpu.pipeline_mode<synchronous>, transform_indices = @transform_1, window_bounds = array<i64: 192, 64>}, {pipeline_mode = #tpu.pipeline_mode<synchronous>, transform_indices = @transform_2, window_bounds = array<i64: 1, 64>}, {pipeline_mode = #tpu.pipeline_mode<synchronous>, transform_indices = @transform_3, window_bounds = array<i64: 1, 64>}, {transform_indices = @transform_4, window_bounds = array<i64: 16, 64>}, {transform_indices = @transform_5, window_bounds = array<i64: 16, 64>}]} {
    %c0 = arith.constant 0 : index
    %c0_0 = arith.constant 0 : index
    %0 = vector.load %arg1[%c0, %c0_0] : memref<16x192xbf16, #tpu.memory_space<vmem>>, vector<16x192xbf16>
    %c0_1 = arith.constant 0 : index
    %c0_2 = arith.constant 0 : index
    %1 = vector.load %arg2[%c0_1, %c0_2] : memref<192x64xbf16, #tpu.memory_space<vmem>>, vector<192x64xbf16>
    %cst = arith.constant dense<0.000000e+00> : vector<16x64xf32>
    %2 = tpu.matmul %0, %1, %cst {dimension_numbers = #tpu.dot_dimension_numbers<[1], [0], [0], [1], [0, 0, 1, 1], [], []>} : vector<16x192xbf16>, vector<192x64xbf16>, vector<16x64xf32> -> vector<16x64xf32>
    %c0_3 = arith.constant 0 : index
    %c0_4 = arith.constant 0 : index
    %3 = vector.load %arg3[%c0_3, %c0_4] : memref<1x64xf32, #tpu.memory_space<vmem>>, vector<1x64xf32>
    %4 = vector.broadcast %3 : vector<1x64xf32> to vector<16x64xf32>
    %5 = arith.mulf %2, %4 : vector<16x64xf32>
    %c0_5 = arith.constant 0 : index
    %c0_6 = arith.constant 0 : index
    %6 = vector.load %arg4[%c0_5, %c0_6] : memref<1x64xf32, #tpu.memory_space<vmem>>, vector<1x64xf32>
    %7 = vector.broadcast %6 : vector<1x64xf32> to vector<16x64xf32>
    %8 = arith.addf %5, %7 : vector<16x64xf32>
    %c0_7 = arith.constant 0 : index
    %c0_8 = arith.constant 0 : index
    %9 = vector.load %arg5[%c0_7, %c0_8] : memref<16x64xbf16, #tpu.memory_space<vmem>>, vector<16x64xbf16>
    %10 = arith.extf %9 : vector<16x64xbf16> to vector<16x64xf32>
    %11 = arith.addf %8, %10 : vector<16x64xf32>
    %cst_9 = arith.constant 0.000000e+00 : f32
    %12 = vector.broadcast %cst_9 : f32 to vector<16x64xf32>
    %13 = arith.maximumf %11, %12 : vector<16x64xf32>
    %14 = arith.truncf %13 : vector<16x64xf32> to vector<16x64xbf16>
    %c0_10 = arith.constant 0 : index
    %c0_11 = arith.constant 0 : index
    %15 = vector.load %arg6[%c0_10, %c0_11] : memref<16x64xbf16, #tpu.memory_space<vmem>>, vector<16x64xbf16>
    tpu.vector_store %arg6[%c0_10, %c0_11], %14 {strides = array<i32>} : memref<16x64xbf16, #tpu.memory_space<vmem>>, vector<16x64xbf16>,
    return
  }
  func.func @transform_0(%arg0: i32) -> (i32, i32) {
    %c0_i32 = arith.constant 0 : i32
    %c0_i32_0 = arith.constant 0 : i32
    return %arg0, %c0_i32 : i32, i32
  }
  func.func @transform_1(%arg0: i32) -> (i32, i32) {
    %c0_i32 = arith.constant 0 : i32
    %c0_i32_0 = arith.constant 0 : i32
    %c0_i32_1 = arith.constant 0 : i32
    return %c0_i32, %c0_i32_0 : i32, i32
  }
  func.func @transform_2(%arg0: i32) -> (i32, i32) {
    %c0_i32 = arith.constant 0 : i32
    %c0_i32_0 = arith.constant 0 : i32
    %c0_i32_1 = arith.constant 0 : i32
    return %c0_i32, %c0_i32_0 : i32, i32
  }
  func.func @transform_3(%arg0: i32) -> (i32, i32) {
    %c0_i32 = arith.constant 0 : i32
    %c0_i32_0 = arith.constant 0 : i32
    %c0_i32_1 = arith.constant 0 : i32
    return %c0_i32, %c0_i32_0 : i32, i32
  }
  func.func @transform_4(%arg0: i32) -> (i32, i32) {
    %c0_i32 = arith.constant 0 : i32
    %c0_i32_0 = arith.constant 0 : i32
    return %arg0, %c0_i32 : i32, i32
  }
  func.func @transform_5(%arg0: i32) -> (i32, i32) {
    %c0_i32 = arith.constant 0 : i32
    %c0_i32_0 = arith.constant 0 : i32
    return %arg0, %c0_i32 : i32, i32
  }
}

module attributes {stable_mosaic.version = 11 : i64} {
  func.func @_mm_pool_kernel(%arg0: i32, %arg1: memref<8x576xbf16, #tpu.memory_space<vmem>>, %arg2: memref<576x64xbf16, #tpu.memory_space<vmem>>, %arg3: memref<8x64xbf16, #tpu.memory_space<vmem>>, %arg4: memref<1x64xf32, #tpu.memory_space<vmem>>, %arg5: memref<1x64xf32, #tpu.memory_space<vmem>>, %arg6: memref<1x64xf32, #tpu.memory_space<vmem>>, %arg7: memref<1x64xf32, #tpu.memory_space<vmem>>, %arg8: memref<8x64xbf16, #tpu.memory_space<vmem>>, %arg9: memref<8x64xbf16, #tpu.memory_space<vmem>>) attributes {dimension_semantics = [#tpu.dimension_semantics<parallel>], iteration_bounds = array<i64: 1>, scalar_prefetch = 0 : i64, scratch_operands = 0 : i64, tpu.core_type = #tpu.core_type<tc>, window_params = [{transform_indices = @transform_0, window_bounds = array<i64: 8, 576>}, {pipeline_mode = #tpu.pipeline_mode<synchronous>, transform_indices = @transform_1, window_bounds = array<i64: 576, 64>}, {transform_indices = @transform_2, window_bounds = array<i64: 8, 64>}, {pipeline_mode = #tpu.pipeline_mode<synchronous>, transform_indices = @transform_3, window_bounds = array<i64: 1, 64>}, {pipeline_mode = #tpu.pipeline_mode<synchronous>, transform_indices = @transform_4, window_bounds = array<i64: 1, 64>}, {pipeline_mode = #tpu.pipeline_mode<synchronous>, transform_indices = @transform_5, window_bounds = array<i64: 1, 64>}, {pipeline_mode = #tpu.pipeline_mode<synchronous>, transform_indices = @transform_6, window_bounds = array<i64: 1, 64>}, {transform_indices = @transform_7, window_bounds = array<i64: 8, 64>}, {transform_indices = @transform_8, window_bounds = array<i64: 8, 64>}]} {
    %c0 = arith.constant 0 : index
    %c0_0 = arith.constant 0 : index
    %0 = vector.load %arg1[%c0, %c0_0] : memref<8x576xbf16, #tpu.memory_space<vmem>>, vector<8x576xbf16>
    %c0_1 = arith.constant 0 : index
    %c0_2 = arith.constant 0 : index
    %1 = vector.load %arg2[%c0_1, %c0_2] : memref<576x64xbf16, #tpu.memory_space<vmem>>, vector<576x64xbf16>
    %cst = arith.constant dense<0.000000e+00> : vector<8x64xf32>
    %2 = tpu.matmul %0, %1, %cst {dimension_numbers = #tpu.dot_dimension_numbers<[1], [0], [0], [1], [0, 0, 1, 1], [], []>} : vector<8x576xbf16>, vector<576x64xbf16>, vector<8x64xf32> -> vector<8x64xf32>
    %c0_3 = arith.constant 0 : index
    %c0_4 = arith.constant 0 : index
    %3 = vector.load %arg4[%c0_3, %c0_4] : memref<1x64xf32, #tpu.memory_space<vmem>>, vector<1x64xf32>
    %4 = vector.broadcast %3 : vector<1x64xf32> to vector<8x64xf32>
    %5 = arith.mulf %2, %4 : vector<8x64xf32>
    %c0_5 = arith.constant 0 : index
    %c0_6 = arith.constant 0 : index
    %6 = vector.load %arg5[%c0_5, %c0_6] : memref<1x64xf32, #tpu.memory_space<vmem>>, vector<1x64xf32>
    %7 = vector.broadcast %6 : vector<1x64xf32> to vector<8x64xf32>
    %8 = arith.addf %5, %7 : vector<8x64xf32>
    %cst_7 = arith.constant 0.000000e+00 : f32
    %9 = vector.broadcast %cst_7 : f32 to vector<8x64xf32>
    %10 = arith.maximumf %8, %9 : vector<8x64xf32>
    %11 = arith.truncf %10 : vector<8x64xf32> to vector<8x64xbf16>
    %c0_8 = arith.constant 0 : index
    %c0_9 = arith.constant 0 : index
    %12 = vector.load %arg8[%c0_8, %c0_9] : memref<8x64xbf16, #tpu.memory_space<vmem>>, vector<8x64xbf16>
    tpu.vector_store %arg8[%c0_8, %c0_9], %11 {strides = array<i32>} : memref<8x64xbf16, #tpu.memory_space<vmem>>, vector<8x64xbf16>,
    %c0_10 = arith.constant 0 : index
    %c0_11 = arith.constant 0 : index
    %13 = vector.load %arg3[%c0_10, %c0_11] : memref<8x64xbf16, #tpu.memory_space<vmem>>, vector<8x64xbf16>
    %14 = arith.extf %13 : vector<8x64xbf16> to vector<8x64xf32>
    %c0_12 = arith.constant 0 : index
    %c0_13 = arith.constant 0 : index
    %15 = vector.load %arg6[%c0_12, %c0_13] : memref<1x64xf32, #tpu.memory_space<vmem>>, vector<1x64xf32>
    %16 = vector.broadcast %15 : vector<1x64xf32> to vector<8x64xf32>
    %17 = arith.mulf %14, %16 : vector<8x64xf32>
    %c0_14 = arith.constant 0 : index
    %c0_15 = arith.constant 0 : index
    %18 = vector.load %arg7[%c0_14, %c0_15] : memref<1x64xf32, #tpu.memory_space<vmem>>, vector<1x64xf32>
    %19 = vector.broadcast %18 : vector<1x64xf32> to vector<8x64xf32>
    %20 = arith.addf %17, %19 : vector<8x64xf32>
    %cst_16 = arith.constant 0.000000e+00 : f32
    %21 = vector.broadcast %cst_16 : f32 to vector<8x64xf32>
    %22 = arith.maximumf %20, %21 : vector<8x64xf32>
    %23 = arith.truncf %22 : vector<8x64xf32> to vector<8x64xbf16>
    %c0_17 = arith.constant 0 : index
    %c0_18 = arith.constant 0 : index
    %24 = vector.load %arg9[%c0_17, %c0_18] : memref<8x64xbf16, #tpu.memory_space<vmem>>, vector<8x64xbf16>
    tpu.vector_store %arg9[%c0_17, %c0_18], %23 {strides = array<i32>} : memref<8x64xbf16, #tpu.memory_space<vmem>>, vector<8x64xbf16>,
    return
  }
  func.func @transform_0(%arg0: i32) -> (i32, i32) {
    %c0_i32 = arith.constant 0 : i32
    %c0_i32_0 = arith.constant 0 : i32
    return %arg0, %c0_i32 : i32, i32
  }
  func.func @transform_1(%arg0: i32) -> (i32, i32) {
    %c0_i32 = arith.constant 0 : i32
    %c0_i32_0 = arith.constant 0 : i32
    %c0_i32_1 = arith.constant 0 : i32
    return %c0_i32, %c0_i32_0 : i32, i32
  }
  func.func @transform_2(%arg0: i32) -> (i32, i32) {
    %c0_i32 = arith.constant 0 : i32
    %c0_i32_0 = arith.constant 0 : i32
    return %arg0, %c0_i32 : i32, i32
  }
  func.func @transform_3(%arg0: i32) -> (i32, i32) {
    %c0_i32 = arith.constant 0 : i32
    %c0_i32_0 = arith.constant 0 : i32
    %c0_i32_1 = arith.constant 0 : i32
    return %c0_i32, %c0_i32_0 : i32, i32
  }
  func.func @transform_4(%arg0: i32) -> (i32, i32) {
    %c0_i32 = arith.constant 0 : i32
    %c0_i32_0 = arith.constant 0 : i32
    %c0_i32_1 = arith.constant 0 : i32
    return %c0_i32, %c0_i32_0 : i32, i32
  }
  func.func @transform_5(%arg0: i32) -> (i32, i32) {
    %c0_i32 = arith.constant 0 : i32
    %c0_i32_0 = arith.constant 0 : i32
    %c0_i32_1 = arith.constant 0 : i32
    return %c0_i32, %c0_i32_0 : i32, i32
  }
  func.func @transform_6(%arg0: i32) -> (i32, i32) {
    %c0_i32 = arith.constant 0 : i32
    %c0_i32_0 = arith.constant 0 : i32
    %c0_i32_1 = arith.constant 0 : i32
    return %c0_i32, %c0_i32_0 : i32, i32
  }
  func.func @transform_7(%arg0: i32) -> (i32, i32) {
    %c0_i32 = arith.constant 0 : i32
    %c0_i32_0 = arith.constant 0 : i32
    return %arg0, %c0_i32 : i32, i32
  }
  func.func @transform_8(%arg0: i32) -> (i32, i32) {
    %c0_i32 = arith.constant 0 : i32
    %c0_i32_0 = arith.constant 0 : i32
    return %arg0, %c0_i32 : i32, i32
  }
}

module attributes {stable_mosaic.version = 11 : i64} {
  func.func @_mm_residual_kernel(%arg0: i32, %arg1: memref<8x384xbf16, #tpu.memory_space<vmem>>, %arg2: memref<384x128xbf16, #tpu.memory_space<vmem>>, %arg3: memref<1x128xf32, #tpu.memory_space<vmem>>, %arg4: memref<1x128xf32, #tpu.memory_space<vmem>>, %arg5: memref<8x128xbf16, #tpu.memory_space<vmem>>, %arg6: memref<8x128xbf16, #tpu.memory_space<vmem>>) attributes {dimension_semantics = [#tpu.dimension_semantics<parallel>], iteration_bounds = array<i64: 1>, scalar_prefetch = 0 : i64, scratch_operands = 0 : i64, tpu.core_type = #tpu.core_type<tc>, window_params = [{transform_indices = @transform_0, window_bounds = array<i64: 8, 384>}, {pipeline_mode = #tpu.pipeline_mode<synchronous>, transform_indices = @transform_1, window_bounds = array<i64: 384, 128>}, {pipeline_mode = #tpu.pipeline_mode<synchronous>, transform_indices = @transform_2, window_bounds = array<i64: 1, 128>}, {pipeline_mode = #tpu.pipeline_mode<synchronous>, transform_indices = @transform_3, window_bounds = array<i64: 1, 128>}, {transform_indices = @transform_4, window_bounds = array<i64: 8, 128>}, {transform_indices = @transform_5, window_bounds = array<i64: 8, 128>}]} {
    %c0 = arith.constant 0 : index
    %c0_0 = arith.constant 0 : index
    %0 = vector.load %arg1[%c0, %c0_0] : memref<8x384xbf16, #tpu.memory_space<vmem>>, vector<8x384xbf16>
    %c0_1 = arith.constant 0 : index
    %c0_2 = arith.constant 0 : index
    %1 = vector.load %arg2[%c0_1, %c0_2] : memref<384x128xbf16, #tpu.memory_space<vmem>>, vector<384x128xbf16>
    %cst = arith.constant dense<0.000000e+00> : vector<8x128xf32>
    %2 = tpu.matmul %0, %1, %cst {dimension_numbers = #tpu.dot_dimension_numbers<[1], [0], [0], [1], [0, 0, 1, 1], [], []>} : vector<8x384xbf16>, vector<384x128xbf16>, vector<8x128xf32> -> vector<8x128xf32>
    %c0_3 = arith.constant 0 : index
    %c0_4 = arith.constant 0 : index
    %3 = vector.load %arg3[%c0_3, %c0_4] : memref<1x128xf32, #tpu.memory_space<vmem>>, vector<1x128xf32>
    %4 = vector.broadcast %3 : vector<1x128xf32> to vector<8x128xf32>
    %5 = arith.mulf %2, %4 : vector<8x128xf32>
    %c0_5 = arith.constant 0 : index
    %c0_6 = arith.constant 0 : index
    %6 = vector.load %arg4[%c0_5, %c0_6] : memref<1x128xf32, #tpu.memory_space<vmem>>, vector<1x128xf32>
    %7 = vector.broadcast %6 : vector<1x128xf32> to vector<8x128xf32>
    %8 = arith.addf %5, %7 : vector<8x128xf32>
    %c0_7 = arith.constant 0 : index
    %c0_8 = arith.constant 0 : index
    %9 = vector.load %arg5[%c0_7, %c0_8] : memref<8x128xbf16, #tpu.memory_space<vmem>>, vector<8x128xbf16>
    %10 = arith.extf %9 : vector<8x128xbf16> to vector<8x128xf32>
    %11 = arith.addf %8, %10 : vector<8x128xf32>
    %cst_9 = arith.constant 0.000000e+00 : f32
    %12 = vector.broadcast %cst_9 : f32 to vector<8x128xf32>
    %13 = arith.maximumf %11, %12 : vector<8x128xf32>
    %14 = arith.truncf %13 : vector<8x128xf32> to vector<8x128xbf16>
    %c0_10 = arith.constant 0 : index
    %c0_11 = arith.constant 0 : index
    %15 = vector.load %arg6[%c0_10, %c0_11] : memref<8x128xbf16, #tpu.memory_space<vmem>>, vector<8x128xbf16>
    tpu.vector_store %arg6[%c0_10, %c0_11], %14 {strides = array<i32>} : memref<8x128xbf16, #tpu.memory_space<vmem>>, vector<8x128xbf16>,
    return
  }
  func.func @transform_0(%arg0: i32) -> (i32, i32) {
    %c0_i32 = arith.constant 0 : i32
    %c0_i32_0 = arith.constant 0 : i32
    return %arg0, %c0_i32 : i32, i32
  }
  func.func @transform_1(%arg0: i32) -> (i32, i32) {
    %c0_i32 = arith.constant 0 : i32
    %c0_i32_0 = arith.constant 0 : i32
    %c0_i32_1 = arith.constant 0 : i32
    return %c0_i32, %c0_i32_0 : i32, i32
  }
  func.func @transform_2(%arg0: i32) -> (i32, i32) {
    %c0_i32 = arith.constant 0 : i32
    %c0_i32_0 = arith.constant 0 : i32
    %c0_i32_1 = arith.constant 0 : i32
    return %c0_i32, %c0_i32_0 : i32, i32
  }
  func.func @transform_3(%arg0: i32) -> (i32, i32) {
    %c0_i32 = arith.constant 0 : i32
    %c0_i32_0 = arith.constant 0 : i32
    %c0_i32_1 = arith.constant 0 : i32
    return %c0_i32, %c0_i32_0 : i32, i32
  }
  func.func @transform_4(%arg0: i32) -> (i32, i32) {
    %c0_i32 = arith.constant 0 : i32
    %c0_i32_0 = arith.constant 0 : i32
    return %arg0, %c0_i32 : i32, i32
  }
  func.func @transform_5(%arg0: i32) -> (i32, i32) {
    %c0_i32 = arith.constant 0 : i32
    %c0_i32_0 = arith.constant 0 : i32
    return %arg0, %c0_i32 : i32, i32
  }
}

module attributes {stable_mosaic.version = 11 : i64} {
  func.func @_mm_kernel(%arg0: i32, %arg1: memref<8x384xbf16, #tpu.memory_space<vmem>>, %arg2: memref<384x128xbf16, #tpu.memory_space<vmem>>, %arg3: memref<1x128xf32, #tpu.memory_space<vmem>>, %arg4: memref<1x128xf32, #tpu.memory_space<vmem>>, %arg5: memref<8x128xbf16, #tpu.memory_space<vmem>>) attributes {dimension_semantics = [#tpu.dimension_semantics<parallel>], iteration_bounds = array<i64: 1>, scalar_prefetch = 0 : i64, scratch_operands = 0 : i64, tpu.core_type = #tpu.core_type<tc>, window_params = [{transform_indices = @transform_0, window_bounds = array<i64: 8, 384>}, {pipeline_mode = #tpu.pipeline_mode<synchronous>, transform_indices = @transform_1, window_bounds = array<i64: 384, 128>}, {pipeline_mode = #tpu.pipeline_mode<synchronous>, transform_indices = @transform_2, window_bounds = array<i64: 1, 128>}, {pipeline_mode = #tpu.pipeline_mode<synchronous>, transform_indices = @transform_3, window_bounds = array<i64: 1, 128>}, {transform_indices = @transform_4, window_bounds = array<i64: 8, 128>}]} {
    %c0 = arith.constant 0 : index
    %c0_0 = arith.constant 0 : index
    %0 = vector.load %arg1[%c0, %c0_0] : memref<8x384xbf16, #tpu.memory_space<vmem>>, vector<8x384xbf16>
    %c0_1 = arith.constant 0 : index
    %c0_2 = arith.constant 0 : index
    %1 = vector.load %arg2[%c0_1, %c0_2] : memref<384x128xbf16, #tpu.memory_space<vmem>>, vector<384x128xbf16>
    %cst = arith.constant dense<0.000000e+00> : vector<8x128xf32>
    %2 = tpu.matmul %0, %1, %cst {dimension_numbers = #tpu.dot_dimension_numbers<[1], [0], [0], [1], [0, 0, 1, 1], [], []>} : vector<8x384xbf16>, vector<384x128xbf16>, vector<8x128xf32> -> vector<8x128xf32>
    %c0_3 = arith.constant 0 : index
    %c0_4 = arith.constant 0 : index
    %3 = vector.load %arg3[%c0_3, %c0_4] : memref<1x128xf32, #tpu.memory_space<vmem>>, vector<1x128xf32>
    %4 = vector.broadcast %3 : vector<1x128xf32> to vector<8x128xf32>
    %5 = arith.mulf %2, %4 : vector<8x128xf32>
    %c0_5 = arith.constant 0 : index
    %c0_6 = arith.constant 0 : index
    %6 = vector.load %arg4[%c0_5, %c0_6] : memref<1x128xf32, #tpu.memory_space<vmem>>, vector<1x128xf32>
    %7 = vector.broadcast %6 : vector<1x128xf32> to vector<8x128xf32>
    %8 = arith.addf %5, %7 : vector<8x128xf32>
    %cst_7 = arith.constant 0.000000e+00 : f32
    %9 = vector.broadcast %cst_7 : f32 to vector<8x128xf32>
    %10 = arith.maximumf %8, %9 : vector<8x128xf32>
    %11 = arith.truncf %10 : vector<8x128xf32> to vector<8x128xbf16>
    %c0_8 = arith.constant 0 : index
    %c0_9 = arith.constant 0 : index
    %12 = vector.load %arg5[%c0_8, %c0_9] : memref<8x128xbf16, #tpu.memory_space<vmem>>, vector<8x128xbf16>
    tpu.vector_store %arg5[%c0_8, %c0_9], %11 {strides = array<i32>} : memref<8x128xbf16, #tpu.memory_space<vmem>>, vector<8x128xbf16>,
    return
  }
  func.func @transform_0(%arg0: i32) -> (i32, i32) {
    %c0_i32 = arith.constant 0 : i32
    %c0_i32_0 = arith.constant 0 : i32
    return %arg0, %c0_i32 : i32, i32
  }
  func.func @transform_1(%arg0: i32) -> (i32, i32) {
    %c0_i32 = arith.constant 0 : i32
    %c0_i32_0 = arith.constant 0 : i32
    %c0_i32_1 = arith.constant 0 : i32
    return %c0_i32, %c0_i32_0 : i32, i32
  }
  func.func @transform_2(%arg0: i32) -> (i32, i32) {
    %c0_i32 = arith.constant 0 : i32
    %c0_i32_0 = arith.constant 0 : i32
    %c0_i32_1 = arith.constant 0 : i32
    return %c0_i32, %c0_i32_0 : i32, i32
  }
  func.func @transform_3(%arg0: i32) -> (i32, i32) {
    %c0_i32 = arith.constant 0 : i32
    %c0_i32_0 = arith.constant 0 : i32
    %c0_i32_1 = arith.constant 0 : i32
    return %c0_i32, %c0_i32_0 : i32, i32
  }
  func.func @transform_4(%arg0: i32) -> (i32, i32) {
    %c0_i32 = arith.constant 0 : i32
    %c0_i32_0 = arith.constant 0 : i32
    return %arg0, %c0_i32 : i32, i32
  }
}

module attributes {stable_mosaic.version = 11 : i64} {
  func.func @_mm_kernel(%arg0: i32, %arg1: memref<8x1152xbf16, #tpu.memory_space<vmem>>, %arg2: memref<1152x128xbf16, #tpu.memory_space<vmem>>, %arg3: memref<1x128xf32, #tpu.memory_space<vmem>>, %arg4: memref<1x128xf32, #tpu.memory_space<vmem>>, %arg5: memref<8x128xbf16, #tpu.memory_space<vmem>>) attributes {dimension_semantics = [#tpu.dimension_semantics<parallel>], iteration_bounds = array<i64: 1>, scalar_prefetch = 0 : i64, scratch_operands = 0 : i64, tpu.core_type = #tpu.core_type<tc>, window_params = [{transform_indices = @transform_0, window_bounds = array<i64: 8, 1152>}, {pipeline_mode = #tpu.pipeline_mode<synchronous>, transform_indices = @transform_1, window_bounds = array<i64: 1152, 128>}, {pipeline_mode = #tpu.pipeline_mode<synchronous>, transform_indices = @transform_2, window_bounds = array<i64: 1, 128>}, {pipeline_mode = #tpu.pipeline_mode<synchronous>, transform_indices = @transform_3, window_bounds = array<i64: 1, 128>}, {transform_indices = @transform_4, window_bounds = array<i64: 8, 128>}]} {
    %c0 = arith.constant 0 : index
    %c0_0 = arith.constant 0 : index
    %0 = vector.load %arg1[%c0, %c0_0] : memref<8x1152xbf16, #tpu.memory_space<vmem>>, vector<8x1152xbf16>
    %c0_1 = arith.constant 0 : index
    %c0_2 = arith.constant 0 : index
    %1 = vector.load %arg2[%c0_1, %c0_2] : memref<1152x128xbf16, #tpu.memory_space<vmem>>, vector<1152x128xbf16>
    %cst = arith.constant dense<0.000000e+00> : vector<8x128xf32>
    %2 = tpu.matmul %0, %1, %cst {dimension_numbers = #tpu.dot_dimension_numbers<[1], [0], [0], [1], [0, 0, 1, 1], [], []>} : vector<8x1152xbf16>, vector<1152x128xbf16>, vector<8x128xf32> -> vector<8x128xf32>
    %c0_3 = arith.constant 0 : index
    %c0_4 = arith.constant 0 : index
    %3 = vector.load %arg3[%c0_3, %c0_4] : memref<1x128xf32, #tpu.memory_space<vmem>>, vector<1x128xf32>
    %4 = vector.broadcast %3 : vector<1x128xf32> to vector<8x128xf32>
    %5 = arith.mulf %2, %4 : vector<8x128xf32>
    %c0_5 = arith.constant 0 : index
    %c0_6 = arith.constant 0 : index
    %6 = vector.load %arg4[%c0_5, %c0_6] : memref<1x128xf32, #tpu.memory_space<vmem>>, vector<1x128xf32>
    %7 = vector.broadcast %6 : vector<1x128xf32> to vector<8x128xf32>
    %8 = arith.addf %5, %7 : vector<8x128xf32>
    %cst_7 = arith.constant 0.000000e+00 : f32
    %9 = vector.broadcast %cst_7 : f32 to vector<8x128xf32>
    %10 = arith.maximumf %8, %9 : vector<8x128xf32>
    %11 = arith.truncf %10 : vector<8x128xf32> to vector<8x128xbf16>
    %c0_8 = arith.constant 0 : index
    %c0_9 = arith.constant 0 : index
    %12 = vector.load %arg5[%c0_8, %c0_9] : memref<8x128xbf16, #tpu.memory_space<vmem>>, vector<8x128xbf16>
    tpu.vector_store %arg5[%c0_8, %c0_9], %11 {strides = array<i32>} : memref<8x128xbf16, #tpu.memory_space<vmem>>, vector<8x128xbf16>,
    return
  }
  func.func @transform_0(%arg0: i32) -> (i32, i32) {
    %c0_i32 = arith.constant 0 : i32
    %c0_i32_0 = arith.constant 0 : i32
    return %arg0, %c0_i32 : i32, i32
  }
  func.func @transform_1(%arg0: i32) -> (i32, i32) {
    %c0_i32 = arith.constant 0 : i32
    %c0_i32_0 = arith.constant 0 : i32
    %c0_i32_1 = arith.constant 0 : i32
    return %c0_i32, %c0_i32_0 : i32, i32
  }
  func.func @transform_2(%arg0: i32) -> (i32, i32) {
    %c0_i32 = arith.constant 0 : i32
    %c0_i32_0 = arith.constant 0 : i32
    %c0_i32_1 = arith.constant 0 : i32
    return %c0_i32, %c0_i32_0 : i32, i32
  }
  func.func @transform_3(%arg0: i32) -> (i32, i32) {
    %c0_i32 = arith.constant 0 : i32
    %c0_i32_0 = arith.constant 0 : i32
    %c0_i32_1 = arith.constant 0 : i32
    return %c0_i32, %c0_i32_0 : i32, i32
  }
  func.func @transform_4(%arg0: i32) -> (i32, i32) {
    %c0_i32 = arith.constant 0 : i32
    %c0_i32_0 = arith.constant 0 : i32
    return %arg0, %c0_i32 : i32, i32
  }
}

module attributes {stable_mosaic.version = 11 : i64} {
  func.func @_mm_kernel(%arg0: i32, %arg1: memref<8x3200xbf16, #tpu.memory_space<vmem>>, %arg2: memref<3200x128xbf16, #tpu.memory_space<vmem>>, %arg3: memref<1x128xf32, #tpu.memory_space<vmem>>, %arg4: memref<1x128xf32, #tpu.memory_space<vmem>>, %arg5: memref<8x128xbf16, #tpu.memory_space<vmem>>) attributes {dimension_semantics = [#tpu.dimension_semantics<parallel>], iteration_bounds = array<i64: 1>, scalar_prefetch = 0 : i64, scratch_operands = 0 : i64, tpu.core_type = #tpu.core_type<tc>, window_params = [{transform_indices = @transform_0, window_bounds = array<i64: 8, 3200>}, {pipeline_mode = #tpu.pipeline_mode<synchronous>, transform_indices = @transform_1, window_bounds = array<i64: 3200, 128>}, {pipeline_mode = #tpu.pipeline_mode<synchronous>, transform_indices = @transform_2, window_bounds = array<i64: 1, 128>}, {pipeline_mode = #tpu.pipeline_mode<synchronous>, transform_indices = @transform_3, window_bounds = array<i64: 1, 128>}, {transform_indices = @transform_4, window_bounds = array<i64: 8, 128>}]} {
    %c0 = arith.constant 0 : index
    %c0_0 = arith.constant 0 : index
    %0 = vector.load %arg1[%c0, %c0_0] : memref<8x3200xbf16, #tpu.memory_space<vmem>>, vector<8x3200xbf16>
    %c0_1 = arith.constant 0 : index
    %c0_2 = arith.constant 0 : index
    %1 = vector.load %arg2[%c0_1, %c0_2] : memref<3200x128xbf16, #tpu.memory_space<vmem>>, vector<3200x128xbf16>
    %cst = arith.constant dense<0.000000e+00> : vector<8x128xf32>
    %2 = tpu.matmul %0, %1, %cst {dimension_numbers = #tpu.dot_dimension_numbers<[1], [0], [0], [1], [0, 0, 1, 1], [], []>} : vector<8x3200xbf16>, vector<3200x128xbf16>, vector<8x128xf32> -> vector<8x128xf32>
    %c0_3 = arith.constant 0 : index
    %c0_4 = arith.constant 0 : index
    %3 = vector.load %arg3[%c0_3, %c0_4] : memref<1x128xf32, #tpu.memory_space<vmem>>, vector<1x128xf32>
    %4 = vector.broadcast %3 : vector<1x128xf32> to vector<8x128xf32>
    %5 = arith.mulf %2, %4 : vector<8x128xf32>
    %c0_5 = arith.constant 0 : index
    %c0_6 = arith.constant 0 : index
    %6 = vector.load %arg4[%c0_5, %c0_6] : memref<1x128xf32, #tpu.memory_space<vmem>>, vector<1x128xf32>
    %7 = vector.broadcast %6 : vector<1x128xf32> to vector<8x128xf32>
    %8 = arith.addf %5, %7 : vector<8x128xf32>
    %cst_7 = arith.constant 0.000000e+00 : f32
    %9 = vector.broadcast %cst_7 : f32 to vector<8x128xf32>
    %10 = arith.maximumf %8, %9 : vector<8x128xf32>
    %11 = arith.truncf %10 : vector<8x128xf32> to vector<8x128xbf16>
    %c0_8 = arith.constant 0 : index
    %c0_9 = arith.constant 0 : index
    %12 = vector.load %arg5[%c0_8, %c0_9] : memref<8x128xbf16, #tpu.memory_space<vmem>>, vector<8x128xbf16>
    tpu.vector_store %arg5[%c0_8, %c0_9], %11 {strides = array<i32>} : memref<8x128xbf16, #tpu.memory_space<vmem>>, vector<8x128xbf16>,
    return
  }
  func.func @transform_0(%arg0: i32) -> (i32, i32) {
    %c0_i32 = arith.constant 0 : i32
    %c0_i32_0 = arith.constant 0 : i32
    return %arg0, %c0_i32 : i32, i32
  }
  func.func @transform_1(%arg0: i32) -> (i32, i32) {
    %c0_i32 = arith.constant 0 : i32
    %c0_i32_0 = arith.constant 0 : i32
    %c0_i32_1 = arith.constant 0 : i32
    return %c0_i32, %c0_i32_0 : i32, i32
  }
  func.func @transform_2(%arg0: i32) -> (i32, i32) {
    %c0_i32 = arith.constant 0 : i32
    %c0_i32_0 = arith.constant 0 : i32
    %c0_i32_1 = arith.constant 0 : i32
    return %c0_i32, %c0_i32_0 : i32, i32
  }
  func.func @transform_3(%arg0: i32) -> (i32, i32) {
    %c0_i32 = arith.constant 0 : i32
    %c0_i32_0 = arith.constant 0 : i32
    %c0_i32_1 = arith.constant 0 : i32
    return %c0_i32, %c0_i32_0 : i32, i32
  }
  func.func @transform_4(%arg0: i32) -> (i32, i32) {
    %c0_i32 = arith.constant 0 : i32
    %c0_i32_0 = arith.constant 0 : i32
    return %arg0, %c0_i32 : i32, i32
  }
}

module attributes {stable_mosaic.version = 11 : i64} {
  func.func @_mm_kernel(%arg0: i32, %arg1: memref<8x6272xbf16, #tpu.memory_space<vmem>>, %arg2: memref<6272x128xbf16, #tpu.memory_space<vmem>>, %arg3: memref<1x128xf32, #tpu.memory_space<vmem>>, %arg4: memref<1x128xf32, #tpu.memory_space<vmem>>, %arg5: memref<8x128xbf16, #tpu.memory_space<vmem>>) attributes {dimension_semantics = [#tpu.dimension_semantics<parallel>], iteration_bounds = array<i64: 1>, scalar_prefetch = 0 : i64, scratch_operands = 0 : i64, tpu.core_type = #tpu.core_type<tc>, window_params = [{transform_indices = @transform_0, window_bounds = array<i64: 8, 6272>}, {pipeline_mode = #tpu.pipeline_mode<synchronous>, transform_indices = @transform_1, window_bounds = array<i64: 6272, 128>}, {pipeline_mode = #tpu.pipeline_mode<synchronous>, transform_indices = @transform_2, window_bounds = array<i64: 1, 128>}, {pipeline_mode = #tpu.pipeline_mode<synchronous>, transform_indices = @transform_3, window_bounds = array<i64: 1, 128>}, {transform_indices = @transform_4, window_bounds = array<i64: 8, 128>}]} {
    %c0 = arith.constant 0 : index
    %c0_0 = arith.constant 0 : index
    %0 = vector.load %arg1[%c0, %c0_0] : memref<8x6272xbf16, #tpu.memory_space<vmem>>, vector<8x6272xbf16>
    %c0_1 = arith.constant 0 : index
    %c0_2 = arith.constant 0 : index
    %1 = vector.load %arg2[%c0_1, %c0_2] : memref<6272x128xbf16, #tpu.memory_space<vmem>>, vector<6272x128xbf16>
    %cst = arith.constant dense<0.000000e+00> : vector<8x128xf32>
    %2 = tpu.matmul %0, %1, %cst {dimension_numbers = #tpu.dot_dimension_numbers<[1], [0], [0], [1], [0, 0, 1, 1], [], []>} : vector<8x6272xbf16>, vector<6272x128xbf16>, vector<8x128xf32> -> vector<8x128xf32>
    %c0_3 = arith.constant 0 : index
    %c0_4 = arith.constant 0 : index
    %3 = vector.load %arg3[%c0_3, %c0_4] : memref<1x128xf32, #tpu.memory_space<vmem>>, vector<1x128xf32>
    %4 = vector.broadcast %3 : vector<1x128xf32> to vector<8x128xf32>
    %5 = arith.mulf %2, %4 : vector<8x128xf32>
    %c0_5 = arith.constant 0 : index
    %c0_6 = arith.constant 0 : index
    %6 = vector.load %arg4[%c0_5, %c0_6] : memref<1x128xf32, #tpu.memory_space<vmem>>, vector<1x128xf32>
    %7 = vector.broadcast %6 : vector<1x128xf32> to vector<8x128xf32>
    %8 = arith.addf %5, %7 : vector<8x128xf32>
    %cst_7 = arith.constant 0.000000e+00 : f32
    %9 = vector.broadcast %cst_7 : f32 to vector<8x128xf32>
    %10 = arith.maximumf %8, %9 : vector<8x128xf32>
    %11 = arith.truncf %10 : vector<8x128xf32> to vector<8x128xbf16>
    %c0_8 = arith.constant 0 : index
    %c0_9 = arith.constant 0 : index
    %12 = vector.load %arg5[%c0_8, %c0_9] : memref<8x128xbf16, #tpu.memory_space<vmem>>, vector<8x128xbf16>
    tpu.vector_store %arg5[%c0_8, %c0_9], %11 {strides = array<i32>} : memref<8x128xbf16, #tpu.memory_space<vmem>>, vector<8x128xbf16>,
    return
  }
  func.func @transform_0(%arg0: i32) -> (i32, i32) {
    %c0_i32 = arith.constant 0 : i32
    %c0_i32_0 = arith.constant 0 : i32
    return %arg0, %c0_i32 : i32, i32
  }
  func.func @transform_1(%arg0: i32) -> (i32, i32) {
    %c0_i32 = arith.constant 0 : i32
    %c0_i32_0 = arith.constant 0 : i32
    %c0_i32_1 = arith.constant 0 : i32
    return %c0_i32, %c0_i32_0 : i32, i32
  }
  func.func @transform_2(%arg0: i32) -> (i32, i32) {
    %c0_i32 = arith.constant 0 : i32
    %c0_i32_0 = arith.constant 0 : i32
    %c0_i32_1 = arith.constant 0 : i32
    return %c0_i32, %c0_i32_0 : i32, i32
  }
  func.func @transform_3(%arg0: i32) -> (i32, i32) {
    %c0_i32 = arith.constant 0 : i32
    %c0_i32_0 = arith.constant 0 : i32
    %c0_i32_1 = arith.constant 0 : i32
    return %c0_i32, %c0_i32_0 : i32, i32
  }
  func.func @transform_4(%arg0: i32) -> (i32, i32) {
    %c0_i32 = arith.constant 0 : i32
    %c0_i32_0 = arith.constant 0 : i32
    return %arg0, %c0_i32 : i32, i32
  }
}

module attributes {stable_mosaic.version = 11 : i64} {
  func.func @_mm_kernel(%arg0: i32, %arg1: memref<8x128xbf16, #tpu.memory_space<vmem>>, %arg2: memref<128x4xbf16, #tpu.memory_space<vmem>>, %arg3: memref<1x4xf32, #tpu.memory_space<vmem>>, %arg4: memref<1x4xf32, #tpu.memory_space<vmem>>, %arg5: memref<8x4xf32, #tpu.memory_space<vmem>>) attributes {dimension_semantics = [#tpu.dimension_semantics<parallel>], iteration_bounds = array<i64: 1>, scalar_prefetch = 0 : i64, scratch_operands = 0 : i64, tpu.core_type = #tpu.core_type<tc>, window_params = [{transform_indices = @transform_0, window_bounds = array<i64: 8, 128>}, {pipeline_mode = #tpu.pipeline_mode<synchronous>, transform_indices = @transform_1, window_bounds = array<i64: 128, 4>}, {pipeline_mode = #tpu.pipeline_mode<synchronous>, transform_indices = @transform_2, window_bounds = array<i64: 1, 4>}, {pipeline_mode = #tpu.pipeline_mode<synchronous>, transform_indices = @transform_3, window_bounds = array<i64: 1, 4>}, {transform_indices = @transform_4, window_bounds = array<i64: 8, 4>}]} {
    %c0 = arith.constant 0 : index
    %c0_0 = arith.constant 0 : index
    %0 = vector.load %arg1[%c0, %c0_0] : memref<8x128xbf16, #tpu.memory_space<vmem>>, vector<8x128xbf16>
    %c0_1 = arith.constant 0 : index
    %c0_2 = arith.constant 0 : index
    %1 = vector.load %arg2[%c0_1, %c0_2] : memref<128x4xbf16, #tpu.memory_space<vmem>>, vector<128x4xbf16>
    %cst = arith.constant dense<0.000000e+00> : vector<8x4xf32>
    %2 = tpu.matmul %0, %1, %cst {dimension_numbers = #tpu.dot_dimension_numbers<[1], [0], [0], [1], [0, 0, 1, 1], [], []>} : vector<8x128xbf16>, vector<128x4xbf16>, vector<8x4xf32> -> vector<8x4xf32>
    %c0_3 = arith.constant 0 : index
    %c0_4 = arith.constant 0 : index
    %3 = vector.load %arg3[%c0_3, %c0_4] : memref<1x4xf32, #tpu.memory_space<vmem>>, vector<1x4xf32>
    %4 = vector.broadcast %3 : vector<1x4xf32> to vector<8x4xf32>
    %5 = arith.mulf %2, %4 : vector<8x4xf32>
    %c0_5 = arith.constant 0 : index
    %c0_6 = arith.constant 0 : index
    %6 = vector.load %arg4[%c0_5, %c0_6] : memref<1x4xf32, #tpu.memory_space<vmem>>, vector<1x4xf32>
    %7 = vector.broadcast %6 : vector<1x4xf32> to vector<8x4xf32>
    %8 = arith.addf %5, %7 : vector<8x4xf32>
    %cst_7 = arith.constant 0.000000e+00 : f32
    %9 = vector.broadcast %cst_7 : f32 to vector<8x4xf32>
    %10 = arith.maximumf %8, %9 : vector<8x4xf32>
    %c0_8 = arith.constant 0 : index
    %c0_9 = arith.constant 0 : index
    %11 = vector.load %arg5[%c0_8, %c0_9] : memref<8x4xf32, #tpu.memory_space<vmem>>, vector<8x4xf32>
    tpu.vector_store %arg5[%c0_8, %c0_9], %10 {strides = array<i32>} : memref<8x4xf32, #tpu.memory_space<vmem>>, vector<8x4xf32>,
    return
  }
  func.func @transform_0(%arg0: i32) -> (i32, i32) {
    %c0_i32 = arith.constant 0 : i32
    %c0_i32_0 = arith.constant 0 : i32
    return %arg0, %c0_i32 : i32, i32
  }
  func.func @transform_1(%arg0: i32) -> (i32, i32) {
    %c0_i32 = arith.constant 0 : i32
    %c0_i32_0 = arith.constant 0 : i32
    %c0_i32_1 = arith.constant 0 : i32
    return %c0_i32, %c0_i32_0 : i32, i32
  }
  func.func @transform_2(%arg0: i32) -> (i32, i32) {
    %c0_i32 = arith.constant 0 : i32
    %c0_i32_0 = arith.constant 0 : i32
    %c0_i32_1 = arith.constant 0 : i32
    return %c0_i32, %c0_i32_0 : i32, i32
  }
  func.func @transform_3(%arg0: i32) -> (i32, i32) {
    %c0_i32 = arith.constant 0 : i32
    %c0_i32_0 = arith.constant 0 : i32
    %c0_i32_1 = arith.constant 0 : i32
    return %c0_i32, %c0_i32_0 : i32, i32
  }
  func.func @transform_4(%arg0: i32) -> (i32, i32) {
    %c0_i32 = arith.constant 0 : i32
    %c0_i32_0 = arith.constant 0 : i32
    return %arg0, %c0_i32 : i32, i32
  }
}

</mosaic_0001>

<bundles_post_ra>
// kernel: lednet_forward.64
= control target key start
LH: loop header
LB: loop body
LE: loop exit
PB: predicated region body
PF: predicated region fallthrough
CT: control target
= control target key end

     0   :  { %s627_s15 = smov 0   ;;  %s697_s0 = inlined_call_operand.vmem [shape: bf16[128,96], index: 0, kind: input, shape index: {}]   ;;  %s698_s1 = inlined_call_operand.vmem [shape: bf16[96,32], index: 1, kind: input, shape index: {}]   ;;  %s699_s2 = inlined_call_operand.vmem [shape: f32[1,32], index: 2, kind: input, shape index: {}]   ;;  %s700_s3 = inlined_call_operand.vmem [shape: f32[1,32], index: 3, kind: input, shape index: {}]   ;;  %s701_s4 = inlined_call_operand.vmem [shape: bf16[128,32], index: 4, kind: output, shape index: {}]  }
   0x1 LB: > { %s491_s16 = sadd.s32 4294967295, %s600_s15   ;;  %p495_p0 = scmp.ge.s32.totalorder %s600_s15, 1  ;;  %s600_s15 = sphi %s627_s15, %s14_s15  }
   0x2   : > { %p163_p1 = scmp.lt.s32.totalorder %s600_s15, 3 }
   0x4   : > { %p164_p2 = pnand %p495_p0, %p163_p1 }
   0x5   : > { %s496_s19 = sshll.u32 (!%p164_p2), %s491_s16, 3 }
   0x6   : > { %167 = sbr.rel (%p164_p2) target bundleno = 245 (0xf5), region = 36  ;;  %p190_p3 = scmp.lt.s32.totalorder (!%p164_p2), %s496_s19, 15 }
   0xb   : > { %v584_v0 = vld [vmem:[%s698_s1 + $0x28] sm:$0xff]   ;;  %v585_v1 = vld [vmem:[%s698_s1 + $0x20] sm:$0xff]   ;;  %s703_s19 = smov (!%p190_p3, %s496_s19), 15  ;;  %v586_v2 = vld [vmem:[%s698_s1 + $0x18] sm:$0xff]   ;;  %vm278_vm0 = vcmask 785408   ;;  %vm426_vm1 = vcmask 257024  }
   0xc   : > { %544 = vmatprep.subr.bf16.mxu0 %v584_v0  ;;  %564 = vmatprep.subr.bf16.mxu1 %v584_v0  ;;  %s497_s24 = sshll.u32 %s703_s19, 2  ;;  %v587_v3 = vld [vmem:[%s698_s1 + $0x10] sm:$0xff]   ;;  %v588_v6 = vld [vmem:[%s698_s1 + $0x8] sm:$0xff]   ;;  %v589_v7 = vld [vmem:[%s698_s1] sm:$0xff]  }
   0xd   : > { %545 = vmatpush3.bf16.msra.mxu0 %v584_v0  ;;  %570 = vmatpush3.bf16.msra.mxu1 %v584_v0  ;;  %s193_s29 = scalar_lea.vmem %s697_s0, %s497_s24  ;;  %v514_v10 = vld [vmem:[%s699_s2] ss:$0 sm:$0xff]  ;;  %s676_s14 = scalar_lea.vmem %s701_s4, %s497_s24 }
   0xe   : > { %546 = vmatprep.subr.bf16.mxu0 %v585_v1  ;;  %565 = vmatprep.subr.bf16.mxu1 %v585_v1  ;;  %v590_v4 = vld [vmem:[%s193_s29] sm:$0xff]   ;;  %v591_v5 = vld [vmem:[%s193_s29 + $0x10] sm:$0xff]   ;;  %v592_v8 = vld [vmem:[%s193_s29 + $0x8] sm:$0xff]  }
   0xf   : > { %556 = vmatprep.mubr.msk.bf16.mxu0 %vm278_vm0, %v590_v4  ;;  %560 = vmatprep.mubr.msk.bf16.mxu1 %vm278_vm0, %v591_v5  ;;  %v593_v9 = vld [vmem:[%s193_s29 + $0x18] sm:$0xff]   ;;  %v515_v12 = vld [vmem:[%s700_s3] ss:$0 sm:$0xff] }
  0x11   : > { %547 = vmatpush3.bf16.msra.mxu0 %v585_v1  ;;  %571 = vmatpush3.bf16.msra.mxu1 %v585_v1 }
  0x12   : > { %548 = vmatprep.subr.bf16.mxu0 %v586_v2  ;;  %566 = vmatprep.subr.bf16.mxu1 %v586_v2 }
  0x15   : > { %549 = vmatpush3.bf16.msra.mxu0 %v586_v2  ;;  %572 = vmatpush3.bf16.msra.mxu1 %v586_v2 }
  0x16   : > { %550 = vmatprep.subr.bf16.mxu0 %v587_v3  ;;  %567 = vmatprep.subr.bf16.mxu1 %v587_v3 }
  0x19   : > { %551 = vmatpush3.bf16.msra.mxu0 %v587_v3  ;;  %573 = vmatpush3.bf16.msra.mxu1 %v587_v3 }
  0x1a   : > { %552 = vmatprep.subr.bf16.mxu0 %v588_v6  ;;  %568 = vmatprep.subr.bf16.mxu1 %v588_v6 }
  0x1d   : > { %553 = vmatpush3.bf16.msra.mxu0 %v588_v6  ;;  %574 = vmatpush3.bf16.msra.mxu1 %v588_v6 }
  0x1e   : > { %554 = vmatprep.subr.bf16.mxu0 %v589_v7  ;;  %569 = vmatprep.subr.bf16.mxu1 %v589_v7 }
  0x21   : > { %555 = vmatpush3.bf16.msra.mxu0 %v589_v7  ;;  %575 = vmatpush3.bf16.msra.mxu1 %v589_v7 }
  0x24   : > { %557 = vmatmul.mubr.msk.bf16.vlgmr.msra.gmra.mxu0 %vm278_vm0, %v592_v8  ;;  %561 = vmatmul.mubr.msk.bf16.vlgmr.msra.gmra.mxu1 %vm278_vm0, %v593_v9 }
  0xe4   : > { %v558_v11 = vpop.f32.mrf.mxu0  ;;  %v562_v13 = vpop.f32.mrf.mxu1 }
  0xe5   : > { %v365_v14 = vmul.f32 %v558_v11, %v514_v10  ;;  %v369_v15 = vmul.f32 %v562_v13, %v514_v10 }
  0xe6   : > { %v325_v16 = vpop.f32.mrf.mxu0  ;;  %v341_v17 = vpop.f32.mrf.mxu1 }
  0xe7   : > { %v380_v18 = vadd.f32 %v515_v12, %v365_v14  ;;  %v384_v19 = vadd.f32 %v515_v12, %v369_v15  ;;  %v363_v20 = vmul.f32 %v514_v10, %v325_v16  ;;  %v367_v21 = vmul.f32 %v514_v10, %v341_v17 }
  0xe8   : > { %v559_v22 = vpop.f32.mrf.mxu0  ;;  %v563_v23 = vpop.f32.mrf.mxu1 }
  0xe9   : > { %v388_v24 = vmax.f32 %v380_v18, 0.0  ;;  %v392_v25 = vmax.f32 %v384_v19, 0.0  ;;  %v378_v26 = vadd.f32 %v515_v12, %v363_v20  ;;  %v382_v27 = vadd.f32 %v515_v12, %v367_v21 }
  0xea   : > { %v366_v28 = vmul.f32 %v559_v22, %v514_v10  ;;  %v370_v29 = vmul.f32 %v563_v23, %v514_v10  ;;  %v328_v30 = vpop.f32.mrf.mxu0  ;;  %v344_v31 = vpop.f32.mrf.mxu1 }
  0xeb   : > { %v528_v32 = vpack.c.bf16 %v388_v24, %v388_v24  ;;  %v532_v33 = vpack.c.bf16 %v392_v25, %v392_v25  ;;  %v386_v34 = vmax.f32 %v378_v26, 0.0  ;;  %v390_v35 = vmax.f32 %v382_v27, 0.0 }
  0xec   : > { %v381_v36 = vadd.f32 %v515_v12, %v366_v28  ;;  %v385_v37 = vadd.f32 %v515_v12, %v370_v29  ;;  %v364_v38 = vmul.f32 %v514_v10, %v328_v30  ;;  %v368_v39 = vmul.f32 %v514_v10, %v344_v31 }
  0xed   : > { %429 = vst.msk [vmem:[%s676_s14 + $0x8] sm:$0xf] %vm426_vm1, %v528_v32  ;;  %433 = vst.msk [vmem:[%s676_s14 + $0x18] sm:$0xf] %vm426_vm1, %v532_v33  ;;  %v526_v40 = vpack.c.bf16 %v386_v34, %v386_v34  ;;  %v530_v41 = vpack.c.bf16 %v390_v35, %v390_v35 }
  0xee   : > { %v389_v42 = vmax.f32 %v381_v36, 0.0  ;;  %v393_v43 = vmax.f32 %v385_v37, 0.0  ;;  %v379_v44 = vadd.f32 %v515_v12, %v364_v38  ;;  %v383_v45 = vadd.f32 %v515_v12, %v368_v39 }
  0xef   : > { %427 = vst.msk [vmem:[%s676_s14] sm:$0xf] %vm426_vm1, %v526_v40  ;;  %431 = vst.msk [vmem:[%s676_s14 + $0x10] sm:$0xf] %vm426_vm1, %v530_v41 }
  0xf0   : > { %v529_v46 = vpack.c.bf16 %v389_v42, %v389_v42  ;;  %v533_v47 = vpack.c.bf16 %v393_v43, %v393_v43  ;;  %v387_v48 = vmax.f32 %v379_v44, 0.0  ;;  %v391_v49 = vmax.f32 %v383_v45, 0.0 }
  0xf2   : > { %430 = vst.msk [vmem:[%s676_s14 + $0xc] sm:$0xf] %vm426_vm1, %v529_v46  ;;  %434 = vst.msk [vmem:[%s676_s14 + $0x1c] sm:$0xf] %vm426_vm1, %v533_v47  ;;  %v527_v50 = vpack.c.bf16 %v387_v48, %v387_v48  ;;  %v531_v51 = vpack.c.bf16 %v391_v49, %v391_v49 }
  0xf4   : > { %428 = vst.msk [vmem:[%s676_s14 + $0x4] sm:$0xf] %vm426_vm1, %v527_v50  ;;  %432 = vst.msk [vmem:[%s676_s14 + $0x14] sm:$0xf] %vm426_vm1, %v531_v51 }
  0xf5 PF: > { %s14_s15 = sadd.s32 1, %s600_s15  }
  0xf6   : > { %p11_p4 = scmp.ge.s32.totalorder %s14_s15, 4  }
  0xf8   :  { %13 = sbr.rel (!%p11_p4) target bundleno = 1 (0x1), region = 66 }

// kernel: lednet_forward.63
= control target key start
LH: loop header
LB: loop body
LE: loop exit
PB: predicated region body
PF: predicated region fallthrough
CT: control target
= control target key end

     0   :  { %s921_s27 = smov 0   ;;  %s1004_s0 = inlined_call_operand.vmem [shape: bf16[128,27], index: 0, kind: input, shape index: {}]   ;;  %s1005_s1 = inlined_call_operand.vmem [shape: bf16[27,29], index: 1, kind: input, shape index: {}]   ;;  %s1006_s2 = inlined_call_operand.vmem [shape: bf16[128,3], index: 2, kind: input, shape index: {}]   ;;  %s1007_s3 = inlined_call_operand.vmem [shape: f32[1,29], index: 3, kind: input, shape index: {}]   ;;  %s1008_s4 = inlined_call_operand.vmem [shape: f32[1,29], index: 4, kind: input, shape index: {}]   ;;  %s1009_s5 = inlined_call_operand.vmem [shape: f32[1,3], index: 5, kind: input, shape index: {}]   ;;  %s1010_s6 = inlined_call_operand.vmem [shape: f32[1,3], index: 6, kind: input, shape index: {}]   ;;  %s1011_s7 = inlined_call_operand.vmem [shape: bf16[128,29], index: 7, kind: output, shape index: {0}]   ;;  %s1012_s8 = inlined_call_operand.vmem [shape: bf16[128,3], index: 8, kind: output, shape index: {1}]  }
   0x1 LB: > { %s750_s28 = sadd.s32 4294967295, %s873_s27   ;;  %p754_p0 = scmp.ge.s32.totalorder %s873_s27, 1  ;;  %s873_s27 = sphi %s921_s27, %s19_s27  }
   0x2   : > { %p277_p1 = scmp.lt.s32.totalorder %s873_s27, 3 }
   0x4   : > { %p278_p2 = pnand %p754_p0, %p277_p1 }
   0x5   : > { %s755_s9 = sshll.u32 (!%p278_p2), %s750_s28, 3 }
   0x6   : > { %281 = sbr.rel (%p278_p2) target bundleno = 233 (0xe9), region = 48  ;;  %p322_p3 = scmp.lt.s32.totalorder (!%p278_p2), %s755_s9, 15 }
   0xb   : > { %v861_v0 = vld [vmem:[%s1005_s1 + $0x8] sm:$0x3f]   ;;  %vm402_vm0 = vcmask 1044480   ;;  %vm403_vm1 = vcmask 1045504   ;;  %v875_v1 = vmov 65535   ;;  %v862_v5 = vld [vmem:[%s1005_s1] sm:$0xff]  }
   0xc   : > { %v404_v2 = vsel %vm402_vm0, 4294967295, %v875_v1  ;;  %s1014_s9 = smov (!%p322_p3, %s755_s9), 15  ;;  %v783_v6 = vld [vmem:[%s1009_s5] ss:$0 sm:$0xff]  ;;  %vm389_vm2 = vcmask 220160   ;;  %vm639_vm3 = vcmask 19456  }
   0xd   : > { %v405_v3 = vsel %vm403_vm1, %v404_v2, 0  ;;  %s935_s12 = sshll.u32 %s1014_s9, 2  ;;  %v784_v11 = vld [vmem:[%s1010_s6] ss:$0 sm:$0xff]  ;;  %vm544_vm4 = vcmask 232448  }
   0xe   : > { %v407_v4 = vand.u32 %v861_v0, %v405_v3  ;;  %s941_s15 = scalar_lea.vmem %s1004_s0, %s935_s12  ;;  %s331_s18 = scalar_lea.vmem %s1006_s2, %s935_s12  ;;  %v773_v56 = vld [vmem:[%s1007_s3] ss:$0 sm:$0xff] }
   0xf   : > { %v863_v7 = vld [vmem:[%s941_s15] sm:$0xff]   ;;  %v827_v9 = vld [vmem:[%s331_s18 + $0x8] sm:$0xff]   ;;  %v828_v10 = vld [vmem:[%s331_s18 + $0x10] sm:$0xff]   ;;  %s343_s25 = scalar_lea.vmem %s1012_s8, %s935_s12  ;;  %s983_s11 = scalar_lea.vmem %s1011_s7, %s935_s12 }
  0x10   : > { %836 = vmatprep.subr.bf16.mxu0 %v407_v4  ;;  %848 = vmatprep.subr.bf16.mxu1 %v407_v4  ;;  %v812_v8 = vld [vmem:[%s331_s18] sm:$0xff]   ;;  %v817_v14 = vunpack.c.l.bf16 %v827_v9  ;;  %v818_v15 = vunpack.c.h.bf16 %v827_v9  ;;  %v829_v16 = vld [vmem:[%s331_s18 + $0x18] sm:$0xff]   ;;  %v821_v17 = vunpack.c.l.bf16 %v828_v10  ;;  %v822_v18 = vunpack.c.h.bf16 %v828_v10  ;;  %v864_v21 = vld [vmem:[%s941_s15 + $0x10] sm:$0xff]  }
  0x11   : > { %837 = vmatpush3.bf16.msra.mxu0 %v407_v4  ;;  %850 = vmatpush3.bf16.msra.mxu1 %v407_v4  ;;  %v813_v12 = vunpack.c.l.bf16 %v812_v8  ;;  %v814_v13 = vunpack.c.h.bf16 %v812_v8  ;;  %v825_v19 = vunpack.c.l.bf16 %v829_v16  ;;  %v826_v20 = vunpack.c.h.bf16 %v829_v16  ;;  %v865_v26 = vld [vmem:[%s941_s15 + $0x8] sm:$0xff]   ;;  %v866_v31 = vld [vmem:[%s941_s15 + $0x18] sm:$0xff]   ;;  %v774_v58 = vld [vmem:[%s1008_s4] ss:$0 sm:$0xff] }
  0x12   : > { %838 = vmatprep.subr.bf16.mxu0 %v862_v5  ;;  %849 = vmatprep.subr.bf16.mxu1 %v862_v5  ;;  %v578_v24 = vmul.f32 %v817_v14, %v783_v6  ;;  %v579_v25 = vmul.f32 %v818_v15, %v783_v6  ;;  %v580_v27 = vmul.f32 %v821_v17, %v783_v6 }
  0x13   : > { %840 = vmatprep.mubr.msk.bf16.mxu0 %vm389_vm2, %v863_v7  ;;  %v576_v22 = vmul.f32 %v813_v12, %v783_v6  ;;  %v577_v23 = vmul.f32 %v814_v13, %v783_v6  ;;  %v581_v28 = vmul.f32 %v822_v18, %v783_v6  ;;  %v582_v29 = vmul.f32 %v825_v19, %v783_v6 }
  0x14   : > { %v583_v30 = vmul.f32 %v826_v20, %v783_v6  ;;  %844 = vmatprep.mubr.msk.bf16.mxu1 %vm389_vm2, %v864_v21  ;;  %v593_v34 = vadd.f32 %v784_v11, %v578_v24  ;;  %v594_v35 = vadd.f32 %v784_v11, %v579_v25  ;;  %v595_v36 = vadd.f32 %v784_v11, %v580_v27 }
  0x15   : > { %839 = vmatpush3.bf16.msra.mxu0 %v862_v5  ;;  %851 = vmatpush3.bf16.msra.mxu1 %v862_v5  ;;  %v591_v32 = vadd.f32 %v784_v11, %v576_v22  ;;  %v592_v33 = vadd.f32 %v784_v11, %v577_v23  ;;  %v596_v37 = vadd.f32 %v784_v11, %v581_v28 }
  0x16   : > { %v597_v38 = vadd.f32 %v784_v11, %v582_v29  ;;  %v598_v39 = vadd.f32 %v784_v11, %v583_v30  ;;  %v601_v42 = vmax.f32 %v593_v34, 0.0  ;;  %v602_v43 = vmax.f32 %v594_v35, 0.0 }
  0x17   : > { %v599_v40 = vmax.f32 %v591_v32, 0.0  ;;  %v600_v41 = vmax.f32 %v592_v33, 0.0  ;;  %v603_v44 = vmax.f32 %v595_v36, 0.0  ;;  %v604_v45 = vmax.f32 %v596_v37, 0.0 }
  0x18   : > { %841 = vmatmul.mubr.msk.bf16.vlgmr.msra.gmra.mxu0 %vm389_vm2, %v865_v26  ;;  %845 = vmatmul.mubr.msk.bf16.vlgmr.msra.gmra.mxu1 %vm389_vm2, %v866_v31  ;;  %v605_v46 = vmax.f32 %v597_v38, 0.0  ;;  %v606_v47 = vmax.f32 %v598_v39, 0.0  ;;  %v805_v50 = vpack.c.bf16 %v601_v42, %v601_v42  ;;  %v806_v51 = vpack.c.bf16 %v602_v43, %v602_v43 }
  0x19   : > { %v803_v48 = vpack.c.bf16 %v599_v40, %v599_v40  ;;  %v804_v49 = vpack.c.bf16 %v600_v41, %v600_v41  ;;  %v807_v52 = vpack.c.bf16 %v603_v44, %v603_v44  ;;  %v808_v53 = vpack.c.bf16 %v604_v45, %v604_v45 }
  0x1a   : > { %v809_v54 = vpack.c.bf16 %v605_v46, %v605_v46  ;;  %v810_v55 = vpack.c.bf16 %v606_v47, %v606_v47  ;;  %642 = vst.msk [vmem:[%s343_s25 + $0x8] sm:$0xf] %vm639_vm3, %v805_v50  ;;  %643 = vst.msk [vmem:[%s343_s25 + $0xc] sm:$0xf] %vm639_vm3, %v806_v51 }
  0x1b   : > { %640 = vst.msk [vmem:[%s343_s25] sm:$0xf] %vm639_vm3, %v803_v48  ;;  %641 = vst.msk [vmem:[%s343_s25 + $0x4] sm:$0xf] %vm639_vm3, %v804_v49 }
  0x1c   : > { %644 = vst.msk [vmem:[%s343_s25 + $0x10] sm:$0xf] %vm639_vm3, %v807_v52  ;;  %645 = vst.msk [vmem:[%s343_s25 + $0x14] sm:$0xf] %vm639_vm3, %v808_v53 }
  0x1d   : > { %646 = vst.msk [vmem:[%s343_s25 + $0x18] sm:$0xf] %vm639_vm3, %v809_v54  ;;  %647 = vst.msk [vmem:[%s343_s25 + $0x1c] sm:$0xf] %vm639_vm3, %v810_v55 }
  0xd8   : > { %v842_v57 = vpop.f32.mrf.mxu0  ;;  %v846_v60 = vpop.f32.mrf.mxu1 }
  0xd9   : > { %v483_v59 = vmul.f32 %v842_v57, %v773_v56  ;;  %v487_v61 = vmul.f32 %v846_v60, %v773_v56 }
  0xda   : > { %v443_v62 = vpop.f32.mrf.mxu0  ;;  %v459_v1 = vpop.f32.mrf.mxu1 }
  0xdb   : > { %v498_v63 = vadd.f32 %v774_v58, %v483_v59  ;;  %v481_v0 = vmul.f32 %v773_v56, %v443_v62  ;;  %v502_v2 = vadd.f32 %v774_v58, %v487_v61  ;;  %v485_v3 = vmul.f32 %v773_v56, %v459_v1 }
  0xdc   : > { %v843_v4 = vpop.f32.mrf.mxu0  ;;  %v847_v8 = vpop.f32.mrf.mxu1 }
  0xdd   : > { %v506_v5 = vmax.f32 %v498_v63, 0.0  ;;  %v496_v6 = vadd.f32 %v774_v58, %v481_v0  ;;  %v484_v7 = vmul.f32 %v843_v4, %v773_v56  ;;  %v510_v9 = vmax.f32 %v502_v2, 0.0 }
  0xde   : > { %v500_v10 = vadd.f32 %v774_v58, %v485_v3  ;;  %v488_v11 = vmul.f32 %v847_v8, %v773_v56  ;;  %v446_v12 = vpop.f32.mrf.mxu0  ;;  %v462_v17 = vpop.f32.mrf.mxu1 }
  0xdf   : > { %v797_v13 = vpack.c.bf16 %v506_v5, %v506_v5  ;;  %v504_v14 = vmax.f32 %v496_v6, 0.0  ;;  %v499_v15 = vadd.f32 %v774_v58, %v484_v7  ;;  %v482_v16 = vmul.f32 %v773_v56, %v446_v12 }
  0xe0   : > { %v801_v18 = vpack.c.bf16 %v510_v9, %v510_v9  ;;  %v508_v19 = vmax.f32 %v500_v10, 0.0  ;;  %v503_v20 = vadd.f32 %v774_v58, %v488_v11  ;;  %v486_v21 = vmul.f32 %v773_v56, %v462_v17 }
  0xe1   : > { %547 = vst.msk [vmem:[%s983_s11 + $0x8] sm:$0xf] %vm544_vm4, %v797_v13  ;;  %v795_v22 = vpack.c.bf16 %v504_v14, %v504_v14  ;;  %v507_v23 = vmax.f32 %v499_v15, 0.0  ;;  %v497_v24 = vadd.f32 %v774_v58, %v482_v16 }
  0xe2   : > { %551 = vst.msk [vmem:[%s983_s11 + $0x18] sm:$0xf] %vm544_vm4, %v801_v18  ;;  %v799_v25 = vpack.c.bf16 %v508_v19, %v508_v19  ;;  %v511_v26 = vmax.f32 %v503_v20, 0.0  ;;  %v501_v27 = vadd.f32 %v774_v58, %v486_v21 }
  0xe3   : > { %545 = vst.msk [vmem:[%s983_s11] sm:$0xf] %vm544_vm4, %v795_v22  ;;  %v798_v28 = vpack.c.bf16 %v507_v23, %v507_v23  ;;  %v505_v29 = vmax.f32 %v497_v24, 0.0 }
  0xe4   : > { %549 = vst.msk [vmem:[%s983_s11 + $0x10] sm:$0xf] %vm544_vm4, %v799_v25  ;;  %v802_v30 = vpack.c.bf16 %v511_v26, %v511_v26  ;;  %v509_v31 = vmax.f32 %v501_v27, 0.0 }
  0xe5   : > { %548 = vst.msk [vmem:[%s983_s11 + $0xc] sm:$0xf] %vm544_vm4, %v798_v28  ;;  %v796_v32 = vpack.c.bf16 %v505_v29, %v505_v29 }
  0xe6   : > { %552 = vst.msk [vmem:[%s983_s11 + $0x1c] sm:$0xf] %vm544_vm4, %v802_v30  ;;  %v800_v33 = vpack.c.bf16 %v509_v31, %v509_v31 }
  0xe7   : > { %546 = vst.msk [vmem:[%s983_s11 + $0x4] sm:$0xf] %vm544_vm4, %v796_v32 }
  0xe8   : > { %550 = vst.msk [vmem:[%s983_s11 + $0x14] sm:$0xf] %vm544_vm4, %v800_v33 }
  0xe9 PF: > { %s19_s27 = sadd.s32 1, %s873_s27  }
  0xea   : > { %p16_p4 = scmp.ge.s32.totalorder %s19_s27, 4  }
  0xec   :  { %18 = sbr.rel (!%p16_p4) target bundleno = 1 (0x1), region = 93 }

// kernel: lednet_forward.67
= control target key start
LH: loop header
LB: loop body
LE: loop exit
PB: predicated region body
PF: predicated region fallthrough
CT: control target
= control target key end

     0   :  { %s738_s18 = smov 0   ;;  %s809_s0 = inlined_call_operand.vmem [shape: bf16[128,96], index: 0, kind: input, shape index: {}]   ;;  %s810_s1 = inlined_call_operand.vmem [shape: bf16[96,32], index: 1, kind: input, shape index: {}]   ;;  %s811_s2 = inlined_call_operand.vmem [shape: f32[1,32], index: 2, kind: input, shape index: {}]   ;;  %s812_s3 = inlined_call_operand.vmem [shape: f32[1,32], index: 3, kind: input, shape index: {}]   ;;  %s813_s4 = inlined_call_operand.vmem [shape: bf16[128,32], index: 4, kind: input, shape index: {}]   ;;  %s814_s5 = inlined_call_operand.vmem [shape: bf16[128,32], index: 5, kind: output, shape index: {}]  }
   0x1 LB: > { %s576_s19 = sadd.s32 4294967295, %s706_s18   ;;  %p580_p0 = scmp.ge.s32.totalorder %s706_s18, 1  ;;  %s706_s18 = sphi %s738_s18, %s15_s18  }
   0x2   : > { %p199_p1 = scmp.lt.s32.totalorder %s706_s18, 3 }
   0x4   : > { %p200_p2 = pnand %p580_p0, %p199_p1 }
   0x5   : > { %s581_s22 = sshll.u32 (!%p200_p2), %s576_s19, 3 }
   0x6   : > { %203 = sbr.rel (%p200_p2) target bundleno = 247 (0xf7), region = 40  ;;  %p233_p3 = scmp.lt.s32.totalorder (!%p200_p2), %s581_s22, 15 }
   0xb   : > { %v690_v0 = vld [vmem:[%s810_s1 + $0x28] sm:$0xff]   ;;  %v691_v1 = vld [vmem:[%s810_s1 + $0x20] sm:$0xff]   ;;  %s816_s22 = smov (!%p233_p3, %s581_s22), 15  ;;  %v692_v2 = vld [vmem:[%s810_s1 + $0x18] sm:$0xff]   ;;  %vm327_vm0 = vcmask 785408   ;;  %vm499_vm1 = vcmask 257024  }
   0xc   : > { %650 = vmatprep.subr.bf16.mxu0 %v690_v0  ;;  %670 = vmatprep.subr.bf16.mxu1 %v690_v0  ;;  %s755_s27 = sshll.u32 %s816_s22, 2  ;;  %v693_v3 = vld [vmem:[%s810_s1 + $0x10] sm:$0xff]   ;;  %v694_v6 = vld [vmem:[%s810_s1 + $0x8] sm:$0xff]   ;;  %v695_v7 = vld [vmem:[%s810_s1] sm:$0xff]  }
   0xd   : > { %651 = vmatpush3.bf16.msra.mxu0 %v690_v0  ;;  %676 = vmatpush3.bf16.msra.mxu1 %v690_v0  ;;  %s236_s7 = scalar_lea.vmem %s809_s0, %s755_s27  ;;  %s242_s14 = scalar_lea.vmem %s813_s4, %s755_s27  ;;  %v601_v10 = vld [vmem:[%s811_s2] ss:$0 sm:$0xff] }
   0xe   : > { %652 = vmatprep.subr.bf16.mxu0 %v691_v1  ;;  %671 = vmatprep.subr.bf16.mxu1 %v691_v1  ;;  %v696_v4 = vld [vmem:[%s236_s7] sm:$0xff]   ;;  %v697_v5 = vld [vmem:[%s236_s7 + $0x10] sm:$0xff]   ;;  %v698_v8 = vld [vmem:[%s236_s7 + $0x8] sm:$0xff]   ;;  %s788_s22 = scalar_lea.vmem %s814_s5, %s755_s27 }
   0xf   : > { %662 = vmatprep.mubr.msk.bf16.mxu0 %vm327_vm0, %v696_v4  ;;  %666 = vmatprep.mubr.msk.bf16.mxu1 %vm327_vm0, %v697_v5  ;;  %v699_v9 = vld [vmem:[%s236_s7 + $0x18] sm:$0xff]   ;;  %v637_v11 = vld [vmem:[%s242_s14 + $0x8] sm:$0xff]   ;;  %v622_v13 = vld [vmem:[%s242_s14] sm:$0xff]  }
  0x10   : > { %v639_v12 = vld [vmem:[%s242_s14 + $0x18] sm:$0xff]   ;;  %v638_v14 = vld [vmem:[%s242_s14 + $0x10] sm:$0xff]   ;;  %v602_v16 = vld [vmem:[%s812_s3] ss:$0 sm:$0xff]  ;;  %v627_v19 = vunpack.c.l.bf16 %v637_v11  ;;  %v623_v23 = vunpack.c.l.bf16 %v622_v13  ;;  %v628_v31 = vunpack.c.h.bf16 %v637_v11  ;;  %v624_v41 = vunpack.c.h.bf16 %v622_v13 }
  0x11   : > { %653 = vmatpush3.bf16.msra.mxu0 %v691_v1  ;;  %677 = vmatpush3.bf16.msra.mxu1 %v691_v1  ;;  %v635_v21 = vunpack.c.l.bf16 %v639_v12  ;;  %v631_v25 = vunpack.c.l.bf16 %v638_v14  ;;  %v636_v33 = vunpack.c.h.bf16 %v639_v12  ;;  %v632_v43 = vunpack.c.h.bf16 %v638_v14 }
  0x12   : > { %654 = vmatprep.subr.bf16.mxu0 %v692_v2  ;;  %672 = vmatprep.subr.bf16.mxu1 %v692_v2 }
  0x15   : > { %655 = vmatpush3.bf16.msra.mxu0 %v692_v2  ;;  %678 = vmatpush3.bf16.msra.mxu1 %v692_v2 }
  0x16   : > { %656 = vmatprep.subr.bf16.mxu0 %v693_v3  ;;  %673 = vmatprep.subr.bf16.mxu1 %v693_v3 }
  0x19   : > { %657 = vmatpush3.bf16.msra.mxu0 %v693_v3  ;;  %679 = vmatpush3.bf16.msra.mxu1 %v693_v3 }
  0x1a   : > { %658 = vmatprep.subr.bf16.mxu0 %v694_v6  ;;  %674 = vmatprep.subr.bf16.mxu1 %v694_v6 }
  0x1d   : > { %659 = vmatpush3.bf16.msra.mxu0 %v694_v6  ;;  %680 = vmatpush3.bf16.msra.mxu1 %v694_v6 }
  0x1e   : > { %660 = vmatprep.subr.bf16.mxu0 %v695_v7  ;;  %675 = vmatprep.subr.bf16.mxu1 %v695_v7 }
  0x21   : > { %661 = vmatpush3.bf16.msra.mxu0 %v695_v7  ;;  %681 = vmatpush3.bf16.msra.mxu1 %v695_v7 }
  0x24   : > { %663 = vmatmul.mubr.msk.bf16.vlgmr.msra.gmra.mxu0 %vm327_vm0, %v698_v8  ;;  %667 = vmatmul.mubr.msk.bf16.vlgmr.msra.gmra.mxu1 %vm327_vm0, %v699_v9 }
  0xe4   : > { %v664_v15 = vpop.f32.mrf.mxu0  ;;  %v668_v17 = vpop.f32.mrf.mxu1 }
  0xe5   : > { %v414_v18 = vmul.f32 %v664_v15, %v601_v10  ;;  %v418_v20 = vmul.f32 %v668_v17, %v601_v10 }
  0xe6   : > { %v374_v22 = vpop.f32.mrf.mxu0  ;;  %v390_v24 = vpop.f32.mrf.mxu1 }
  0xe7   : > { %v429_v26 = vadd.f32 %v602_v16, %v414_v18  ;;  %v433_v27 = vadd.f32 %v602_v16, %v418_v20  ;;  %v412_v28 = vmul.f32 %v601_v10, %v374_v22  ;;  %v416_v29 = vmul.f32 %v601_v10, %v390_v24 }
  0xe8   : > { %v665_v30 = vpop.f32.mrf.mxu0  ;;  %v669_v32 = vpop.f32.mrf.mxu1 }
  0xe9   : > { %v453_v34 = vadd.f32 %v627_v19, %v429_v26  ;;  %v457_v35 = vadd.f32 %v635_v21, %v433_v27  ;;  %v427_v36 = vadd.f32 %v602_v16, %v412_v28  ;;  %v431_v37 = vadd.f32 %v602_v16, %v416_v29 }
  0xea   : > { %v415_v38 = vmul.f32 %v665_v30, %v601_v10  ;;  %v419_v39 = vmul.f32 %v669_v32, %v601_v10  ;;  %v377_v40 = vpop.f32.mrf.mxu0  ;;  %v393_v42 = vpop.f32.mrf.mxu1 }
  0xeb   : > { %v461_v44 = vmax.f32 %v453_v34, 0.0  ;;  %v465_v45 = vmax.f32 %v457_v35, 0.0  ;;  %v451_v46 = vadd.f32 %v623_v23, %v427_v36  ;;  %v455_v47 = vadd.f32 %v631_v25, %v431_v37 }
  0xec   : > { %v430_v48 = vadd.f32 %v602_v16, %v415_v38  ;;  %v434_v49 = vadd.f32 %v602_v16, %v419_v39  ;;  %v413_v50 = vmul.f32 %v601_v10, %v377_v40  ;;  %v417_v51 = vmul.f32 %v601_v10, %v393_v42 }
  0xed   : > { %v615_v52 = vpack.c.bf16 %v461_v44, %v461_v44  ;;  %v619_v53 = vpack.c.bf16 %v465_v45, %v465_v45  ;;  %v459_v54 = vmax.f32 %v451_v46, 0.0  ;;  %v463_v55 = vmax.f32 %v455_v47, 0.0 }
  0xee   : > { %v454_v56 = vadd.f32 %v628_v31, %v430_v48  ;;  %v458_v57 = vadd.f32 %v636_v33, %v434_v49  ;;  %v428_v58 = vadd.f32 %v602_v16, %v413_v50  ;;  %v432_v59 = vadd.f32 %v602_v16, %v417_v51 }
  0xef   : > { %502 = vst.msk [vmem:[%s788_s22 + $0x8] sm:$0xf] %vm499_vm1, %v615_v52  ;;  %506 = vst.msk [vmem:[%s788_s22 + $0x18] sm:$0xf] %vm499_vm1, %v619_v53  ;;  %v613_v60 = vpack.c.bf16 %v459_v54, %v459_v54  ;;  %v617_v61 = vpack.c.bf16 %v463_v55, %v463_v55 }
  0xf0   : > { %v462_v62 = vmax.f32 %v454_v56, 0.0  ;;  %v466_v63 = vmax.f32 %v458_v57, 0.0  ;;  %v452_v0 = vadd.f32 %v624_v41, %v428_v58  ;;  %v456_v1 = vadd.f32 %v632_v43, %v432_v59 }
  0xf1   : > { %500 = vst.msk [vmem:[%s788_s22] sm:$0xf] %vm499_vm1, %v613_v60  ;;  %504 = vst.msk [vmem:[%s788_s22 + $0x10] sm:$0xf] %vm499_vm1, %v617_v61 }
  0xf2   : > { %v616_v2 = vpack.c.bf16 %v462_v62, %v462_v62  ;;  %v620_v3 = vpack.c.bf16 %v466_v63, %v466_v63  ;;  %v460_v4 = vmax.f32 %v452_v0, 0.0  ;;  %v464_v5 = vmax.f32 %v456_v1, 0.0 }
  0xf4   : > { %503 = vst.msk [vmem:[%s788_s22 + $0xc] sm:$0xf] %vm499_vm1, %v616_v2  ;;  %507 = vst.msk [vmem:[%s788_s22 + $0x1c] sm:$0xf] %vm499_vm1, %v620_v3  ;;  %v614_v6 = vpack.c.bf16 %v460_v4, %v460_v4  ;;  %v618_v7 = vpack.c.bf16 %v464_v5, %v464_v5 }
  0xf6   : > { %501 = vst.msk [vmem:[%s788_s22 + $0x4] sm:$0xf] %vm499_vm1, %v614_v6  ;;  %505 = vst.msk [vmem:[%s788_s22 + $0x14] sm:$0xf] %vm499_vm1, %v618_v7 }
  0xf7 PF: > { %s15_s18 = sadd.s32 1, %s706_s18  }
  0xf8   : > { %p12_p4 = scmp.ge.s32.totalorder %s15_s18, 4  }
  0xfa   :  { %14 = sbr.rel (!%p12_p4) target bundleno = 1 (0x1), region = 73 }

// kernel: lednet_forward.76
= control target key start
LH: loop header
LB: loop body
LE: loop exit
PB: predicated region body
PF: predicated region fallthrough
CT: control target
= control target key end

     0   :  { %s939_s27 = smov 0   ;;  %s1041_s0 = inlined_call_operand.vmem [shape: bf16[32,288], index: 0, kind: input, shape index: {}]   ;;  %s1042_s1 = inlined_call_operand.vmem [shape: bf16[288,32], index: 1, kind: input, shape index: {}]   ;;  %s1043_s2 = inlined_call_operand.vmem [shape: bf16[32,32], index: 2, kind: input, shape index: {}]   ;;  %s1044_s3 = inlined_call_operand.vmem [shape: f32[1,32], index: 3, kind: input, shape index: {}]   ;;  %s1045_s4 = inlined_call_operand.vmem [shape: f32[1,32], index: 4, kind: input, shape index: {}]   ;;  %s1046_s5 = inlined_call_operand.vmem [shape: f32[1,32], index: 5, kind: input, shape index: {}]   ;;  %s1047_s6 = inlined_call_operand.vmem [shape: f32[1,32], index: 6, kind: input, shape index: {}]   ;;  %s1048_s7 = inlined_call_operand.vmem [shape: bf16[32,32], index: 7, kind: output, shape index: {0}]   ;;  %s1049_s8 = inlined_call_operand.vmem [shape: bf16[32,32], index: 8, kind: output, shape index: {1}]  }
   0x1 LB: > { %s765_s28 = sadd.s32 4294967295, %s890_s27   ;;  %p769_p0 = scmp.ge.s32.totalorder %s890_s27, 1  ;;  %s890_s27 = sphi %s939_s27, %s19_s27  }
   0x2   : > { %p278_p1 = scmp.lt.s32.totalorder %s890_s27, 3 }
   0x4   : > { %p279_p2 = pnand %p769_p0, %p278_p1 }
   0x5   : > { %s770_s13 = sshll.u32 (!%p279_p2), %s765_s28, 1 }
   0x6   : > { %282 = sbr.rel (%p279_p2) target bundleno = 256 (0x100), region = 48  ;;  %p324_p3 = scmp.lt.s32.totalorder (!%p279_p2), %s770_s13, 3 }
   0xb   : > { %v862_v0 = vld [vmem:[%s1042_s1 + $0x78] sm:$0xff]   ;;  %v892_v2 = vmov 0.0   ;;  %v864_v3 = vld [vmem:[%s1042_s1 + $0x70] sm:$0xff]   ;;  %vm893_vm0 = vmmov 0   ;;  %v866_v5 = vld [vmem:[%s1042_s1 + $0x68] sm:$0xff]   ;;  %s1051_s13 = smov (!%p324_p3, %s770_s13), 3 }
   0xc   : > { %v863_v1 = vld [vmem:[%s1042_s1 + $0x38] sm:$0xff]   ;;  %843 = vmatprep.subr.bf16.mxu1 %v892_v2  ;;  %818 = vmatprep.subr.bf16.mxu0 %v862_v0  ;;  %v865_v4 = vld [vmem:[%s1042_s1 + $0x30] sm:$0xff]   ;;  %v867_v6 = vld [vmem:[%s1042_s1 + $0x28] sm:$0xff]   ;;  %s851_s26 = smul.u32 12, %s1051_s13  ;;  %vm512_vm1 = vcmask 261120   ;;  %s1008_s29 = sshll.u32 %s1051_s13, 2 }
   0xd   : > { %847 = vmatprep.mubr.msk.bf16.mxu1 %vm893_vm0, %v892_v2  ;;  %819 = vmatpush3.bf16.msra.mxu0 %v863_v1  ;;  %v868_v7 = vld [vmem:[%s1042_s1 + $0x60] sm:$0xff]   ;;  %v870_v9 = vld [vmem:[%s1042_s1 + $0x58] sm:$0xff]   ;;  %v874_v10 = vld [vmem:[%s1042_s1 + $0x88] sm:$0xff]   ;;  %s334_s10 = scalar_lea.vmem %s1043_s2, %s1008_s29  ;;  %s346_s17 = scalar_lea.vmem %s1049_s8, %s1008_s29  ;;  %vm626_vm2 = vcmask 257024  }
   0xe   : > { %820 = vmatprep.subr.bf16.mxu0 %v864_v3  ;;  %v869_v8 = vld [vmem:[%s1042_s1 + $0x20] sm:$0xff]   ;;  %v871_v11 = vld [vmem:[%s1042_s1 + $0x18] sm:$0xff]   ;;  %844 = vmatpush3.bf16.msra.mxu1 %v874_v10  ;;  %s328_s15 = scalar_lea.vmem %s1041_s0, %s851_s26  ;;  %v872_v13 = vld [vmem:[%s1042_s1 + $0x50] sm:$0xff]   ;;  %s340_s24 = scalar_lea.vmem %s1048_s7, %s1008_s29 }
   0xf   : > { %845 = vmatprep.subr.bf16.mxu1 %v892_v2  ;;  %v877_v12 = vld [vmem:[%s1042_s1 + $0x80] sm:$0xff]   ;;  %v880_v14 = vld [vmem:[%s328_s15 + $0x8] ss:$12 sps:$4 sm:$0xff]  }
  0x10   : > { %v873_v15 = vld [vmem:[%s1042_s1 + $0x10] sm:$0xff]   ;;  %v875_v16 = vld [vmem:[%s1042_s1 + $0x48] sm:$0xff]   ;;  %v878_v19 = vld [vmem:[%s1042_s1 + $0x40] sm:$0xff]  }
  0x11   : > { %821 = vmatpush3.bf16.msra.mxu0 %v865_v4  ;;  %v883_v17 = vld [vmem:[%s328_s15 + $0x4] ss:$12 sps:$4 sm:$0xff]   ;;  %v876_v18 = vld [vmem:[%s1042_s1 + $0x8] sm:$0xff]   ;;  %v804_v25 = vld [vmem:[%s1046_s5] ss:$0 sm:$0xff] }
  0x12   : > { %822 = vmatprep.subr.bf16.mxu0 %v866_v5  ;;  %846 = vmatpush3.bf16.msra.mxu1 %v877_v12  ;;  %v879_v20 = vld [vmem:[%s1042_s1] sm:$0xff]  }
  0x13   : > { %548 = vmatprep.mubr.bf16.mxu0 %v883_v17  ;;  %v881_v21 = vld [vmem:[%s328_s15] ss:$12 sps:$4 sm:$0xff]  }
  0x14   : > { %v815_v22 = vld [vmem:[%s334_s10] sm:$0xff]  }
  0x15   : > { %823 = vmatpush3.bf16.msra.mxu0 %v867_v6  ;;  %848 = vmatmul.mubr.msk.bf16.vlgmr.msra.gmra.mxu1 %vm512_vm1, %v880_v14  ;;  %v816_v23 = vunpack.c.l.bf16 %v815_v22  ;;  %v817_v24 = vunpack.c.h.bf16 %v815_v22  ;;  %v805_v28 = vld [vmem:[%s1047_s6] ss:$0 sm:$0xff] }
  0x16   : > { %824 = vmatprep.subr.bf16.mxu0 %v868_v7  ;;  %v800_v42 = vld [vmem:[%s1044_s3] ss:$0 sm:$0xff] }
  0x17   : > { %v640_v26 = vmul.f32 %v816_v23, %v804_v25  ;;  %v641_v27 = vmul.f32 %v817_v24, %v804_v25  ;;  %v801_v45 = vld [vmem:[%s1045_s4] ss:$0 sm:$0xff] }
  0x19   : > { %825 = vmatpush3.bf16.msra.mxu0 %v869_v8  ;;  %v649_v29 = vadd.f32 %v805_v28, %v640_v26  ;;  %v650_v30 = vadd.f32 %v805_v28, %v641_v27 }
  0x1a   : > { %826 = vmatprep.subr.bf16.mxu0 %v870_v9 }
  0x1b   : > { %v651_v31 = vmax.f32 %v649_v29, 0.0  ;;  %v652_v32 = vmax.f32 %v650_v30, 0.0 }
  0x1d   : > { %827 = vmatpush3.bf16.msra.mxu0 %v871_v11  ;;  %v812_v33 = vpack.c.bf16 %v651_v31, %v651_v31  ;;  %v813_v34 = vpack.c.bf16 %v652_v32, %v652_v32 }
  0x1e   : > { %828 = vmatprep.subr.bf16.mxu0 %v872_v13 }
  0x1f   : > { %661 = vst.msk [vmem:[%s346_s17] sm:$0xf] %vm626_vm2, %v812_v33  ;;  %662 = vst.msk [vmem:[%s346_s17 + $0x4] sm:$0xf] %vm626_vm2, %v813_v34 }
  0x21   : > { %829 = vmatpush3.bf16.msra.mxu0 %v873_v15 }
  0x22   : > { %830 = vmatprep.subr.bf16.mxu0 %v875_v16 }
  0x25   : > { %831 = vmatpush3.bf16.msra.mxu0 %v876_v18 }
  0x26   : > { %832 = vmatprep.subr.bf16.mxu0 %v878_v19 }
  0x29   : > { %833 = vmatpush3.bf16.msra.mxu0 %v879_v20 }
  0x2c   : > { %549 = vmatmul.mubr.bf16.vlgmr.msra.gmra.mxu0 %v881_v21 }
  0xd5   : > { %v591_v35 = vpop.f32.mrf.mxu1 }
  0xd7   : > { %v849_v36 = vpop.f32.mrf.mxu1 }
  0xd9   : > { %v594_v37 = vpop.f32.mrf.mxu1 }
  0xdb   : > { %v850_v38 = vpop.f32.mrf.mxu1 }
  0xec   : > { %v834_v39 = vpop.f32.mrf.mxu0 }
  0xee   : > { %v835_v40 = vpop.f32.mrf.mxu0 }
  0xef   : > { %v836_v41 = vadd.f32 %v835_v40, %v834_v39 }
  0xf0   : > { %v837_v43 = vpop.f32.mrf.mxu0 }
  0xf1   : > { %v592_v44 = vadd.f32 %v836_v41, %v591_v35 }
  0xf2   : > { %v838_v46 = vpop.f32.mrf.mxu0 }
  0xf3   : > { %v605_v47 = vmul.f32 %v800_v42, %v592_v44  ;;  %v839_v48 = vadd.f32 %v838_v46, %v837_v43 }
  0xf5   : > { %v614_v49 = vadd.f32 %v801_v45, %v605_v47  ;;  %v595_v50 = vadd.f32 %v839_v48, %v594_v37 }
  0xf7   : > { %v616_v51 = vmax.f32 %v614_v49, 0.0  ;;  %v606_v52 = vmul.f32 %v800_v42, %v595_v50 }
  0xf9   : > { %v810_v53 = vpack.c.bf16 %v616_v51, %v616_v51  ;;  %v615_v54 = vadd.f32 %v801_v45, %v606_v52 }
  0xfb   : > { %627 = vst.msk [vmem:[%s340_s24] sm:$0xf] %vm626_vm2, %v810_v53  ;;  %v617_v55 = vmax.f32 %v615_v54, 0.0 }
  0xfd   : > { %v811_v56 = vpack.c.bf16 %v617_v55, %v617_v55 }
  0xff   : > { %628 = vst.msk [vmem:[%s340_s24 + $0x4] sm:$0xf] %vm626_vm2, %v811_v56 }
 0x100 PF: > { %s19_s27 = sadd.s32 1, %s890_s27  }
 0x101   : > { %p16_p4 = scmp.ge.s32.totalorder %s19_s27, 4  }
 0x103   :  { %18 = sbr.rel (!%p16_p4) target bundleno = 1 (0x1), region = 93 }

// kernel: lednet_forward.77
= control target key start
LH: loop header
LB: loop body
LE: loop exit
PB: predicated region body
PF: predicated region fallthrough
CT: control target
= control target key end

     0   :  { %s536_s15 = smov 0   ;;  %s599_s0 = inlined_call_operand.vmem [shape: bf16[32,192], index: 0, kind: input, shape index: {}]   ;;  %s600_s1 = inlined_call_operand.vmem [shape: bf16[192,64], index: 1, kind: input, shape index: {}]   ;;  %s601_s2 = inlined_call_operand.vmem [shape: f32[1,64], index: 2, kind: input, shape index: {}]   ;;  %s602_s3 = inlined_call_operand.vmem [shape: f32[1,64], index: 3, kind: input, shape index: {}]   ;;  %s603_s4 = inlined_call_operand.vmem [shape: bf16[32,64], index: 4, kind: output, shape index: {}]  }
   0x1 LB: > { %s444_s16 = sadd.s32 4294967295, %s508_s15   ;;  %p448_p0 = scmp.ge.s32.totalorder %s508_s15, 1  ;;  %s508_s15 = sphi %s536_s15, %s14_s15  }
   0x2   : > { %p164_p1 = scmp.lt.s32.totalorder %s508_s15, 3 }
   0x4   : > { %p165_p2 = pnand %p448_p0, %p164_p1 }
   0x5   : > { %s449_s19 = sshll.u32 (!%p165_p2), %s444_s16, 1 }
   0x6   : > { %168 = sbr.rel (%p165_p2) target bundleno = 266 (0x10a), region = 36  ;;  %p192_p3 = scmp.lt.s32.totalorder (!%p165_p2), %s449_s19, 3 }
   0xb   : > { %v487_v0 = vld [vmem:[%s600_s1 + $0x38] sm:$0xff]   ;;  %v510_v1 = vmov 0   ;;  %v488_v2 = vld [vmem:[%s600_s1 + $0x30] sm:$0xff]   ;;  %s605_s19 = smov (!%p192_p3, %s449_s19), 3  ;;  %v489_v3 = vld [vmem:[%s600_s1 + $0x28] sm:$0xff]   ;;  %vm312_vm0 = vcmask 523264  }
   0xc   : > { %316 = vmatprep.subr.bf16.mxu0 %v510_v1  ;;  %s475_s24 = sshll.u32 %s605_s19, 3  ;;  %v490_v4 = vld [vmem:[%s600_s1 + $0x20] sm:$0xff]   ;;  %v491_v6 = vld [vmem:[%s600_s1 + $0x18] sm:$0xff]   ;;  %v492_v7 = vld [vmem:[%s600_s1 + $0x10] sm:$0xff]   ;;  %s453_s26 = sshll.u32 %s605_s19, 2  ;;  %vm385_vm1 = vcmask 519168  }
   0xd   : > { %317 = vmatpush1.bf16.msra.mxu0 %v487_v0  ;;  %s196_s29 = scalar_lea.vmem %s599_s0, %s475_s24  ;;  %v493_v8 = vld [vmem:[%s600_s1 + $0x8] sm:$0xff]   ;;  %v494_v9 = vld [vmem:[%s600_s1] sm:$0xff]   ;;  %v495_v10 = vld [vmem:[%s600_s1 + $0x58] sm:$0xff]  }
   0xe   : > { %318 = vmatprep.subr.bf16.mxu0 %v510_v1  ;;  %v501_v5 = vld [vmem:[%s196_s29 + $0x4] ss:$8 sps:$4 sm:$0xff]   ;;  %v496_v11 = vld [vmem:[%s600_s1 + $0x50] sm:$0xff]   ;;  %v499_v14 = vld [vmem:[%s196_s29] ss:$8 sps:$4 sm:$0xff]   ;;  %s202_s29 = scalar_lea.vmem %s603_s4, %s453_s26 }
   0xf   : > { %468 = vmatprep.mubr.msk.bf16.mxu0 %vm312_vm0, %v501_v5  ;;  %v497_v12 = vld [vmem:[%s600_s1 + $0x48] sm:$0xff]   ;;  %v498_v13 = vld [vmem:[%s600_s1 + $0x40] sm:$0xff]  }
  0x10   : > { %v469_v15 = vld [vmem:[%s601_s2] ss:$0 sm:$0xff] }
  0x11   : > { %319 = vmatpush1.bf16.msra.mxu0 %v488_v2  ;;  %v470_v17 = vld [vmem:[%s602_s3] ss:$0 sm:$0xff] }
  0x12   : > { %320 = vmatprep.subr.bf16.mxu0 %v510_v1 }
  0x15   : > { %321 = vmatpush1.bf16.msra.mxu0 %v489_v3 }
  0x16   : > { %322 = vmatprep.subr.bf16.mxu0 %v510_v1 }
  0x19   : > { %323 = vmatpush1.bf16.msra.mxu0 %v490_v4 }
  0x1a   : > { %324 = vmatprep.subr.bf16.mxu0 %v510_v1 }
  0x1d   : > { %325 = vmatpush1.bf16.msra.mxu0 %v491_v6 }
  0x1e   : > { %326 = vmatprep.subr.bf16.mxu0 %v510_v1 }
  0x21   : > { %327 = vmatpush1.bf16.msra.mxu0 %v492_v7 }
  0x22   : > { %328 = vmatprep.subr.bf16.mxu0 %v510_v1 }
  0x25   : > { %329 = vmatpush1.bf16.msra.mxu0 %v493_v8 }
  0x26   : > { %330 = vmatprep.subr.bf16.mxu0 %v510_v1 }
  0x29   : > { %331 = vmatpush1.bf16.msra.mxu0 %v494_v9 }
  0x2a   : > { %340 = vmatprep.subr.bf16.mxu0 %v510_v1 }
  0x2d   : > { %341 = vmatpush2.bf16.msra.mxu0 %v495_v10 }
  0x2e   : > { %342 = vmatprep.subr.bf16.mxu0 %v510_v1 }
  0x31   : > { %343 = vmatpush2.bf16.msra.mxu0 %v496_v11 }
  0x32   : > { %344 = vmatprep.subr.bf16.mxu0 %v510_v1 }
  0x35   : > { %345 = vmatpush2.bf16.msra.mxu0 %v497_v12 }
  0x36   : > { %346 = vmatprep.subr.bf16.mxu0 %v510_v1 }
  0x39   : > { %347 = vmatpush2.bf16.msra.mxu0 %v498_v13 }
  0x3c   : > { %349 = vmatmul.mubr.bf16.vlgmr.msra.gmra.mxu0 %v499_v14 }
  0xfc   : > { %v350_v16 = vpop.f32.mrf.mxu0 }
  0xfd   : > { %v364_v18 = vmul.f32 %v469_v15, %v350_v16 }
  0xfe   : > { %v352_v19 = vpop.f32.mrf.mxu0 }
  0xff   : > { %v373_v20 = vadd.f32 %v470_v17, %v364_v18 }
 0x100   : > { %v353_v21 = vpop.f32.mrf.mxu0 }
 0x101   : > { %v375_v22 = vmax.f32 %v373_v20, 0.0  ;;  %v365_v23 = vmul.f32 %v469_v15, %v353_v21 }
 0x102   : > { %v355_v24 = vpop.f32.mrf.mxu0 }
 0x103   : > { %v476_v25 = vpack.c.bf16 %v375_v22, %v375_v22  ;;  %v374_v26 = vadd.f32 %v470_v17, %v365_v23 }
 0x105   : > { %386 = vst.msk [vmem:[%s202_s29] sm:$0xf] %vm385_vm1, %v476_v25  ;;  %v376_v27 = vmax.f32 %v374_v26, 0.0 }
 0x107   : > { %v477_v28 = vpack.c.bf16 %v376_v27, %v376_v27 }
 0x109   : > { %387 = vst.msk [vmem:[%s202_s29 + $0x4] sm:$0xf] %vm385_vm1, %v477_v28 }
 0x10a PF: > { %s14_s15 = sadd.s32 1, %s508_s15  }
 0x10b   : > { %p11_p4 = scmp.ge.s32.totalorder %s14_s15, 4  }
 0x10d   :  { %13 = sbr.rel (!%p11_p4) target bundleno = 1 (0x1), region = 66 }

// kernel: lednet_forward.80
= control target key start
LH: loop header
LB: loop body
LE: loop exit
PB: predicated region body
PF: predicated region fallthrough
CT: control target
= control target key end

     0   :  { %s614_s18 = smov 0   ;;  %s680_s0 = inlined_call_operand.vmem [shape: bf16[32,192], index: 0, kind: input, shape index: {}]   ;;  %s681_s1 = inlined_call_operand.vmem [shape: bf16[192,64], index: 1, kind: input, shape index: {}]   ;;  %s682_s2 = inlined_call_operand.vmem [shape: f32[1,64], index: 2, kind: input, shape index: {}]   ;;  %s683_s3 = inlined_call_operand.vmem [shape: f32[1,64], index: 3, kind: input, shape index: {}]   ;;  %s684_s4 = inlined_call_operand.vmem [shape: bf16[32,64], index: 4, kind: input, shape index: {}]   ;;  %s685_s5 = inlined_call_operand.vmem [shape: bf16[32,64], index: 5, kind: output, shape index: {}]  }
   0x1 LB: > { %s511_s19 = sadd.s32 4294967295, %s581_s18   ;;  %p515_p0 = scmp.ge.s32.totalorder %s581_s18, 1  ;;  %s581_s18 = sphi %s614_s18, %s15_s18  }
   0x2   : > { %p200_p1 = scmp.lt.s32.totalorder %s581_s18, 3 }
   0x4   : > { %p201_p2 = pnand %p515_p0, %p200_p1 }
   0x5   : > { %s516_s22 = sshll.u32 (!%p201_p2), %s511_s19, 1 }
   0x6   : > { %204 = sbr.rel (%p201_p2) target bundleno = 268 (0x10c), region = 40  ;;  %p235_p3 = scmp.lt.s32.totalorder (!%p201_p2), %s516_s22, 3 }
   0xb   : > { %v560_v0 = vld [vmem:[%s681_s1 + $0x38] sm:$0xff]   ;;  %v583_v1 = vmov 0   ;;  %v561_v2 = vld [vmem:[%s681_s1 + $0x30] sm:$0xff]   ;;  %s687_s22 = smov (!%p235_p3, %s516_s22), 3  ;;  %v562_v3 = vld [vmem:[%s681_s1 + $0x28] sm:$0xff]   ;;  %vm361_vm0 = vcmask 523264  }
   0xc   : > { %365 = vmatprep.subr.bf16.mxu0 %v583_v1  ;;  %s544_s27 = sshll.u32 %s687_s22, 3  ;;  %v563_v4 = vld [vmem:[%s681_s1 + $0x20] sm:$0xff]   ;;  %v564_v6 = vld [vmem:[%s681_s1 + $0x18] sm:$0xff]   ;;  %v565_v7 = vld [vmem:[%s681_s1 + $0x10] sm:$0xff]   ;;  %s520_s26 = sshll.u32 %s687_s22, 2  ;;  %vm440_vm1 = vcmask 519168  }
   0xd   : > { %366 = vmatpush1.bf16.msra.mxu0 %v560_v0  ;;  %s239_s7 = scalar_lea.vmem %s680_s0, %s544_s27  ;;  %v566_v8 = vld [vmem:[%s681_s1 + $0x8] sm:$0xff]   ;;  %v567_v9 = vld [vmem:[%s681_s1] sm:$0xff]   ;;  %v568_v10 = vld [vmem:[%s681_s1 + $0x58] sm:$0xff]   ;;  %s245_s29 = scalar_lea.vmem %s684_s4, %s520_s26 }
   0xe   : > { %367 = vmatprep.subr.bf16.mxu0 %v583_v1  ;;  %v574_v5 = vld [vmem:[%s239_s7 + $0x4] ss:$8 sps:$4 sm:$0xff]   ;;  %v569_v11 = vld [vmem:[%s681_s1 + $0x50] sm:$0xff]   ;;  %v572_v14 = vld [vmem:[%s239_s7] ss:$8 sps:$4 sm:$0xff]   ;;  %s251_s10 = scalar_lea.vmem %s685_s5, %s520_s26 }
   0xf   : > { %537 = vmatprep.mubr.msk.bf16.mxu0 %vm361_vm0, %v574_v5  ;;  %v570_v12 = vld [vmem:[%s681_s1 + $0x48] sm:$0xff]   ;;  %v571_v13 = vld [vmem:[%s681_s1 + $0x40] sm:$0xff]  }
  0x10   : > { %v538_v15 = vld [vmem:[%s682_s2] ss:$0 sm:$0xff] }
  0x11   : > { %368 = vmatpush1.bf16.msra.mxu0 %v561_v2  ;;  %v548_v16 = vld [vmem:[%s245_s29] sm:$0xff]  }
  0x12   : > { %369 = vmatprep.subr.bf16.mxu0 %v583_v1  ;;  %v539_v18 = vld [vmem:[%s683_s3] ss:$0 sm:$0xff]  ;;  %v549_v20 = vunpack.c.l.bf16 %v548_v16  ;;  %v550_v26 = vunpack.c.h.bf16 %v548_v16 }
  0x15   : > { %370 = vmatpush1.bf16.msra.mxu0 %v562_v3 }
  0x16   : > { %371 = vmatprep.subr.bf16.mxu0 %v583_v1 }
  0x19   : > { %372 = vmatpush1.bf16.msra.mxu0 %v563_v4 }
  0x1a   : > { %373 = vmatprep.subr.bf16.mxu0 %v583_v1 }
  0x1d   : > { %374 = vmatpush1.bf16.msra.mxu0 %v564_v6 }
  0x1e   : > { %375 = vmatprep.subr.bf16.mxu0 %v583_v1 }
  0x21   : > { %376 = vmatpush1.bf16.msra.mxu0 %v565_v7 }
  0x22   : > { %377 = vmatprep.subr.bf16.mxu0 %v583_v1 }
  0x25   : > { %378 = vmatpush1.bf16.msra.mxu0 %v566_v8 }
  0x26   : > { %379 = vmatprep.subr.bf16.mxu0 %v583_v1 }
  0x29   : > { %380 = vmatpush1.bf16.msra.mxu0 %v567_v9 }
  0x2a   : > { %389 = vmatprep.subr.bf16.mxu0 %v583_v1 }
  0x2d   : > { %390 = vmatpush2.bf16.msra.mxu0 %v568_v10 }
  0x2e   : > { %391 = vmatprep.subr.bf16.mxu0 %v583_v1 }
  0x31   : > { %392 = vmatpush2.bf16.msra.mxu0 %v569_v11 }
  0x32   : > { %393 = vmatprep.subr.bf16.mxu0 %v583_v1 }
  0x35   : > { %394 = vmatpush2.bf16.msra.mxu0 %v570_v12 }
  0x36   : > { %395 = vmatprep.subr.bf16.mxu0 %v583_v1 }
  0x39   : > { %396 = vmatpush2.bf16.msra.mxu0 %v571_v13 }
  0x3c   : > { %398 = vmatmul.mubr.bf16.vlgmr.msra.gmra.mxu0 %v572_v14 }
  0xfc   : > { %v399_v17 = vpop.f32.mrf.mxu0 }
  0xfd   : > { %v413_v19 = vmul.f32 %v538_v15, %v399_v17 }
  0xfe   : > { %v401_v21 = vpop.f32.mrf.mxu0 }
  0xff   : > { %v422_v22 = vadd.f32 %v539_v18, %v413_v19 }
 0x100   : > { %v402_v23 = vpop.f32.mrf.mxu0 }
 0x101   : > { %v428_v24 = vadd.f32 %v549_v20, %v422_v22  ;;  %v414_v25 = vmul.f32 %v538_v15, %v402_v23 }
 0x102   : > { %v404_v27 = vpop.f32.mrf.mxu0 }
 0x103   : > { %v430_v28 = vmax.f32 %v428_v24, 0.0  ;;  %v423_v29 = vadd.f32 %v539_v18, %v414_v25 }
 0x105   : > { %v545_v30 = vpack.c.bf16 %v430_v28, %v430_v28  ;;  %v429_v31 = vadd.f32 %v550_v26, %v423_v29 }
 0x107   : > { %441 = vst.msk [vmem:[%s251_s10] sm:$0xf] %vm440_vm1, %v545_v30  ;;  %v431_v32 = vmax.f32 %v429_v31, 0.0 }
 0x109   : > { %v546_v33 = vpack.c.bf16 %v431_v32, %v431_v32 }
 0x10b   : > { %442 = vst.msk [vmem:[%s251_s10 + $0x4] sm:$0xf] %vm440_vm1, %v546_v33 }
 0x10c PF: > { %s15_s18 = sadd.s32 1, %s581_s18  }
 0x10d   : > { %p12_p4 = scmp.ge.s32.totalorder %s15_s18, 4  }
 0x10f   :  { %14 = sbr.rel (!%p12_p4) target bundleno = 1 (0x1), region = 73 }

// kernel: lednet_forward.85
= control target key start
LH: loop header
LB: loop body
LE: loop exit
PB: predicated region body
PF: predicated region fallthrough
CT: control target
= control target key end

     0   :  { %v660_v36 = vmov 0.0   ;;  %vm661_vm0 = vmmov 0   ;;  %vm337_vm1 = vcmask 523264   ;;  %vm479_vm2 = vcmask 519168   ;;  %s847_s1 = inlined_call_operand.vmem [shape: bf16[576,64], index: 1, kind: input, shape index: {}]   ;;  %s848_s0 = inlined_call_operand.vmem [shape: bf16[8,576], index: 0, kind: input, shape index: {}]   ;;  %s849_s2 = inlined_call_operand.vmem [shape: bf16[8,64], index: 2, kind: input, shape index: {}]   ;;  %s850_s5 = inlined_call_operand.vmem [shape: f32[1,64], index: 5, kind: input, shape index: {}]   ;;  %s851_s6 = inlined_call_operand.vmem [shape: f32[1,64], index: 6, kind: input, shape index: {}]   ;;  %s852_s8 = inlined_call_operand.vmem [shape: bf16[8,64], index: 8, kind: output, shape index: {1}]   ;;  %s853_s3 = inlined_call_operand.vmem [shape: f32[1,64], index: 3, kind: input, shape index: {}]   ;;  %s854_s4 = inlined_call_operand.vmem [shape: f32[1,64], index: 4, kind: input, shape index: {}]   ;;  %s855_s7 = inlined_call_operand.vmem [shape: bf16[8,64], index: 7, kind: output, shape index: {0}]  }
   0x1   :  { %v619_v0 = vld [vmem:[%s847_s1 + $0x78] sm:$0xff]   ;;  %v623_v4 = vld [vmem:[%s847_s1 + $0x70] sm:$0xff]   ;;  %v627_v8 = vld [vmem:[%s847_s1 + $0x68] sm:$0xff]  }
   0x2   :  { %v620_v1 = vld [vmem:[%s847_s1 + $0xf8] sm:$0xff]   ;;  %556 = vmatprep.subr.bf16.mxu0 %v619_v0  ;;  %v624_v5 = vld [vmem:[%s847_s1 + $0xf0] sm:$0xff]   ;;  %v628_v9 = vld [vmem:[%s847_s1 + $0xe8] sm:$0xff]  }
   0x3   :  { %v621_v2 = vld [vmem:[%s847_s1 + $0x38] sm:$0xff]   ;;  %578 = vmatprep.subr.bf16.mxu1 %v620_v1  ;;  %v625_v6 = vld [vmem:[%s847_s1 + $0x30] sm:$0xff]   ;;  %v629_v10 = vld [vmem:[%s847_s1 + $0x28] sm:$0xff]  }
   0x4   :  { %v622_v3 = vld [vmem:[%s847_s1 + $0xb8] sm:$0xff]   ;;  %557 = vmatpush3.bf16.msra.mxu0 %v621_v2  ;;  %v626_v7 = vld [vmem:[%s847_s1 + $0xb0] sm:$0xff]   ;;  %v630_v11 = vld [vmem:[%s847_s1 + $0xa8] sm:$0xff]  }
   0x5   :  { %579 = vmatpush3.bf16.msra.mxu1 %v622_v3  ;;  %558 = vmatprep.subr.bf16.mxu0 %v623_v4  ;;  %v631_v12 = vld [vmem:[%s847_s1 + $0x60] sm:$0xff]   ;;  %v635_v16 = vld [vmem:[%s847_s1 + $0x58] sm:$0xff]   ;;  %v639_v20 = vld [vmem:[%s847_s1 + $0x50] sm:$0xff]  }
   0x6   :  { %580 = vmatprep.subr.bf16.mxu1 %v624_v5  ;;  %v632_v13 = vld [vmem:[%s847_s1 + $0xe0] sm:$0xff]   ;;  %v636_v17 = vld [vmem:[%s847_s1 + $0xd8] sm:$0xff]   ;;  %v640_v21 = vld [vmem:[%s847_s1 + $0xd0] sm:$0xff]  }
   0x7   :  { %v633_v14 = vld [vmem:[%s847_s1 + $0x20] sm:$0xff]   ;;  %v637_v18 = vld [vmem:[%s847_s1 + $0x18] sm:$0xff]   ;;  %v641_v22 = vld [vmem:[%s847_s1 + $0x10] sm:$0xff]  }
   0x8   :  { %559 = vmatpush3.bf16.msra.mxu0 %v625_v6  ;;  %v634_v15 = vld [vmem:[%s847_s1 + $0xa0] sm:$0xff]   ;;  %v638_v19 = vld [vmem:[%s847_s1 + $0x98] sm:$0xff]   ;;  %v642_v23 = vld [vmem:[%s847_s1 + $0x90] sm:$0xff]  }
   0x9   :  { %581 = vmatpush3.bf16.msra.mxu1 %v626_v7  ;;  %560 = vmatprep.subr.bf16.mxu0 %v627_v8  ;;  %v643_v24 = vld [vmem:[%s847_s1 + $0x48] sm:$0xff]   ;;  %v647_v28 = vld [vmem:[%s847_s1 + $0x40] sm:$0xff]   ;;  %v656_v39 = vld [vmem:[%s847_s1 + $0x118] sm:$0xff]  }
   0xa   :  { %582 = vmatprep.subr.bf16.mxu1 %v628_v9  ;;  %v644_v25 = vld [vmem:[%s847_s1 + $0xc8] sm:$0xff]   ;;  %v648_v29 = vld [vmem:[%s847_s1 + $0xc0] sm:$0xff]   ;;  %v657_v40 = vld [vmem:[%s847_s1 + $0x110] sm:$0xff]  }
   0xb   :  { %v645_v26 = vld [vmem:[%s847_s1 + $0x8] sm:$0xff]   ;;  %v649_v30 = vld [vmem:[%s847_s1] sm:$0xff]   ;;  %v653_v43 = vld [vmem:[%s848_s0 + $0x10] ss:$0 sps:$4 sm:$0xff]  }
   0xc   :  { %561 = vmatpush3.bf16.msra.mxu0 %v629_v10  ;;  %v646_v27 = vld [vmem:[%s847_s1 + $0x88] sm:$0xff]   ;;  %v650_v31 = vld [vmem:[%s847_s1 + $0x80] sm:$0xff]  }
   0xd   :  { %583 = vmatpush3.bf16.msra.mxu1 %v630_v11  ;;  %562 = vmatprep.subr.bf16.mxu0 %v631_v12  ;;  %v29_v32 = vld [vmem:[%s848_s0] sm:$0xff]  ;;  %v30_v35 = vld [vmem:[%s848_s0 + $0x8] sm:$0xff] }
   0xe   :  { %584 = vmatprep.subr.bf16.mxu1 %v632_v13  ;;  %v510_v33 = vcombine.low %v29_v32, %v29_v32  ;;  %v511_v34 = vcombine.high %v29_v32, %v29_v32  ;;  %v512_v37 = vcombine.low %v30_v35, %v30_v35  ;;  %v513_v38 = vcombine.high %v30_v35, %v30_v35  ;;  %v658_v41 = vld [vmem:[%s847_s1 + $0x108] sm:$0xff]   ;;  %v659_v42 = vld [vmem:[%s847_s1 + $0x100] sm:$0xff]  }
   0xf   :  { %v481_v44 = vld [vmem:[%s849_s2] sm:$0xf] }
  0x10   :  { %563 = vmatpush3.bf16.msra.mxu0 %v633_v14  ;;  %373 = vmatprep.mubr.bf16.mxu0 %v511_v34  ;;  %v482_v45 = vunpack.c.l.bf16 %v481_v44  ;;  %v554_v46 = vld [vmem:[%s850_s5] ss:$0 sm:$0xff] }
  0x11   :  { %585 = vmatpush3.bf16.msra.mxu1 %v634_v15  ;;  %564 = vmatprep.subr.bf16.mxu0 %v635_v16  ;;  %v555_v48 = vld [vmem:[%s851_s6] ss:$0 sm:$0xff] }
  0x12   :  { %586 = vmatprep.subr.bf16.mxu1 %v636_v17  ;;  %413 = vmatprep.mubr.bf16.mxu1 %v513_v38  ;;  %v490_v47 = vmul.f32 %v554_v46, %v482_v45  ;;  %v552_v0 = vld [vmem:[%s853_s3] ss:$0 sm:$0xff] }
  0x13   :  { %v553_v2 = vld [vmem:[%s854_s4] ss:$0 sm:$0xff] }
  0x14   :  { %565 = vmatpush3.bf16.msra.mxu0 %v637_v18  ;;  %v498_v49 = vadd.f32 %v555_v48, %v490_v47 }
  0x15   :  { %587 = vmatpush3.bf16.msra.mxu1 %v638_v19  ;;  %566 = vmatprep.subr.bf16.mxu0 %v639_v20 }
  0x16   :  { %588 = vmatprep.subr.bf16.mxu1 %v640_v21  ;;  %v499_v50 = vmax.f32 %v498_v49, 0.0 }
  0x18   :  { %567 = vmatpush3.bf16.msra.mxu0 %v641_v22  ;;  %v500_v51 = vpack.c.bf16 %v499_v50, %v499_v50 }
  0x19   :  { %589 = vmatpush3.bf16.msra.mxu1 %v642_v23  ;;  %568 = vmatprep.subr.bf16.mxu0 %v643_v24 }
  0x1a   :  { %590 = vmatprep.subr.bf16.mxu1 %v644_v25  ;;  %501 = vst.msk [vmem:[%s852_s8] sm:$0xf] %vm479_vm2, %v500_v51 }
  0x1c   :  { %569 = vmatpush3.bf16.msra.mxu0 %v645_v26 }
  0x1d   :  { %591 = vmatpush3.bf16.msra.mxu1 %v646_v27  ;;  %570 = vmatprep.subr.bf16.mxu0 %v647_v28 }
  0x1e   :  { %592 = vmatprep.subr.bf16.mxu1 %v648_v29 }
  0x20   :  { %571 = vmatpush3.bf16.msra.mxu0 %v649_v30 }
  0x21   :  { %593 = vmatpush3.bf16.msra.mxu1 %v650_v31  ;;  %605 = vmatprep.subr.bf16.mxu0 %v660_v36 }
  0x23   :  { %374 = vmatmul.mubr.bf16.vlgmr.msra.gmra.mxu0 %v510_v33 }
  0x24   :  { %414 = vmatmul.mubr.bf16.vlgmr.msra.gmra.mxu1 %v512_v37  ;;  %606 = vmatpush3.bf16.msra.mxu0 %v656_v39 }
  0x25   :  { %607 = vmatprep.subr.bf16.mxu0 %v660_v36  ;;  %613 = vmatprep.mubr.msk.bf16.mxu0 %vm661_vm0, %v660_v36 }
  0x28   :  { %608 = vmatpush3.bf16.msra.mxu0 %v657_v40 }
  0x29   :  { %609 = vmatprep.subr.bf16.mxu0 %v660_v36 }
  0x2c   :  { %610 = vmatpush3.bf16.msra.mxu0 %v658_v41 }
  0x2d   :  { %611 = vmatprep.subr.bf16.mxu0 %v660_v36 }
  0x30   :  { %612 = vmatpush3.bf16.msra.mxu0 %v659_v42 }
  0x33   :  { %614 = vmatmul.mubr.msk.bf16.vlgmr.msra.gmra.mxu0 %vm337_vm1, %v653_v43 }
  0xe3   :  { %v572_v52 = vpop.f32.mrf.mxu0 }
  0xe4   :  { %v594_v53 = vpop.f32.mrf.mxu1 }
  0xe5   :  { %v573_v54 = vpop.f32.mrf.mxu0 }
  0xe6   :  { %v595_v55 = vpop.f32.mrf.mxu1  ;;  %v574_v60 = vadd.f32 %v573_v54, %v572_v52 }
  0xe7   :  { %v575_v56 = vpop.f32.mrf.mxu0  ;;  %v596_v61 = vadd.f32 %v595_v55, %v594_v53 }
  0xe8   :  { %v597_v57 = vpop.f32.mrf.mxu1 }
  0xe9   :  { %v576_v58 = vpop.f32.mrf.mxu0  ;;  %v416_v62 = vadd.f32 %v596_v61, %v574_v60 }
  0xea   :  { %v598_v59 = vpop.f32.mrf.mxu1 }
  0xf3   :  { %v455_v63 = vpop.f32.mrf.mxu0 }
  0xf4   :  { %v456_v1 = vadd.f32 %v455_v63, %v416_v62 }
  0xf5   :  { %v615_v3 = vpop.f32.mrf.mxu0 }
  0xf6   :  { %v468_v4 = vmul.f32 %v552_v0, %v456_v1 }
  0xf7   :  { %v458_v5 = vpop.f32.mrf.mxu0 }
  0xf8   :  { %v476_v6 = vadd.f32 %v553_v2, %v468_v4 }
  0xf9   :  { %v616_v7 = vpop.f32.mrf.mxu0 }
  0xfa   :  { %v477_v8 = vmax.f32 %v476_v6, 0.0 }
  0xfc   :  { %v478_v9 = vpack.c.bf16 %v477_v8, %v477_v8 }
  0xfe   :  { %480 = vst.msk [vmem:[%s855_s7] sm:$0xf] %vm479_vm2, %v478_v9 }

// kernel: lednet_forward.89
= control target key start
LH: loop header
LB: loop body
LE: loop exit
PB: predicated region body
PF: predicated region fallthrough
CT: control target
= control target key end

     0   :  { %v441_v0 = vmov 0.0   ;;  %vm442_vm0 = vmmov 0   ;;  %s563_s1 = inlined_call_operand.vmem [shape: bf16[384,128], index: 1, kind: input, shape index: {}]   ;;  %s564_s0 = inlined_call_operand.vmem [shape: bf16[8,384], index: 0, kind: input, shape index: {}]   ;;  %s565_s2 = inlined_call_operand.vmem [shape: f32[1,128], index: 2, kind: input, shape index: {}]   ;;  %s566_s4 = inlined_call_operand.vmem [shape: bf16[8,128], index: 4, kind: input, shape index: {}]   ;;  %s567_s3 = inlined_call_operand.vmem [shape: f32[1,128], index: 3, kind: input, shape index: {}]   ;;  %s568_s5 = inlined_call_operand.vmem [shape: bf16[8,128], index: 5, kind: output, shape index: {}]  }
   0x1   :  { %392 = vmatprep.subr.bf16.mxu1 %v441_v0  ;;  %v414_v1 = vld [vmem:[%s563_s1 + $0x78] sm:$0xff]   ;;  %408 = vmatprep.mubr.msk.bf16.mxu1 %vm442_vm0, %v441_v0  ;;  %v417_v4 = vld [vmem:[%s563_s1 + $0x70] sm:$0xff]   ;;  %v420_v7 = vld [vmem:[%s563_s1 + $0x68] sm:$0xff]  }
   0x2   :  { %v415_v2 = vld [vmem:[%s563_s1 + $0xb8] sm:$0xff]   ;;  %361 = vmatprep.subr.bf16.mxu0 %v414_v1  ;;  %v418_v5 = vld [vmem:[%s563_s1 + $0xb0] sm:$0xff]   ;;  %v421_v8 = vld [vmem:[%s563_s1 + $0xa8] sm:$0xff]  }
   0x3   :  { %v416_v3 = vld [vmem:[%s563_s1 + $0x38] sm:$0xff]   ;;  %393 = vmatpush3.bf16.msra.mxu1 %v415_v2  ;;  %v419_v6 = vld [vmem:[%s563_s1 + $0x30] sm:$0xff]   ;;  %v422_v9 = vld [vmem:[%s563_s1 + $0x28] sm:$0xff]  }
   0x4   :  { %362 = vmatpush3.bf16.msra.mxu0 %v416_v3  ;;  %394 = vmatprep.subr.bf16.mxu1 %v441_v0  ;;  %v423_v10 = vld [vmem:[%s563_s1 + $0x60] sm:$0xff]   ;;  %v426_v13 = vld [vmem:[%s563_s1 + $0x58] sm:$0xff]   ;;  %v429_v16 = vld [vmem:[%s563_s1 + $0x50] sm:$0xff]  }
   0x5   :  { %363 = vmatprep.subr.bf16.mxu0 %v417_v4  ;;  %v424_v11 = vld [vmem:[%s563_s1 + $0xa0] sm:$0xff]   ;;  %v427_v14 = vld [vmem:[%s563_s1 + $0x98] sm:$0xff]   ;;  %v430_v17 = vld [vmem:[%s563_s1 + $0x90] sm:$0xff]  }
   0x6   :  { %v425_v12 = vld [vmem:[%s563_s1 + $0x20] sm:$0xff]   ;;  %v428_v15 = vld [vmem:[%s563_s1 + $0x18] sm:$0xff]   ;;  %v431_v18 = vld [vmem:[%s563_s1 + $0x10] sm:$0xff]  }
   0x7   :  { %395 = vmatpush3.bf16.msra.mxu1 %v418_v5  ;;  %v432_v19 = vld [vmem:[%s563_s1 + $0x48] sm:$0xff]   ;;  %v21_v22 = vld [vmem:[%s564_s0] sm:$0xff] }
   0x8   :  { %364 = vmatpush3.bf16.msra.mxu0 %v419_v6  ;;  %396 = vmatprep.subr.bf16.mxu1 %v441_v0  ;;  %v433_v20 = vld [vmem:[%s563_s1 + $0x88] sm:$0xff]   ;;  %v435_v23 = vld [vmem:[%s563_s1 + $0x40] sm:$0xff]   ;;  %v333_v24 = vcombine.high %v21_v22, %v21_v22  ;;  %v332_v28 = vcombine.low %v21_v22, %v21_v22 }
   0x9   :  { %365 = vmatprep.subr.bf16.mxu0 %v420_v7  ;;  %v434_v21 = vld [vmem:[%s563_s1 + $0x8] sm:$0xff]   ;;  %v436_v25 = vld [vmem:[%s563_s1 + $0x80] sm:$0xff]  }
   0xa   :  { %258 = vmatprep.mubr.bf16.mxu0 %v333_v24  ;;  %v437_v26 = vld [vmem:[%s563_s1] sm:$0xff]   ;;  %v440_v27 = vld [vmem:[%s564_s0 + $0x8] ss:$0 sps:$4 sm:$0xff]  }
   0xb   :  { %397 = vmatpush3.bf16.msra.mxu1 %v421_v8  ;;  %v359_v35 = vld [vmem:[%s565_s2] ss:$0 sm:$0xff] }
   0xc   :  { %366 = vmatpush3.bf16.msra.mxu0 %v422_v9  ;;  %398 = vmatprep.subr.bf16.mxu1 %v441_v0  ;;  %v322_v36 = vld [vmem:[%s566_s4] sm:$0xf] }
   0xd   :  { %367 = vmatprep.subr.bf16.mxu0 %v423_v10  ;;  %v360_v40 = vld [vmem:[%s567_s3] ss:$0 sm:$0xff]  ;;  %v323_v43 = vunpack.c.l.bf16 %v322_v36 }
   0xf   :  { %399 = vmatpush3.bf16.msra.mxu1 %v424_v11 }
  0x10   :  { %368 = vmatpush3.bf16.msra.mxu0 %v425_v12  ;;  %400 = vmatprep.subr.bf16.mxu1 %v441_v0 }
  0x11   :  { %369 = vmatprep.subr.bf16.mxu0 %v426_v13 }
  0x13   :  { %401 = vmatpush3.bf16.msra.mxu1 %v427_v14 }
  0x14   :  { %370 = vmatpush3.bf16.msra.mxu0 %v428_v15  ;;  %402 = vmatprep.subr.bf16.mxu1 %v441_v0 }
  0x15   :  { %371 = vmatprep.subr.bf16.mxu0 %v429_v16 }
  0x17   :  { %403 = vmatpush3.bf16.msra.mxu1 %v430_v17 }
  0x18   :  { %372 = vmatpush3.bf16.msra.mxu0 %v431_v18  ;;  %404 = vmatprep.subr.bf16.mxu1 %v441_v0 }
  0x19   :  { %373 = vmatprep.subr.bf16.mxu0 %v432_v19 }
  0x1b   :  { %405 = vmatpush3.bf16.msra.mxu1 %v433_v20 }
  0x1c   :  { %374 = vmatpush3.bf16.msra.mxu0 %v434_v21  ;;  %406 = vmatprep.subr.bf16.mxu1 %v441_v0 }
  0x1d   :  { %375 = vmatprep.subr.bf16.mxu0 %v435_v23 }
  0x1f   :  { %407 = vmatpush3.bf16.msra.mxu1 %v436_v25 }
  0x20   :  { %376 = vmatpush3.bf16.msra.mxu0 %v437_v26 }
  0x22   :  { %409 = vmatmul.mubr.bf16.vlgmr.msra.gmra.mxu1 %v440_v27 }
  0x23   :  { %259 = vmatmul.mubr.bf16.vlgmr.msra.gmra.mxu0 %v332_v28 }
  0xe2   :  { %v300_v29 = vpop.f32.mrf.mxu1 }
  0xe3   :  { %v377_v30 = vpop.f32.mrf.mxu0 }
  0xe4   :  { %v410_v31 = vpop.f32.mrf.mxu1 }
  0xe5   :  { %v378_v32 = vpop.f32.mrf.mxu0 }
  0xe6   :  { %v379_v33 = vadd.f32 %v378_v32, %v377_v30  ;;  %v303_v34 = vpop.f32.mrf.mxu1 }
  0xe7   :  { %v380_v37 = vpop.f32.mrf.mxu0 }
  0xe8   :  { %v301_v38 = vadd.f32 %v379_v33, %v300_v29  ;;  %v411_v39 = vpop.f32.mrf.mxu1 }
  0xe9   :  { %v381_v41 = vpop.f32.mrf.mxu0 }
  0xea   :  { %v313_v42 = vmul.f32 %v359_v35, %v301_v38 }
  0xec   :  { %v321_v44 = vadd.f32 %v360_v40, %v313_v42 }
  0xee   :  { %v324_v45 = vadd.f32 %v323_v43, %v321_v44 }
  0xf0   :  { %v325_v46 = vmax.f32 %v324_v45, 0.0 }
  0xf2   :  { %v326_v47 = vpack.c.bf16 %v325_v46, %v325_v46 }
  0xf4   :  { %327 = vst [vmem:[%s568_s5] sm:$0xf] %v326_v47 }

// kernel: lednet_forward.86
= control target key start
LH: loop header
LB: loop body
LE: loop exit
PB: predicated region body
PF: predicated region fallthrough
CT: control target
= control target key end

     0   :  { %v435_v0 = vmov 0.0   ;;  %vm436_vm0 = vmmov 0   ;;  %s549_s1 = inlined_call_operand.vmem [shape: bf16[384,128], index: 1, kind: input, shape index: {}]   ;;  %s550_s0 = inlined_call_operand.vmem [shape: bf16[8,384], index: 0, kind: input, shape index: {}]   ;;  %s551_s2 = inlined_call_operand.vmem [shape: f32[1,128], index: 2, kind: input, shape index: {}]   ;;  %s552_s3 = inlined_call_operand.vmem [shape: f32[1,128], index: 3, kind: input, shape index: {}]   ;;  %s553_s4 = inlined_call_operand.vmem [shape: bf16[8,128], index: 4, kind: output, shape index: {}]  }
   0x1   :  { %386 = vmatprep.subr.bf16.mxu1 %v435_v0  ;;  %v408_v1 = vld [vmem:[%s549_s1 + $0x78] sm:$0xff]   ;;  %402 = vmatprep.mubr.msk.bf16.mxu1 %vm436_vm0, %v435_v0  ;;  %v411_v4 = vld [vmem:[%s549_s1 + $0x70] sm:$0xff]   ;;  %v414_v7 = vld [vmem:[%s549_s1 + $0x68] sm:$0xff]  }
   0x2   :  { %v409_v2 = vld [vmem:[%s549_s1 + $0xb8] sm:$0xff]   ;;  %355 = vmatprep.subr.bf16.mxu0 %v408_v1  ;;  %v412_v5 = vld [vmem:[%s549_s1 + $0xb0] sm:$0xff]   ;;  %v415_v8 = vld [vmem:[%s549_s1 + $0xa8] sm:$0xff]  }
   0x3   :  { %v410_v3 = vld [vmem:[%s549_s1 + $0x38] sm:$0xff]   ;;  %387 = vmatpush3.bf16.msra.mxu1 %v409_v2  ;;  %v413_v6 = vld [vmem:[%s549_s1 + $0x30] sm:$0xff]   ;;  %v416_v9 = vld [vmem:[%s549_s1 + $0x28] sm:$0xff]  }
   0x4   :  { %356 = vmatpush3.bf16.msra.mxu0 %v410_v3  ;;  %388 = vmatprep.subr.bf16.mxu1 %v435_v0  ;;  %v417_v10 = vld [vmem:[%s549_s1 + $0x60] sm:$0xff]   ;;  %v420_v13 = vld [vmem:[%s549_s1 + $0x58] sm:$0xff]   ;;  %v423_v16 = vld [vmem:[%s549_s1 + $0x50] sm:$0xff]  }
   0x5   :  { %357 = vmatprep.subr.bf16.mxu0 %v411_v4  ;;  %v418_v11 = vld [vmem:[%s549_s1 + $0xa0] sm:$0xff]   ;;  %v421_v14 = vld [vmem:[%s549_s1 + $0x98] sm:$0xff]   ;;  %v424_v17 = vld [vmem:[%s549_s1 + $0x90] sm:$0xff]  }
   0x6   :  { %v419_v12 = vld [vmem:[%s549_s1 + $0x20] sm:$0xff]   ;;  %v422_v15 = vld [vmem:[%s549_s1 + $0x18] sm:$0xff]   ;;  %v425_v18 = vld [vmem:[%s549_s1 + $0x10] sm:$0xff]  }
   0x7   :  { %389 = vmatpush3.bf16.msra.mxu1 %v412_v5  ;;  %v426_v19 = vld [vmem:[%s549_s1 + $0x48] sm:$0xff]   ;;  %v18_v22 = vld [vmem:[%s550_s0] sm:$0xff] }
   0x8   :  { %358 = vmatpush3.bf16.msra.mxu0 %v413_v6  ;;  %390 = vmatprep.subr.bf16.mxu1 %v435_v0  ;;  %v427_v20 = vld [vmem:[%s549_s1 + $0x88] sm:$0xff]   ;;  %v429_v23 = vld [vmem:[%s549_s1 + $0x40] sm:$0xff]   ;;  %v327_v24 = vcombine.high %v18_v22, %v18_v22  ;;  %v326_v28 = vcombine.low %v18_v22, %v18_v22 }
   0x9   :  { %359 = vmatprep.subr.bf16.mxu0 %v414_v7  ;;  %v428_v21 = vld [vmem:[%s549_s1 + $0x8] sm:$0xff]   ;;  %v430_v25 = vld [vmem:[%s549_s1 + $0x80] sm:$0xff]  }
   0xa   :  { %255 = vmatprep.mubr.bf16.mxu0 %v327_v24  ;;  %v431_v26 = vld [vmem:[%s549_s1] sm:$0xff]   ;;  %v434_v27 = vld [vmem:[%s550_s0 + $0x8] ss:$0 sps:$4 sm:$0xff]  }
   0xb   :  { %391 = vmatpush3.bf16.msra.mxu1 %v415_v8  ;;  %v353_v35 = vld [vmem:[%s551_s2] ss:$0 sm:$0xff] }
   0xc   :  { %360 = vmatpush3.bf16.msra.mxu0 %v416_v9  ;;  %392 = vmatprep.subr.bf16.mxu1 %v435_v0  ;;  %v354_v39 = vld [vmem:[%s552_s3] ss:$0 sm:$0xff] }
   0xd   :  { %361 = vmatprep.subr.bf16.mxu0 %v417_v10 }
   0xf   :  { %393 = vmatpush3.bf16.msra.mxu1 %v418_v11 }
  0x10   :  { %362 = vmatpush3.bf16.msra.mxu0 %v419_v12  ;;  %394 = vmatprep.subr.bf16.mxu1 %v435_v0 }
  0x11   :  { %363 = vmatprep.subr.bf16.mxu0 %v420_v13 }
  0x13   :  { %395 = vmatpush3.bf16.msra.mxu1 %v421_v14 }
  0x14   :  { %364 = vmatpush3.bf16.msra.mxu0 %v422_v15  ;;  %396 = vmatprep.subr.bf16.mxu1 %v435_v0 }
  0x15   :  { %365 = vmatprep.subr.bf16.mxu0 %v423_v16 }
  0x17   :  { %397 = vmatpush3.bf16.msra.mxu1 %v424_v17 }
  0x18   :  { %366 = vmatpush3.bf16.msra.mxu0 %v425_v18  ;;  %398 = vmatprep.subr.bf16.mxu1 %v435_v0 }
  0x19   :  { %367 = vmatprep.subr.bf16.mxu0 %v426_v19 }
  0x1b   :  { %399 = vmatpush3.bf16.msra.mxu1 %v427_v20 }
  0x1c   :  { %368 = vmatpush3.bf16.msra.mxu0 %v428_v21  ;;  %400 = vmatprep.subr.bf16.mxu1 %v435_v0 }
  0x1d   :  { %369 = vmatprep.subr.bf16.mxu0 %v429_v23 }
  0x1f   :  { %401 = vmatpush3.bf16.msra.mxu1 %v430_v25 }
  0x20   :  { %370 = vmatpush3.bf16.msra.mxu0 %v431_v26 }
  0x22   :  { %403 = vmatmul.mubr.bf16.vlgmr.msra.gmra.mxu1 %v434_v27 }
  0x23   :  { %256 = vmatmul.mubr.bf16.vlgmr.msra.gmra.mxu0 %v326_v28 }
  0xe2   :  { %v297_v29 = vpop.f32.mrf.mxu1 }
  0xe3   :  { %v371_v30 = vpop.f32.mrf.mxu0 }
  0xe4   :  { %v404_v31 = vpop.f32.mrf.mxu1 }
  0xe5   :  { %v372_v32 = vpop.f32.mrf.mxu0 }
  0xe6   :  { %v373_v33 = vadd.f32 %v372_v32, %v371_v30  ;;  %v300_v34 = vpop.f32.mrf.mxu1 }
  0xe7   :  { %v374_v36 = vpop.f32.mrf.mxu0 }
  0xe8   :  { %v298_v37 = vadd.f32 %v373_v33, %v297_v29  ;;  %v405_v38 = vpop.f32.mrf.mxu1 }
  0xe9   :  { %v375_v40 = vpop.f32.mrf.mxu0 }
  0xea   :  { %v310_v41 = vmul.f32 %v353_v35, %v298_v37 }
  0xec   :  { %v318_v42 = vadd.f32 %v354_v39, %v310_v41 }
  0xee   :  { %v319_v43 = vmax.f32 %v318_v42, 0.0 }
  0xf0   :  { %v320_v44 = vpack.c.bf16 %v319_v43, %v319_v43 }
  0xf2   :  { %321 = vst [vmem:[%s553_s4] sm:$0xf] %v320_v44 }

// kernel: lednet_forward.118
= control target key start
LH: loop header
LB: loop body
LE: loop exit
PB: predicated region body
PF: predicated region fallthrough
CT: control target
= control target key end

     0   :  { %vm1138_vm0 = vmmov 0   ;;  %s1404_s1 = inlined_call_operand.vmem [shape: bf16[1152,128], index: 1, kind: input, shape index: {}]   ;;  %s1405_s0 = inlined_call_operand.vmem [shape: bf16[8,1152], index: 0, kind: input, shape index: {}]   ;;  %s1406_s2 = inlined_call_operand.vmem [shape: f32[1,128], index: 2, kind: input, shape index: {}]   ;;  %s1407_s3 = inlined_call_operand.vmem [shape: f32[1,128], index: 3, kind: input, shape index: {}]   ;;  %s1408_s4 = inlined_call_operand.vmem [shape: bf16[8,128], index: 4, kind: output, shape index: {}]  }
   0x1   :  { %v1056_v0 = vld [vmem:[%s1404_s1 + $0x78] sm:$0xff]   ;;  %v1060_v4 = vld [vmem:[%s1404_s1 + $0x70] sm:$0xff]   ;;  %v1064_v8 = vld [vmem:[%s1404_s1 + $0x68] sm:$0xff]  }
   0x2   :  { %v1057_v1 = vld [vmem:[%s1404_s1 + $0xf8] sm:$0xff]   ;;  %937 = vmatprep.subr.bf16.mxu0 %v1056_v0  ;;  %v1061_v5 = vld [vmem:[%s1404_s1 + $0xf0] sm:$0xff]   ;;  %v1065_v9 = vld [vmem:[%s1404_s1 + $0xe8] sm:$0xff]  }
   0x3   :  { %v1058_v2 = vld [vmem:[%s1404_s1 + $0x38] sm:$0xff]   ;;  %959 = vmatprep.subr.bf16.mxu1 %v1057_v1  ;;  %v1062_v6 = vld [vmem:[%s1404_s1 + $0x30] sm:$0xff]   ;;  %v1066_v10 = vld [vmem:[%s1404_s1 + $0x28] sm:$0xff]  }
   0x4   :  { %v1059_v3 = vld [vmem:[%s1404_s1 + $0xb8] sm:$0xff]   ;;  %938 = vmatpush3.bf16.msra.mxu0 %v1058_v2  ;;  %v1063_v7 = vld [vmem:[%s1404_s1 + $0xb0] sm:$0xff]   ;;  %v1067_v11 = vld [vmem:[%s1404_s1 + $0xa8] sm:$0xff]  }
   0x5   :  { %960 = vmatpush3.bf16.msra.mxu1 %v1059_v3  ;;  %939 = vmatprep.subr.bf16.mxu0 %v1060_v4  ;;  %v1068_v12 = vld [vmem:[%s1404_s1 + $0x60] sm:$0xff]   ;;  %v1072_v16 = vld [vmem:[%s1404_s1 + $0x58] sm:$0xff]   ;;  %v1076_v20 = vld [vmem:[%s1404_s1 + $0x50] sm:$0xff]  }
   0x6   :  { %961 = vmatprep.subr.bf16.mxu1 %v1061_v5  ;;  %v1069_v13 = vld [vmem:[%s1404_s1 + $0xe0] sm:$0xff]   ;;  %v1073_v17 = vld [vmem:[%s1404_s1 + $0xd8] sm:$0xff]   ;;  %v1077_v21 = vld [vmem:[%s1404_s1 + $0xd0] sm:$0xff]  }
   0x7   :  { %v1070_v14 = vld [vmem:[%s1404_s1 + $0x20] sm:$0xff]   ;;  %v1074_v18 = vld [vmem:[%s1404_s1 + $0x18] sm:$0xff]   ;;  %v1078_v22 = vld [vmem:[%s1404_s1 + $0x10] sm:$0xff]  }
   0x8   :  { %940 = vmatpush3.bf16.msra.mxu0 %v1062_v6  ;;  %v1071_v15 = vld [vmem:[%s1404_s1 + $0xa0] sm:$0xff]   ;;  %v1075_v19 = vld [vmem:[%s1404_s1 + $0x98] sm:$0xff]   ;;  %v1079_v23 = vld [vmem:[%s1404_s1 + $0x90] sm:$0xff]  }
   0x9   :  { %962 = vmatpush3.bf16.msra.mxu1 %v1063_v7  ;;  %941 = vmatprep.subr.bf16.mxu0 %v1064_v8  ;;  %v1080_v24 = vld [vmem:[%s1404_s1 + $0x48] sm:$0xff]   ;;  %v1084_v28 = vld [vmem:[%s1404_s1 + $0x40] sm:$0xff]   ;;  %v1092_v38 = vld [vmem:[%s1404_s1 + $0x178] sm:$0xff]  }
   0xa   :  { %963 = vmatprep.subr.bf16.mxu1 %v1065_v9  ;;  %v1081_v25 = vld [vmem:[%s1404_s1 + $0xc8] sm:$0xff]   ;;  %v1085_v29 = vld [vmem:[%s1404_s1 + $0xc0] sm:$0xff]   ;;  %v1093_v39 = vld [vmem:[%s1404_s1 + $0x138] sm:$0xff]  }
   0xb   :  { %v1082_v26 = vld [vmem:[%s1404_s1 + $0x8] sm:$0xff]   ;;  %v1086_v30 = vld [vmem:[%s1404_s1] sm:$0xff]   ;;  %v1094_v40 = vld [vmem:[%s1404_s1 + $0x1f8] sm:$0xff]  }
   0xc   :  { %942 = vmatpush3.bf16.msra.mxu0 %v1066_v10  ;;  %v1083_v27 = vld [vmem:[%s1404_s1 + $0x88] sm:$0xff]   ;;  %v1087_v31 = vld [vmem:[%s1404_s1 + $0x80] sm:$0xff]   ;;  %v1095_v41 = vld [vmem:[%s1404_s1 + $0x1b8] sm:$0xff]  }
   0xd   :  { %964 = vmatpush3.bf16.msra.mxu1 %v1067_v11  ;;  %943 = vmatprep.subr.bf16.mxu0 %v1068_v12  ;;  %v18_v32 = vld [vmem:[%s1405_s0] sm:$0xff]  ;;  %v19_v33 = vld [vmem:[%s1405_s0 + $0x8] sm:$0xff]  ;;  %v1096_v42 = vld [vmem:[%s1404_s1 + $0x170] sm:$0xff]  }
   0xe   :  { %965 = vmatprep.subr.bf16.mxu1 %v1069_v13  ;;  %v854_v34 = vcombine.low %v18_v32, %v18_v32  ;;  %v855_v35 = vcombine.high %v18_v32, %v18_v32  ;;  %v856_v36 = vcombine.low %v19_v33, %v19_v33  ;;  %v857_v37 = vcombine.high %v19_v33, %v19_v33  ;;  %v1097_v43 = vld [vmem:[%s1404_s1 + $0x130] sm:$0xff]   ;;  %v1100_v46 = vld [vmem:[%s1404_s1 + $0x168] sm:$0xff]   ;;  %v1104_v50 = vld [vmem:[%s1404_s1 + $0x160] sm:$0xff]  }
   0xf   :  { %v1098_v44 = vld [vmem:[%s1404_s1 + $0x1f0] sm:$0xff]   ;;  %v1101_v47 = vld [vmem:[%s1404_s1 + $0x128] sm:$0xff]   ;;  %v1105_v51 = vld [vmem:[%s1404_s1 + $0x120] sm:$0xff]   ;;  %v1137_v13 = vmov 0.0  }
  0x10   :  { %944 = vmatpush3.bf16.msra.mxu0 %v1070_v14  ;;  %663 = vmatprep.mubr.bf16.mxu0 %v855_v35  ;;  %v1099_v45 = vld [vmem:[%s1404_s1 + $0x1b0] sm:$0xff]   ;;  %v1102_v48 = vld [vmem:[%s1404_s1 + $0x1e8] sm:$0xff]   ;;  %v1106_v52 = vld [vmem:[%s1404_s1 + $0x1e0] sm:$0xff]  }
  0x11   :  { %966 = vmatpush3.bf16.msra.mxu1 %v1071_v15  ;;  %945 = vmatprep.subr.bf16.mxu0 %v1072_v16  ;;  %v1103_v49 = vld [vmem:[%s1404_s1 + $0x1a8] sm:$0xff]   ;;  %v1107_v53 = vld [vmem:[%s1404_s1 + $0x1a0] sm:$0xff]   ;;  %v1108_v54 = vld [vmem:[%s1404_s1 + $0x158] sm:$0xff]  }
  0x12   :  { %967 = vmatprep.subr.bf16.mxu1 %v1073_v17  ;;  %703 = vmatprep.mubr.bf16.mxu1 %v857_v37  ;;  %v1109_v55 = vld [vmem:[%s1404_s1 + $0x118] sm:$0xff]   ;;  %v1112_v58 = vld [vmem:[%s1404_s1 + $0x150] sm:$0xff]   ;;  %v1116_v62 = vld [vmem:[%s1404_s1 + $0x148] sm:$0xff]  }
  0x13   :  { %v1110_v56 = vld [vmem:[%s1404_s1 + $0x1d8] sm:$0xff]   ;;  %v1113_v59 = vld [vmem:[%s1404_s1 + $0x110] sm:$0xff]   ;;  %v1117_v63 = vld [vmem:[%s1404_s1 + $0x108] sm:$0xff]  }
  0x14   :  { %946 = vmatpush3.bf16.msra.mxu0 %v1074_v18  ;;  %v1111_v57 = vld [vmem:[%s1404_s1 + $0x198] sm:$0xff]   ;;  %v1114_v60 = vld [vmem:[%s1404_s1 + $0x1d0] sm:$0xff]   ;;  %v1118_v0 = vld [vmem:[%s1404_s1 + $0x1c8] sm:$0xff]  }
  0x15   :  { %968 = vmatpush3.bf16.msra.mxu1 %v1075_v19  ;;  %947 = vmatprep.subr.bf16.mxu0 %v1076_v20  ;;  %v1115_v61 = vld [vmem:[%s1404_s1 + $0x190] sm:$0xff]   ;;  %v1119_v1 = vld [vmem:[%s1404_s1 + $0x188] sm:$0xff]   ;;  %v1120_v2 = vld [vmem:[%s1404_s1 + $0x140] sm:$0xff]  }
  0x16   :  { %969 = vmatprep.subr.bf16.mxu1 %v1077_v21  ;;  %v1121_v3 = vld [vmem:[%s1404_s1 + $0x100] sm:$0xff]   ;;  %v20_v5 = vld [vmem:[%s1405_s0 + $0x10] sm:$0xff]  ;;  %v21_v9 = vld [vmem:[%s1405_s0 + $0x18] sm:$0xff] }
  0x17   :  { %v1122_v4 = vld [vmem:[%s1404_s1 + $0x1c0] sm:$0xff]   ;;  %v859_v6 = vcombine.high %v20_v5, %v20_v5  ;;  %v858_v8 = vcombine.low %v20_v5, %v20_v5  ;;  %v860_v10 = vcombine.low %v21_v9, %v21_v9  ;;  %v861_v11 = vcombine.high %v21_v9, %v21_v9  ;;  %v1128_v12 = vld [vmem:[%s1404_s1 + $0x238] sm:$0xff]   ;;  %v1129_v14 = vld [vmem:[%s1404_s1 + $0x230] sm:$0xff]  }
  0x18   :  { %948 = vmatpush3.bf16.msra.mxu0 %v1078_v22  ;;  %v1125_v7 = vld [vmem:[%s1404_s1 + $0x180] sm:$0xff]   ;;  %v1130_v15 = vld [vmem:[%s1404_s1 + $0x228] sm:$0xff]   ;;  %v1132_v17 = vld [vmem:[%s1404_s1 + $0x218] sm:$0xff]  }
  0x19   :  { %970 = vmatpush3.bf16.msra.mxu1 %v1079_v23  ;;  %949 = vmatprep.subr.bf16.mxu0 %v1080_v24  ;;  %v1131_v16 = vld [vmem:[%s1404_s1 + $0x220] sm:$0xff]   ;;  %v1133_v18 = vld [vmem:[%s1404_s1 + $0x210] sm:$0xff]   ;;  %v1134_v19 = vld [vmem:[%s1404_s1 + $0x208] sm:$0xff]  }
  0x1a   :  { %971 = vmatprep.subr.bf16.mxu1 %v1081_v25  ;;  %v1135_v20 = vld [vmem:[%s1404_s1 + $0x200] sm:$0xff]  }
  0x1b   :  { %v1136_v21 = vld [vmem:[%s1405_s0 + $0x20] ss:$0 sps:$4 sm:$0xff]  }
  0x1c   :  { %950 = vmatpush3.bf16.msra.mxu0 %v1082_v26 }
  0x1d   :  { %972 = vmatpush3.bf16.msra.mxu1 %v1083_v27  ;;  %951 = vmatprep.subr.bf16.mxu0 %v1084_v28 }
  0x1e   :  { %973 = vmatprep.subr.bf16.mxu1 %v1085_v29 }
  0x20   :  { %952 = vmatpush3.bf16.msra.mxu0 %v1086_v30 }
  0x21   :  { %974 = vmatpush3.bf16.msra.mxu1 %v1087_v31  ;;  %981 = vmatprep.subr.bf16.mxu0 %v1092_v38 }
  0x22   :  { %1003 = vmatprep.subr.bf16.mxu1 %v1094_v40 }
  0x23   :  { %664 = vmatmul.mubr.bf16.vlgmr.msra.gmra.mxu0 %v854_v34 }
  0x24   :  { %704 = vmatmul.mubr.bf16.vlgmr.msra.gmra.mxu1 %v856_v36  ;;  %982 = vmatpush3.bf16.msra.mxu0 %v1093_v39 }
  0x25   :  { %1004 = vmatpush3.bf16.msra.mxu1 %v1095_v41  ;;  %983 = vmatprep.subr.bf16.mxu0 %v1096_v42 }
  0x26   :  { %1005 = vmatprep.subr.bf16.mxu1 %v1098_v44  ;;  %743 = vmatprep.mubr.bf16.mxu0 %v859_v6 }
  0x27   :  { %783 = vmatprep.mubr.bf16.mxu1 %v861_v11 }
  0x28   :  { %984 = vmatpush3.bf16.msra.mxu0 %v1097_v43 }
  0x29   :  { %1006 = vmatpush3.bf16.msra.mxu1 %v1099_v45  ;;  %985 = vmatprep.subr.bf16.mxu0 %v1100_v46  ;;  %v935_v46 = vld [vmem:[%s1406_s2] ss:$0 sm:$0xff] }
  0x2a   :  { %1007 = vmatprep.subr.bf16.mxu1 %v1102_v48  ;;  %v936_v48 = vld [vmem:[%s1407_s3] ss:$0 sm:$0xff] }
  0x2c   :  { %986 = vmatpush3.bf16.msra.mxu0 %v1101_v47 }
  0x2d   :  { %1008 = vmatpush3.bf16.msra.mxu1 %v1103_v49  ;;  %987 = vmatprep.subr.bf16.mxu0 %v1104_v50 }
  0x2e   :  { %1009 = vmatprep.subr.bf16.mxu1 %v1106_v52 }
  0x30   :  { %988 = vmatpush3.bf16.msra.mxu0 %v1105_v51 }
  0x31   :  { %1010 = vmatpush3.bf16.msra.mxu1 %v1107_v53  ;;  %989 = vmatprep.subr.bf16.mxu0 %v1108_v54 }
  0x32   :  { %1011 = vmatprep.subr.bf16.mxu1 %v1110_v56 }
  0x34   :  { %990 = vmatpush3.bf16.msra.mxu0 %v1109_v55 }
  0x35   :  { %1012 = vmatpush3.bf16.msra.mxu1 %v1111_v57  ;;  %991 = vmatprep.subr.bf16.mxu0 %v1112_v58 }
  0x36   :  { %1013 = vmatprep.subr.bf16.mxu1 %v1114_v60 }
  0x38   :  { %992 = vmatpush3.bf16.msra.mxu0 %v1113_v59 }
  0x39   :  { %1014 = vmatpush3.bf16.msra.mxu1 %v1115_v61  ;;  %993 = vmatprep.subr.bf16.mxu0 %v1116_v62 }
  0x3a   :  { %1015 = vmatprep.subr.bf16.mxu1 %v1118_v0 }
  0x3c   :  { %994 = vmatpush3.bf16.msra.mxu0 %v1117_v63 }
  0x3d   :  { %1016 = vmatpush3.bf16.msra.mxu1 %v1119_v1  ;;  %995 = vmatprep.subr.bf16.mxu0 %v1120_v2 }
  0x3e   :  { %1017 = vmatprep.subr.bf16.mxu1 %v1122_v4 }
  0x40   :  { %996 = vmatpush3.bf16.msra.mxu0 %v1121_v3 }
  0x41   :  { %1018 = vmatpush3.bf16.msra.mxu1 %v1125_v7  ;;  %1034 = vmatprep.subr.bf16.mxu0 %v1137_v13 }
  0x43   :  { %744 = vmatmul.mubr.bf16.vlgmr.msra.gmra.mxu0 %v858_v8 }
  0x44   :  { %1035 = vmatpush3.bf16.msra.mxu0 %v1128_v12  ;;  %784 = vmatmul.mubr.bf16.vlgmr.msra.gmra.mxu1 %v860_v10 }
  0x45   :  { %1036 = vmatprep.subr.bf16.mxu0 %v1137_v13  ;;  %1050 = vmatprep.mubr.msk.bf16.mxu0 %vm1138_vm0, %v1137_v13 }
  0x48   :  { %1037 = vmatpush3.bf16.msra.mxu0 %v1129_v14 }
  0x49   :  { %1038 = vmatprep.subr.bf16.mxu0 %v1137_v13 }
  0x4c   :  { %1039 = vmatpush3.bf16.msra.mxu0 %v1130_v15 }
  0x4d   :  { %1040 = vmatprep.subr.bf16.mxu0 %v1137_v13 }
  0x50   :  { %1041 = vmatpush3.bf16.msra.mxu0 %v1131_v16 }
  0x51   :  { %1042 = vmatprep.subr.bf16.mxu0 %v1137_v13 }
  0x54   :  { %1043 = vmatpush3.bf16.msra.mxu0 %v1132_v17 }
  0x55   :  { %1044 = vmatprep.subr.bf16.mxu0 %v1137_v13 }
  0x58   :  { %1045 = vmatpush3.bf16.msra.mxu0 %v1133_v18 }
  0x59   :  { %1046 = vmatprep.subr.bf16.mxu0 %v1137_v13 }
  0x5c   :  { %1047 = vmatpush3.bf16.msra.mxu0 %v1134_v19 }
  0x5d   :  { %1048 = vmatprep.subr.bf16.mxu0 %v1137_v13 }
  0x60   :  { %1049 = vmatpush3.bf16.msra.mxu0 %v1135_v20 }
  0x63   :  { %1051 = vmatmul.mubr.bf16.vlgmr.msra.gmra.mxu0 %v1136_v21 }
  0xe3   :  { %v953_v22 = vpop.f32.mrf.mxu0 }
  0xe4   :  { %v975_v23 = vpop.f32.mrf.mxu1 }
  0xe5   :  { %v954_v24 = vpop.f32.mrf.mxu0 }
  0xe6   :  { %v976_v25 = vpop.f32.mrf.mxu1  ;;  %v955_v38 = vadd.f32 %v954_v24, %v953_v22 }
  0xe7   :  { %v956_v26 = vpop.f32.mrf.mxu0  ;;  %v977_v39 = vadd.f32 %v976_v25, %v975_v23 }
  0xe8   :  { %v978_v27 = vpop.f32.mrf.mxu1 }
  0xe9   :  { %v957_v28 = vpop.f32.mrf.mxu0  ;;  %v706_v41 = vadd.f32 %v977_v39, %v955_v38 }
  0xea   :  { %v979_v29 = vpop.f32.mrf.mxu1 }
 0x103   :  { %v997_v30 = vpop.f32.mrf.mxu0 }
 0x104   :  { %v1019_v31 = vpop.f32.mrf.mxu1 }
 0x105   :  { %v998_v32 = vpop.f32.mrf.mxu0 }
 0x106   :  { %v1020_v33 = vpop.f32.mrf.mxu1  ;;  %v999_v40 = vadd.f32 %v998_v32, %v997_v30 }
 0x107   :  { %v1000_v34 = vpop.f32.mrf.mxu0  ;;  %v1021_v43 = vadd.f32 %v1020_v33, %v1019_v31 }
 0x108   :  { %v1022_v35 = vpop.f32.mrf.mxu1  ;;  %v746_v42 = vadd.f32 %v999_v40, %v706_v41 }
 0x109   :  { %v1001_v36 = vpop.f32.mrf.mxu0 }
 0x10a   :  { %v1023_v37 = vpop.f32.mrf.mxu1  ;;  %v786_v44 = vadd.f32 %v1021_v43, %v746_v42 }
 0x123   :  { %v825_v45 = vpop.f32.mrf.mxu0 }
 0x124   :  { %v826_v47 = vadd.f32 %v825_v45, %v786_v44 }
 0x125   :  { %v1052_v49 = vpop.f32.mrf.mxu0 }
 0x126   :  { %v838_v50 = vmul.f32 %v935_v46, %v826_v47 }
 0x127   :  { %v828_v51 = vpop.f32.mrf.mxu0 }
 0x128   :  { %v846_v52 = vadd.f32 %v936_v48, %v838_v50 }
 0x129   :  { %v1053_v53 = vpop.f32.mrf.mxu0 }
 0x12a   :  { %v847_v54 = vmax.f32 %v846_v52, 0.0 }
 0x12c   :  { %v848_v55 = vpack.c.bf16 %v847_v54, %v847_v54 }
 0x12e   :  { %849 = vst [vmem:[%s1408_s4] sm:$0xf] %v848_v55 }

// kernel: lednet_forward.121
= control target key start
LH: loop header
LB: loop body
LE: loop exit
PB: predicated region body
PF: predicated region fallthrough
CT: control target
= control target key end

     0   :  { %v195_v0 = vmov 0.0   ;;  %vm196_vm0 = vmmov 0   ;;  %vm140_vm1 = vcmask 31744   ;;  %s258_s1 = inlined_call_operand.vmem [shape: bf16[128,4], index: 1, kind: input, shape index: {}]   ;;  %s259_s0 = inlined_call_operand.vmem [shape: bf16[8,128], index: 0, kind: input, shape index: {}]   ;;  %s260_s2 = inlined_call_operand.vmem [shape: f32[1,4], index: 2, kind: input, shape index: {}]   ;;  %s261_s3 = inlined_call_operand.vmem [shape: f32[1,4], index: 3, kind: input, shape index: {}]   ;;  %s262_s4 = inlined_call_operand.vmem [shape: f32[8,4], index: 4, kind: output, shape index: {}]  }
   0x1   :  { %165 = vmatprep.subr.bf16.mxu0 %v195_v0  ;;  %v187_v1 = vld [vmem:[%s258_s1 + $0x38] sm:$0xff]   ;;  %181 = vmatprep.mubr.msk.bf16.mxu0 %vm196_vm0, %v195_v0  ;;  %v188_v2 = vld [vmem:[%s258_s1 + $0x30] sm:$0xff]   ;;  %v189_v3 = vld [vmem:[%s258_s1 + $0x28] sm:$0xff]  }
   0x2   :  { %166 = vmatpush3.bf16.msra.mxu0 %v187_v1  ;;  %v190_v4 = vld [vmem:[%s258_s1 + $0x20] sm:$0xff]   ;;  %v191_v5 = vld [vmem:[%s258_s1 + $0x18] sm:$0xff]   ;;  %v192_v6 = vld [vmem:[%s258_s1 + $0x10] sm:$0xff]  }
   0x3   :  { %167 = vmatprep.subr.bf16.mxu0 %v195_v0  ;;  %v193_v7 = vld [vmem:[%s258_s1 + $0x8] sm:$0xff]   ;;  %v194_v8 = vld [vmem:[%s258_s1] sm:$0xff]  }
   0x4   :  { %v18_v9 = vld [vmem:[%s259_s0] sm:$0xf] }
   0x5   :  { %v154_v10 = vld [vmem:[%s260_s2] ss:$0 sm:$0xff] }
   0x6   :  { %168 = vmatpush3.bf16.msra.mxu0 %v188_v2  ;;  %v155_v12 = vld [vmem:[%s261_s3] ss:$0 sm:$0xff] }
   0x7   :  { %169 = vmatprep.subr.bf16.mxu0 %v195_v0 }
   0xa   :  { %170 = vmatpush3.bf16.msra.mxu0 %v189_v3 }
   0xb   :  { %171 = vmatprep.subr.bf16.mxu0 %v195_v0 }
   0xe   :  { %172 = vmatpush3.bf16.msra.mxu0 %v190_v4 }
   0xf   :  { %173 = vmatprep.subr.bf16.mxu0 %v195_v0 }
  0x12   :  { %174 = vmatpush3.bf16.msra.mxu0 %v191_v5 }
  0x13   :  { %175 = vmatprep.subr.bf16.mxu0 %v195_v0 }
  0x16   :  { %176 = vmatpush3.bf16.msra.mxu0 %v192_v6 }
  0x17   :  { %177 = vmatprep.subr.bf16.mxu0 %v195_v0 }
  0x1a   :  { %178 = vmatpush3.bf16.msra.mxu0 %v193_v7 }
  0x1b   :  { %179 = vmatprep.subr.bf16.mxu0 %v195_v0 }
  0x1e   :  { %180 = vmatpush3.bf16.msra.mxu0 %v194_v8 }
  0x21   :  { %182 = vmatmul.mubr.bf16.vlgmr.msra.gmra.mxu0 %v18_v9 }
  0xe1   :  { %v117_v11 = vpop.f32.mrf.mxu0 }
  0xe2   :  { %v130_v13 = vmul.f32 %v154_v10, %v117_v11 }
  0xe3   :  { %v183_v14 = vpop.f32.mrf.mxu0 }
  0xe4   :  { %v138_v15 = vadd.f32 %v155_v12, %v130_v13 }
  0xe5   :  { %v120_v16 = vpop.f32.mrf.mxu0 }
  0xe6   :  { %v139_v17 = vmax.f32 %v138_v15, 0.0 }
  0xe7   :  { %v184_v18 = vpop.f32.mrf.mxu0 }
  0xe8   :  { %141 = vst.msk [vmem:[%s262_s4] sm:$0xff] %vm140_vm1, %v139_v17 }

// kernel: lednet_forward.119
= control target key start
LH: loop header
LB: loop body
LE: loop exit
PB: predicated region body
PF: predicated region fallthrough
CT: control target
= control target key end

     0   :  { %vm3010_vm0 = vmmov 0   ;;  %s3684_s1 = inlined_call_operand.vmem [shape: bf16[3200,128], index: 1, kind: input, shape index: {}]   ;;  %s3685_s0 = inlined_call_operand.vmem [shape: bf16[8,3200], index: 0, kind: input, shape index: {}]   ;;  %s3686_s2 = inlined_call_operand.vmem [shape: f32[1,128], index: 2, kind: input, shape index: {}]   ;;  %s3687_s3 = inlined_call_operand.vmem [shape: f32[1,128], index: 3, kind: input, shape index: {}]   ;;  %s3688_s4 = inlined_call_operand.vmem [shape: bf16[8,128], index: 4, kind: output, shape index: {}]  }
   0x1   :  { %v2784_v0 = vld [vmem:[%s3684_s1 + $0x78] sm:$0xff]   ;;  %v2788_v4 = vld [vmem:[%s3684_s1 + $0x70] sm:$0xff]   ;;  %v2792_v8 = vld [vmem:[%s3684_s1 + $0x68] sm:$0xff]  }
   0x2   :  { %v2785_v1 = vld [vmem:[%s3684_s1 + $0xf8] sm:$0xff]   ;;  %2489 = vmatprep.subr.bf16.mxu0 %v2784_v0  ;;  %v2789_v5 = vld [vmem:[%s3684_s1 + $0xf0] sm:$0xff]   ;;  %v2793_v9 = vld [vmem:[%s3684_s1 + $0xe8] sm:$0xff]  }
   0x3   :  { %v2786_v2 = vld [vmem:[%s3684_s1 + $0x38] sm:$0xff]   ;;  %2511 = vmatprep.subr.bf16.mxu1 %v2785_v1  ;;  %v2790_v6 = vld [vmem:[%s3684_s1 + $0x30] sm:$0xff]   ;;  %v2794_v10 = vld [vmem:[%s3684_s1 + $0x28] sm:$0xff]  }
   0x4   :  { %v2787_v3 = vld [vmem:[%s3684_s1 + $0xb8] sm:$0xff]   ;;  %2490 = vmatpush3.bf16.msra.mxu0 %v2786_v2  ;;  %v2791_v7 = vld [vmem:[%s3684_s1 + $0xb0] sm:$0xff]   ;;  %v2795_v11 = vld [vmem:[%s3684_s1 + $0xa8] sm:$0xff]  }
   0x5   :  { %2512 = vmatpush3.bf16.msra.mxu1 %v2787_v3  ;;  %2491 = vmatprep.subr.bf16.mxu0 %v2788_v4  ;;  %v2796_v12 = vld [vmem:[%s3684_s1 + $0x60] sm:$0xff]   ;;  %v2800_v16 = vld [vmem:[%s3684_s1 + $0x58] sm:$0xff]   ;;  %v2804_v20 = vld [vmem:[%s3684_s1 + $0x50] sm:$0xff]  }
   0x6   :  { %2513 = vmatprep.subr.bf16.mxu1 %v2789_v5  ;;  %v2797_v13 = vld [vmem:[%s3684_s1 + $0xe0] sm:$0xff]   ;;  %v2801_v17 = vld [vmem:[%s3684_s1 + $0xd8] sm:$0xff]   ;;  %v2805_v21 = vld [vmem:[%s3684_s1 + $0xd0] sm:$0xff]  }
   0x7   :  { %v2798_v14 = vld [vmem:[%s3684_s1 + $0x20] sm:$0xff]   ;;  %v2802_v18 = vld [vmem:[%s3684_s1 + $0x18] sm:$0xff]   ;;  %v2806_v22 = vld [vmem:[%s3684_s1 + $0x10] sm:$0xff]  }
   0x8   :  { %2492 = vmatpush3.bf16.msra.mxu0 %v2790_v6  ;;  %v2799_v15 = vld [vmem:[%s3684_s1 + $0xa0] sm:$0xff]   ;;  %v2803_v19 = vld [vmem:[%s3684_s1 + $0x98] sm:$0xff]   ;;  %v2807_v23 = vld [vmem:[%s3684_s1 + $0x90] sm:$0xff]  }
   0x9   :  { %2514 = vmatpush3.bf16.msra.mxu1 %v2791_v7  ;;  %2493 = vmatprep.subr.bf16.mxu0 %v2792_v8  ;;  %v2808_v24 = vld [vmem:[%s3684_s1 + $0x48] sm:$0xff]   ;;  %v2812_v28 = vld [vmem:[%s3684_s1 + $0x40] sm:$0xff]   ;;  %v2820_v38 = vld [vmem:[%s3684_s1 + $0x178] sm:$0xff]  }
   0xa   :  { %2515 = vmatprep.subr.bf16.mxu1 %v2793_v9  ;;  %v2809_v25 = vld [vmem:[%s3684_s1 + $0xc8] sm:$0xff]   ;;  %v2813_v29 = vld [vmem:[%s3684_s1 + $0xc0] sm:$0xff]   ;;  %v2821_v39 = vld [vmem:[%s3684_s1 + $0x138] sm:$0xff]  }
   0xb   :  { %v2810_v26 = vld [vmem:[%s3684_s1 + $0x8] sm:$0xff]   ;;  %v2814_v30 = vld [vmem:[%s3684_s1] sm:$0xff]   ;;  %v2822_v40 = vld [vmem:[%s3684_s1 + $0x1f8] sm:$0xff]  }
   0xc   :  { %2494 = vmatpush3.bf16.msra.mxu0 %v2794_v10  ;;  %v2811_v27 = vld [vmem:[%s3684_s1 + $0x88] sm:$0xff]   ;;  %v2815_v31 = vld [vmem:[%s3684_s1 + $0x80] sm:$0xff]   ;;  %v2823_v41 = vld [vmem:[%s3684_s1 + $0x1b8] sm:$0xff]  }
   0xd   :  { %2516 = vmatpush3.bf16.msra.mxu1 %v2795_v11  ;;  %2495 = vmatprep.subr.bf16.mxu0 %v2796_v12  ;;  %v18_v32 = vld [vmem:[%s3685_s0] sm:$0xff]  ;;  %v19_v33 = vld [vmem:[%s3685_s0 + $0x8] sm:$0xff]  ;;  %v2824_v42 = vld [vmem:[%s3684_s1 + $0x170] sm:$0xff]  }
   0xe   :  { %2517 = vmatprep.subr.bf16.mxu1 %v2797_v13  ;;  %v2262_v34 = vcombine.low %v18_v32, %v18_v32  ;;  %v2263_v35 = vcombine.high %v18_v32, %v18_v32  ;;  %v2264_v36 = vcombine.low %v19_v33, %v19_v33  ;;  %v2265_v37 = vcombine.high %v19_v33, %v19_v33  ;;  %v2825_v43 = vld [vmem:[%s3684_s1 + $0x130] sm:$0xff]   ;;  %v2828_v46 = vld [vmem:[%s3684_s1 + $0x168] sm:$0xff]   ;;  %v2832_v50 = vld [vmem:[%s3684_s1 + $0x160] sm:$0xff]  }
   0xf   :  { %v2826_v44 = vld [vmem:[%s3684_s1 + $0x1f0] sm:$0xff]   ;;  %v2829_v47 = vld [vmem:[%s3684_s1 + $0x128] sm:$0xff]   ;;  %v2833_v51 = vld [vmem:[%s3684_s1 + $0x120] sm:$0xff]  }
  0x10   :  { %2496 = vmatpush3.bf16.msra.mxu0 %v2798_v14  ;;  %1751 = vmatprep.mubr.bf16.mxu0 %v2263_v35  ;;  %v2827_v45 = vld [vmem:[%s3684_s1 + $0x1b0] sm:$0xff]   ;;  %v2830_v48 = vld [vmem:[%s3684_s1 + $0x1e8] sm:$0xff]   ;;  %v2834_v52 = vld [vmem:[%s3684_s1 + $0x1e0] sm:$0xff]  }
  0x11   :  { %2518 = vmatpush3.bf16.msra.mxu1 %v2799_v15  ;;  %2497 = vmatprep.subr.bf16.mxu0 %v2800_v16  ;;  %v2831_v49 = vld [vmem:[%s3684_s1 + $0x1a8] sm:$0xff]   ;;  %v2835_v53 = vld [vmem:[%s3684_s1 + $0x1a0] sm:$0xff]   ;;  %v2836_v54 = vld [vmem:[%s3684_s1 + $0x158] sm:$0xff]  }
  0x12   :  { %2519 = vmatprep.subr.bf16.mxu1 %v2801_v17  ;;  %1791 = vmatprep.mubr.bf16.mxu1 %v2265_v37  ;;  %v2837_v55 = vld [vmem:[%s3684_s1 + $0x118] sm:$0xff]   ;;  %v2840_v58 = vld [vmem:[%s3684_s1 + $0x150] sm:$0xff]   ;;  %v2844_v62 = vld [vmem:[%s3684_s1 + $0x148] sm:$0xff]  }
  0x13   :  { %v2838_v56 = vld [vmem:[%s3684_s1 + $0x1d8] sm:$0xff]   ;;  %v2841_v59 = vld [vmem:[%s3684_s1 + $0x110] sm:$0xff]   ;;  %v2845_v63 = vld [vmem:[%s3684_s1 + $0x108] sm:$0xff]  }
  0x14   :  { %2498 = vmatpush3.bf16.msra.mxu0 %v2802_v18  ;;  %v2839_v57 = vld [vmem:[%s3684_s1 + $0x198] sm:$0xff]   ;;  %v2842_v60 = vld [vmem:[%s3684_s1 + $0x1d0] sm:$0xff]   ;;  %v2846_v0 = vld [vmem:[%s3684_s1 + $0x1c8] sm:$0xff]  }
  0x15   :  { %2520 = vmatpush3.bf16.msra.mxu1 %v2803_v19  ;;  %2499 = vmatprep.subr.bf16.mxu0 %v2804_v20  ;;  %v2843_v61 = vld [vmem:[%s3684_s1 + $0x190] sm:$0xff]   ;;  %v2847_v1 = vld [vmem:[%s3684_s1 + $0x188] sm:$0xff]   ;;  %v2848_v2 = vld [vmem:[%s3684_s1 + $0x140] sm:$0xff]  }
  0x16   :  { %2521 = vmatprep.subr.bf16.mxu1 %v2805_v21  ;;  %v2849_v3 = vld [vmem:[%s3684_s1 + $0x100] sm:$0xff]   ;;  %v20_v5 = vld [vmem:[%s3685_s0 + $0x10] sm:$0xff]  ;;  %v2854_v9 = vld [vmem:[%s3684_s1 + $0x278] sm:$0xff]  }
  0x17   :  { %v2850_v4 = vld [vmem:[%s3684_s1 + $0x1c0] sm:$0xff]   ;;  %v2267_v6 = vcombine.high %v20_v5, %v20_v5  ;;  %v2266_v8 = vcombine.low %v20_v5, %v20_v5  ;;  %v21_v10 = vld [vmem:[%s3685_s0 + $0x18] sm:$0xff]  ;;  %v2860_v16 = vld [vmem:[%s3684_s1 + $0x270] sm:$0xff]  }
  0x18   :  { %2500 = vmatpush3.bf16.msra.mxu0 %v2806_v22  ;;  %v2853_v7 = vld [vmem:[%s3684_s1 + $0x180] sm:$0xff]   ;;  %v2268_v11 = vcombine.low %v21_v10, %v21_v10  ;;  %v2269_v12 = vcombine.high %v21_v10, %v21_v10  ;;  %v2857_v13 = vld [vmem:[%s3684_s1 + $0x238] sm:$0xff]   ;;  %v2861_v17 = vld [vmem:[%s3684_s1 + $0x230] sm:$0xff]  }
  0x19   :  { %2522 = vmatpush3.bf16.msra.mxu1 %v2807_v23  ;;  %2501 = vmatprep.subr.bf16.mxu0 %v2808_v24  ;;  %v2858_v14 = vld [vmem:[%s3684_s1 + $0x2f8] sm:$0xff]   ;;  %v2862_v18 = vld [vmem:[%s3684_s1 + $0x2f0] sm:$0xff]   ;;  %v2864_v20 = vld [vmem:[%s3684_s1 + $0x268] sm:$0xff]  }
  0x1a   :  { %2523 = vmatprep.subr.bf16.mxu1 %v2809_v25  ;;  %v2859_v15 = vld [vmem:[%s3684_s1 + $0x2b8] sm:$0xff]   ;;  %v2863_v19 = vld [vmem:[%s3684_s1 + $0x2b0] sm:$0xff]   ;;  %v2865_v21 = vld [vmem:[%s3684_s1 + $0x228] sm:$0xff]  }
  0x1b   :  { %v2866_v22 = vld [vmem:[%s3684_s1 + $0x2e8] sm:$0xff]   ;;  %v2868_v24 = vld [vmem:[%s3684_s1 + $0x260] sm:$0xff]   ;;  %v2876_v32 = vld [vmem:[%s3684_s1 + $0x250] sm:$0xff]  }
  0x1c   :  { %2502 = vmatpush3.bf16.msra.mxu0 %v2810_v26  ;;  %v2867_v23 = vld [vmem:[%s3684_s1 + $0x2a8] sm:$0xff]   ;;  %v2869_v25 = vld [vmem:[%s3684_s1 + $0x220] sm:$0xff]   ;;  %v2877_v33 = vld [vmem:[%s3684_s1 + $0x210] sm:$0xff]  }
  0x1d   :  { %2524 = vmatpush3.bf16.msra.mxu1 %v2811_v27  ;;  %2503 = vmatprep.subr.bf16.mxu0 %v2812_v28  ;;  %v2870_v26 = vld [vmem:[%s3684_s1 + $0x2e0] sm:$0xff]   ;;  %v2872_v28 = vld [vmem:[%s3684_s1 + $0x258] sm:$0xff]   ;;  %v2879_v35 = vld [vmem:[%s3684_s1 + $0x290] sm:$0xff]  }
  0x1e   :  { %2525 = vmatprep.subr.bf16.mxu1 %v2813_v29  ;;  %v2871_v27 = vld [vmem:[%s3684_s1 + $0x2a0] sm:$0xff]   ;;  %v2873_v29 = vld [vmem:[%s3684_s1 + $0x218] sm:$0xff]   ;;  %v2881_v37 = vld [vmem:[%s3684_s1 + $0x208] sm:$0xff]  }
  0x1f   :  { %v2911_v5 = vld [vmem:[%s3684_s1 + $0x398] sm:$0xff]   ;;  %v2916_v10 = vld [vmem:[%s3684_s1 + $0x348] sm:$0xff]  }
  0x20   :  { %2504 = vmatpush3.bf16.msra.mxu0 %v2814_v30  ;;  %v2874_v30 = vld [vmem:[%s3684_s1 + $0x2d8] sm:$0xff]  }
  0x21   :  { %2526 = vmatpush3.bf16.msra.mxu1 %v2815_v31  ;;  %2533 = vmatprep.subr.bf16.mxu0 %v2820_v38  ;;  %v2875_v31 = vld [vmem:[%s3684_s1 + $0x298] sm:$0xff]   ;;  %v2882_v38 = vld [vmem:[%s3684_s1 + $0x2c8] sm:$0xff]  }
  0x22   :  { %2555 = vmatprep.subr.bf16.mxu1 %v2822_v40  ;;  %v2884_v40 = vld [vmem:[%s3684_s1 + $0x240] sm:$0xff]  }
  0x23   :  { %1752 = vmatmul.mubr.bf16.vlgmr.msra.gmra.mxu0 %v2262_v34  ;;  %v2878_v34 = vld [vmem:[%s3684_s1 + $0x2d0] sm:$0xff]  }
  0x24   :  { %1792 = vmatmul.mubr.bf16.vlgmr.msra.gmra.mxu1 %v2264_v36  ;;  %2534 = vmatpush3.bf16.msra.mxu0 %v2821_v39  ;;  %v2880_v36 = vld [vmem:[%s3684_s1 + $0x248] sm:$0xff]  }
  0x25   :  { %2556 = vmatpush3.bf16.msra.mxu1 %v2823_v41  ;;  %2535 = vmatprep.subr.bf16.mxu0 %v2824_v42  ;;  %v2883_v39 = vld [vmem:[%s3684_s1 + $0x288] sm:$0xff]   ;;  %v2885_v41 = vld [vmem:[%s3684_s1 + $0x200] sm:$0xff]  }
  0x26   :  { %2557 = vmatprep.subr.bf16.mxu1 %v2826_v44  ;;  %1831 = vmatprep.mubr.bf16.mxu0 %v2267_v6  ;;  %v2886_v42 = vld [vmem:[%s3684_s1 + $0x2c0] sm:$0xff]   ;;  %v2912_v6 = vld [vmem:[%s3684_s1 + $0x350] sm:$0xff]  }
  0x27   :  { %1871 = vmatprep.mubr.bf16.mxu1 %v2269_v12  ;;  %v2918_v12 = vld [vmem:[%s3684_s1 + $0x3c8] sm:$0xff]  }
  0x28   :  { %2536 = vmatpush3.bf16.msra.mxu0 %v2825_v43  ;;  %v22_v43 = vld [vmem:[%s3685_s0 + $0x20] sm:$0xff] }
  0x29   :  { %2558 = vmatpush3.bf16.msra.mxu1 %v2827_v45  ;;  %2537 = vmatprep.subr.bf16.mxu0 %v2828_v46  ;;  %v2270_v44 = vcombine.low %v22_v43, %v22_v43  ;;  %v2271_v45 = vcombine.high %v22_v43, %v22_v43  ;;  %v2889_v46 = vld [vmem:[%s3684_s1 + $0x280] sm:$0xff]   ;;  %v2947_v43 = vld [vmem:[%s3684_s1 + $0x498] sm:$0xff]  }
  0x2a   :  { %2559 = vmatprep.subr.bf16.mxu1 %v2830_v48  ;;  %v23_v48 = vld [vmem:[%s3685_s0 + $0x28] sm:$0xff] }
  0x2c   :  { %2538 = vmatpush3.bf16.msra.mxu0 %v2829_v47  ;;  %v2890_v47 = vld [vmem:[%s3684_s1 + $0x378] sm:$0xff]  }
  0x2d   :  { %2560 = vmatpush3.bf16.msra.mxu1 %v2831_v49  ;;  %2539 = vmatprep.subr.bf16.mxu0 %v2832_v50  ;;  %v2272_v49 = vcombine.low %v23_v48, %v23_v48  ;;  %v2273_v50 = vcombine.high %v23_v48, %v23_v48  ;;  %v2952_v48 = vld [vmem:[%s3684_s1 + $0x448] sm:$0xff]  }
  0x2e   :  { %2561 = vmatprep.subr.bf16.mxu1 %v2834_v52  ;;  %v2894_v52 = vld [vmem:[%s3684_s1 + $0x3f8] sm:$0xff]  }
  0x30   :  { %2540 = vmatpush3.bf16.msra.mxu0 %v2833_v51  ;;  %v2893_v51 = vld [vmem:[%s3684_s1 + $0x338] sm:$0xff]  }
  0x31   :  { %2562 = vmatpush3.bf16.msra.mxu1 %v2835_v53  ;;  %2541 = vmatprep.subr.bf16.mxu0 %v2836_v54  ;;  %v2895_v53 = vld [vmem:[%s3684_s1 + $0x3b8] sm:$0xff]   ;;  %v2896_v54 = vld [vmem:[%s3684_s1 + $0x370] sm:$0xff]  }
  0x32   :  { %2563 = vmatprep.subr.bf16.mxu1 %v2838_v56  ;;  %v2898_v56 = vld [vmem:[%s3684_s1 + $0x3f0] sm:$0xff]  }
  0x34   :  { %2542 = vmatpush3.bf16.msra.mxu0 %v2837_v55  ;;  %v2897_v55 = vld [vmem:[%s3684_s1 + $0x330] sm:$0xff]  }
  0x35   :  { %2564 = vmatpush3.bf16.msra.mxu1 %v2839_v57  ;;  %2543 = vmatprep.subr.bf16.mxu0 %v2840_v58  ;;  %v2899_v57 = vld [vmem:[%s3684_s1 + $0x3b0] sm:$0xff]   ;;  %v2900_v58 = vld [vmem:[%s3684_s1 + $0x368] sm:$0xff]  }
  0x36   :  { %2565 = vmatprep.subr.bf16.mxu1 %v2842_v60  ;;  %v2902_v60 = vld [vmem:[%s3684_s1 + $0x3e8] sm:$0xff]  }
  0x38   :  { %2544 = vmatpush3.bf16.msra.mxu0 %v2841_v59  ;;  %v2901_v59 = vld [vmem:[%s3684_s1 + $0x328] sm:$0xff]  }
  0x39   :  { %2566 = vmatpush3.bf16.msra.mxu1 %v2843_v61  ;;  %2545 = vmatprep.subr.bf16.mxu0 %v2844_v62  ;;  %v2903_v61 = vld [vmem:[%s3684_s1 + $0x3a8] sm:$0xff]   ;;  %v2904_v62 = vld [vmem:[%s3684_s1 + $0x360] sm:$0xff]  }
  0x3a   :  { %2567 = vmatprep.subr.bf16.mxu1 %v2846_v0  ;;  %v2906_v0 = vld [vmem:[%s3684_s1 + $0x3e0] sm:$0xff]  }
  0x3c   :  { %2546 = vmatpush3.bf16.msra.mxu0 %v2845_v63  ;;  %v2905_v63 = vld [vmem:[%s3684_s1 + $0x320] sm:$0xff]  }
  0x3d   :  { %2568 = vmatpush3.bf16.msra.mxu1 %v2847_v1  ;;  %2547 = vmatprep.subr.bf16.mxu0 %v2848_v2  ;;  %v2907_v1 = vld [vmem:[%s3684_s1 + $0x3a0] sm:$0xff]   ;;  %v2908_v2 = vld [vmem:[%s3684_s1 + $0x358] sm:$0xff]  }
  0x3e   :  { %2569 = vmatprep.subr.bf16.mxu1 %v2850_v4  ;;  %v2910_v4 = vld [vmem:[%s3684_s1 + $0x3d8] sm:$0xff]  }
  0x40   :  { %2548 = vmatpush3.bf16.msra.mxu0 %v2849_v3  ;;  %v2909_v3 = vld [vmem:[%s3684_s1 + $0x318] sm:$0xff]  }
  0x41   :  { %2570 = vmatpush3.bf16.msra.mxu1 %v2853_v7  ;;  %2577 = vmatprep.subr.bf16.mxu0 %v2854_v9  ;;  %v2913_v7 = vld [vmem:[%s3684_s1 + $0x310] sm:$0xff]  }
  0x42   :  { %2599 = vmatprep.subr.bf16.mxu1 %v2858_v14  ;;  %v2915_v9 = vld [vmem:[%s3684_s1 + $0x390] sm:$0xff]   ;;  %v2920_v14 = vld [vmem:[%s3684_s1 + $0x340] sm:$0xff]  }
  0x43   :  { %1832 = vmatmul.mubr.bf16.vlgmr.msra.gmra.mxu0 %v2266_v8  ;;  %v2914_v8 = vld [vmem:[%s3684_s1 + $0x3d0] sm:$0xff]  }
  0x44   :  { %2578 = vmatpush3.bf16.msra.mxu0 %v2857_v13  ;;  %1872 = vmatmul.mubr.bf16.vlgmr.msra.gmra.mxu1 %v2268_v11  ;;  %v2917_v11 = vld [vmem:[%s3684_s1 + $0x308] sm:$0xff]  }
  0x45   :  { %2600 = vmatpush3.bf16.msra.mxu1 %v2859_v15  ;;  %2579 = vmatprep.subr.bf16.mxu0 %v2860_v16  ;;  %v2919_v13 = vld [vmem:[%s3684_s1 + $0x388] sm:$0xff]   ;;  %v2921_v15 = vld [vmem:[%s3684_s1 + $0x300] sm:$0xff]  }
  0x46   :  { %2601 = vmatprep.subr.bf16.mxu1 %v2862_v18  ;;  %1911 = vmatprep.mubr.bf16.mxu0 %v2271_v45  ;;  %v2922_v16 = vld [vmem:[%s3684_s1 + $0x3c0] sm:$0xff]   ;;  %v2949_v45 = vld [vmem:[%s3684_s1 + $0x410] sm:$0xff]  }
  0x47   :  { %1951 = vmatprep.mubr.bf16.mxu1 %v2273_v50  ;;  %v2954_v50 = vld [vmem:[%s3684_s1 + $0x4c8] sm:$0xff]  }
  0x48   :  { %2580 = vmatpush3.bf16.msra.mxu0 %v2861_v17  ;;  %v24_v17 = vld [vmem:[%s3685_s0 + $0x30] sm:$0xff] }
  0x49   :  { %2602 = vmatpush3.bf16.msra.mxu1 %v2863_v19  ;;  %2581 = vmatprep.subr.bf16.mxu0 %v2864_v20  ;;  %v2274_v18 = vcombine.low %v24_v17, %v24_v17  ;;  %v2275_v19 = vcombine.high %v24_v17, %v24_v17  ;;  %v2925_v20 = vld [vmem:[%s3684_s1 + $0x380] sm:$0xff]   ;;  %v2983_v17 = vld [vmem:[%s3684_s1 + $0x598] sm:$0xff]  }
  0x4a   :  { %2603 = vmatprep.subr.bf16.mxu1 %v2866_v22  ;;  %v25_v22 = vld [vmem:[%s3685_s0 + $0x38] sm:$0xff] }
  0x4c   :  { %2582 = vmatpush3.bf16.msra.mxu0 %v2865_v21  ;;  %v2926_v21 = vld [vmem:[%s3684_s1 + $0x478] sm:$0xff]  }
  0x4d   :  { %2604 = vmatpush3.bf16.msra.mxu1 %v2867_v23  ;;  %2583 = vmatprep.subr.bf16.mxu0 %v2868_v24  ;;  %v2276_v23 = vcombine.low %v25_v22, %v25_v22  ;;  %v2277_v24 = vcombine.high %v25_v22, %v25_v22  ;;  %v2988_v22 = vld [vmem:[%s3684_s1 + $0x548] sm:$0xff]  }
  0x4e   :  { %2605 = vmatprep.subr.bf16.mxu1 %v2870_v26  ;;  %v2930_v26 = vld [vmem:[%s3684_s1 + $0x4f8] sm:$0xff]  }
  0x50   :  { %2584 = vmatpush3.bf16.msra.mxu0 %v2869_v25  ;;  %v2929_v25 = vld [vmem:[%s3684_s1 + $0x438] sm:$0xff]  }
  0x51   :  { %2606 = vmatpush3.bf16.msra.mxu1 %v2871_v27  ;;  %2585 = vmatprep.subr.bf16.mxu0 %v2872_v28  ;;  %v2931_v27 = vld [vmem:[%s3684_s1 + $0x4b8] sm:$0xff]   ;;  %v2932_v28 = vld [vmem:[%s3684_s1 + $0x470] sm:$0xff]  }
  0x52   :  { %2607 = vmatprep.subr.bf16.mxu1 %v2874_v30  ;;  %v2934_v30 = vld [vmem:[%s3684_s1 + $0x4f0] sm:$0xff]  }
  0x54   :  { %2586 = vmatpush3.bf16.msra.mxu0 %v2873_v29  ;;  %v2933_v29 = vld [vmem:[%s3684_s1 + $0x430] sm:$0xff]  }
  0x55   :  { %2608 = vmatpush3.bf16.msra.mxu1 %v2875_v31  ;;  %2587 = vmatprep.subr.bf16.mxu0 %v2876_v32  ;;  %v2935_v31 = vld [vmem:[%s3684_s1 + $0x4b0] sm:$0xff]   ;;  %v2936_v32 = vld [vmem:[%s3684_s1 + $0x468] sm:$0xff]  }
  0x56   :  { %2609 = vmatprep.subr.bf16.mxu1 %v2878_v34  ;;  %v2938_v34 = vld [vmem:[%s3684_s1 + $0x4e8] sm:$0xff]  }
  0x58   :  { %2588 = vmatpush3.bf16.msra.mxu0 %v2877_v33  ;;  %v2937_v33 = vld [vmem:[%s3684_s1 + $0x428] sm:$0xff]  }
  0x59   :  { %2610 = vmatpush3.bf16.msra.mxu1 %v2879_v35  ;;  %2589 = vmatprep.subr.bf16.mxu0 %v2880_v36  ;;  %v2939_v35 = vld [vmem:[%s3684_s1 + $0x4a8] sm:$0xff]   ;;  %v2940_v36 = vld [vmem:[%s3684_s1 + $0x460] sm:$0xff]  }
  0x5a   :  { %2611 = vmatprep.subr.bf16.mxu1 %v2882_v38  ;;  %v2942_v38 = vld [vmem:[%s3684_s1 + $0x4e0] sm:$0xff]  }
  0x5c   :  { %2590 = vmatpush3.bf16.msra.mxu0 %v2881_v37  ;;  %v2941_v37 = vld [vmem:[%s3684_s1 + $0x420] sm:$0xff]  }
  0x5d   :  { %2612 = vmatpush3.bf16.msra.mxu1 %v2883_v39  ;;  %2591 = vmatprep.subr.bf16.mxu0 %v2884_v40  ;;  %v2943_v39 = vld [vmem:[%s3684_s1 + $0x4a0] sm:$0xff]   ;;  %v2944_v40 = vld [vmem:[%s3684_s1 + $0x458] sm:$0xff]  }
  0x5e   :  { %2613 = vmatprep.subr.bf16.mxu1 %v2886_v42  ;;  %v2946_v42 = vld [vmem:[%s3684_s1 + $0x4d8] sm:$0xff]  }
  0x60   :  { %2592 = vmatpush3.bf16.msra.mxu0 %v2885_v41  ;;  %v2945_v41 = vld [vmem:[%s3684_s1 + $0x418] sm:$0xff]  }
  0x61   :  { %2614 = vmatpush3.bf16.msra.mxu1 %v2889_v46  ;;  %2621 = vmatprep.subr.bf16.mxu0 %v2890_v47  ;;  %v2950_v46 = vld [vmem:[%s3684_s1 + $0x4d0] sm:$0xff]  }
  0x62   :  { %2643 = vmatprep.subr.bf16.mxu1 %v2894_v52  ;;  %v2951_v47 = vld [vmem:[%s3684_s1 + $0x490] sm:$0xff]   ;;  %v2956_v52 = vld [vmem:[%s3684_s1 + $0x440] sm:$0xff]  }
  0x63   :  { %1912 = vmatmul.mubr.bf16.vlgmr.msra.gmra.mxu0 %v2270_v44  ;;  %v2948_v44 = vld [vmem:[%s3684_s1 + $0x450] sm:$0xff]  }
  0x64   :  { %2622 = vmatpush3.bf16.msra.mxu0 %v2893_v51  ;;  %1952 = vmatmul.mubr.bf16.vlgmr.msra.gmra.mxu1 %v2272_v49  ;;  %v2953_v49 = vld [vmem:[%s3684_s1 + $0x408] sm:$0xff]  }
  0x65   :  { %2644 = vmatpush3.bf16.msra.mxu1 %v2895_v53  ;;  %2623 = vmatprep.subr.bf16.mxu0 %v2896_v54  ;;  %v2955_v51 = vld [vmem:[%s3684_s1 + $0x488] sm:$0xff]   ;;  %v2957_v53 = vld [vmem:[%s3684_s1 + $0x400] sm:$0xff]  }
  0x66   :  { %2645 = vmatprep.subr.bf16.mxu1 %v2898_v56  ;;  %1991 = vmatprep.mubr.bf16.mxu0 %v2275_v19  ;;  %v2958_v54 = vld [vmem:[%s3684_s1 + $0x4c0] sm:$0xff]   ;;  %v2985_v19 = vld [vmem:[%s3684_s1 + $0x510] sm:$0xff]  }
  0x67   :  { %2031 = vmatprep.mubr.bf16.mxu1 %v2277_v24  ;;  %v2990_v24 = vld [vmem:[%s3684_s1 + $0x5c8] sm:$0xff]  }
  0x68   :  { %2624 = vmatpush3.bf16.msra.mxu0 %v2897_v55  ;;  %v26_v55 = vld [vmem:[%s3685_s0 + $0x40] sm:$0xff] }
  0x69   :  { %2646 = vmatpush3.bf16.msra.mxu1 %v2899_v57  ;;  %2625 = vmatprep.subr.bf16.mxu0 %v2900_v58  ;;  %v2278_v56 = vcombine.low %v26_v55, %v26_v55  ;;  %v2279_v57 = vcombine.high %v26_v55, %v26_v55  ;;  %v2961_v58 = vld [vmem:[%s3684_s1 + $0x480] sm:$0xff]  }
  0x6a   :  { %2647 = vmatprep.subr.bf16.mxu1 %v2902_v60  ;;  %v27_v60 = vld [vmem:[%s3685_s0 + $0x48] sm:$0xff] }
  0x6c   :  { %2626 = vmatpush3.bf16.msra.mxu0 %v2901_v59  ;;  %v2962_v59 = vld [vmem:[%s3684_s1 + $0x578] sm:$0xff]  }
  0x6d   :  { %2648 = vmatpush3.bf16.msra.mxu1 %v2903_v61  ;;  %2627 = vmatprep.subr.bf16.mxu0 %v2904_v62  ;;  %v2280_v61 = vcombine.low %v27_v60, %v27_v60  ;;  %v2281_v62 = vcombine.high %v27_v60, %v27_v60 }
  0x6e   :  { %2649 = vmatprep.subr.bf16.mxu1 %v2906_v0  ;;  %v2966_v0 = vld [vmem:[%s3684_s1 + $0x5f8] sm:$0xff]  }
  0x70   :  { %2628 = vmatpush3.bf16.msra.mxu0 %v2905_v63  ;;  %v2965_v63 = vld [vmem:[%s3684_s1 + $0x538] sm:$0xff]  }
  0x71   :  { %2650 = vmatpush3.bf16.msra.mxu1 %v2907_v1  ;;  %2629 = vmatprep.subr.bf16.mxu0 %v2908_v2  ;;  %v2967_v1 = vld [vmem:[%s3684_s1 + $0x5b8] sm:$0xff]   ;;  %v2968_v2 = vld [vmem:[%s3684_s1 + $0x570] sm:$0xff]  }
  0x72   :  { %2651 = vmatprep.subr.bf16.mxu1 %v2910_v4  ;;  %v2970_v4 = vld [vmem:[%s3684_s1 + $0x5f0] sm:$0xff]  }
  0x74   :  { %2630 = vmatpush3.bf16.msra.mxu0 %v2909_v3  ;;  %v2969_v3 = vld [vmem:[%s3684_s1 + $0x530] sm:$0xff]  }
  0x75   :  { %2652 = vmatpush3.bf16.msra.mxu1 %v2911_v5  ;;  %2631 = vmatprep.subr.bf16.mxu0 %v2912_v6  ;;  %v2971_v5 = vld [vmem:[%s3684_s1 + $0x5b0] sm:$0xff]   ;;  %v2972_v6 = vld [vmem:[%s3684_s1 + $0x568] sm:$0xff]  }
  0x76   :  { %2653 = vmatprep.subr.bf16.mxu1 %v2914_v8  ;;  %v2974_v8 = vld [vmem:[%s3684_s1 + $0x5e8] sm:$0xff]  }
  0x78   :  { %2632 = vmatpush3.bf16.msra.mxu0 %v2913_v7  ;;  %v2973_v7 = vld [vmem:[%s3684_s1 + $0x528] sm:$0xff]  }
  0x79   :  { %2654 = vmatpush3.bf16.msra.mxu1 %v2915_v9  ;;  %2633 = vmatprep.subr.bf16.mxu0 %v2916_v10  ;;  %v2975_v9 = vld [vmem:[%s3684_s1 + $0x5a8] sm:$0xff]   ;;  %v2976_v10 = vld [vmem:[%s3684_s1 + $0x560] sm:$0xff]  }
  0x7a   :  { %2655 = vmatprep.subr.bf16.mxu1 %v2918_v12  ;;  %v2978_v12 = vld [vmem:[%s3684_s1 + $0x5e0] sm:$0xff]  }
  0x7c   :  { %2634 = vmatpush3.bf16.msra.mxu0 %v2917_v11  ;;  %v2977_v11 = vld [vmem:[%s3684_s1 + $0x520] sm:$0xff]  }
  0x7d   :  { %2656 = vmatpush3.bf16.msra.mxu1 %v2919_v13  ;;  %2635 = vmatprep.subr.bf16.mxu0 %v2920_v14  ;;  %v2979_v13 = vld [vmem:[%s3684_s1 + $0x5a0] sm:$0xff]   ;;  %v2980_v14 = vld [vmem:[%s3684_s1 + $0x558] sm:$0xff]  }
  0x7e   :  { %2657 = vmatprep.subr.bf16.mxu1 %v2922_v16  ;;  %v2982_v16 = vld [vmem:[%s3684_s1 + $0x5d8] sm:$0xff]  }
  0x80   :  { %2636 = vmatpush3.bf16.msra.mxu0 %v2921_v15  ;;  %v2981_v15 = vld [vmem:[%s3684_s1 + $0x518] sm:$0xff]  }
  0x81   :  { %2658 = vmatpush3.bf16.msra.mxu1 %v2925_v20  ;;  %2665 = vmatprep.subr.bf16.mxu0 %v2926_v21  ;;  %v2986_v20 = vld [vmem:[%s3684_s1 + $0x5d0] sm:$0xff]  }
  0x82   :  { %2687 = vmatprep.subr.bf16.mxu1 %v2930_v26  ;;  %v2987_v21 = vld [vmem:[%s3684_s1 + $0x590] sm:$0xff]   ;;  %v2992_v26 = vld [vmem:[%s3684_s1 + $0x540] sm:$0xff]  }
  0x83   :  { %1992 = vmatmul.mubr.bf16.vlgmr.msra.gmra.mxu0 %v2274_v18  ;;  %v2984_v18 = vld [vmem:[%s3684_s1 + $0x550] sm:$0xff]  }
  0x84   :  { %2666 = vmatpush3.bf16.msra.mxu0 %v2929_v25  ;;  %2032 = vmatmul.mubr.bf16.vlgmr.msra.gmra.mxu1 %v2276_v23  ;;  %v2989_v23 = vld [vmem:[%s3684_s1 + $0x508] sm:$0xff]  }
  0x85   :  { %2688 = vmatpush3.bf16.msra.mxu1 %v2931_v27  ;;  %2667 = vmatprep.subr.bf16.mxu0 %v2932_v28  ;;  %v2991_v25 = vld [vmem:[%s3684_s1 + $0x588] sm:$0xff]   ;;  %v2993_v27 = vld [vmem:[%s3684_s1 + $0x500] sm:$0xff]  }
  0x86   :  { %2689 = vmatprep.subr.bf16.mxu1 %v2934_v30  ;;  %2071 = vmatprep.mubr.bf16.mxu0 %v2279_v57  ;;  %v2994_v28 = vld [vmem:[%s3684_s1 + $0x5c0] sm:$0xff]  }
  0x87   :  { %2111 = vmatprep.mubr.bf16.mxu1 %v2281_v62 }
  0x88   :  { %2668 = vmatpush3.bf16.msra.mxu0 %v2933_v29  ;;  %v28_v29 = vld [vmem:[%s3685_s0 + $0x50] sm:$0xff] }
  0x89   :  { %2690 = vmatpush3.bf16.msra.mxu1 %v2935_v31  ;;  %2669 = vmatprep.subr.bf16.mxu0 %v2936_v32  ;;  %v2282_v30 = vcombine.low %v28_v29, %v28_v29  ;;  %v2283_v31 = vcombine.high %v28_v29, %v28_v29  ;;  %v2997_v32 = vld [vmem:[%s3684_s1 + $0x580] sm:$0xff]  }
  0x8a   :  { %2691 = vmatprep.subr.bf16.mxu1 %v2938_v34  ;;  %v3009_v34 = vmov 0.0  }
  0x8c   :  { %2670 = vmatpush3.bf16.msra.mxu0 %v2937_v33  ;;  %v29_v33 = vld [vmem:[%s3685_s0 + $0x58] sm:$0xff] }
  0x8d   :  { %2692 = vmatpush3.bf16.msra.mxu1 %v2939_v35  ;;  %2671 = vmatprep.subr.bf16.mxu0 %v2940_v36  ;;  %v2284_v35 = vcombine.low %v29_v33, %v29_v33  ;;  %v2285_v36 = vcombine.high %v29_v33, %v29_v33 }
  0x8e   :  { %2693 = vmatprep.subr.bf16.mxu1 %v2942_v38  ;;  %v3001_v38 = vld [vmem:[%s3684_s1 + $0x630] sm:$0xff]  }
  0x90   :  { %2672 = vmatpush3.bf16.msra.mxu0 %v2941_v37  ;;  %v3000_v37 = vld [vmem:[%s3684_s1 + $0x638] sm:$0xff]  }
  0x91   :  { %2694 = vmatpush3.bf16.msra.mxu1 %v2943_v39  ;;  %2673 = vmatprep.subr.bf16.mxu0 %v2944_v40  ;;  %v3002_v39 = vld [vmem:[%s3684_s1 + $0x628] sm:$0xff]   ;;  %v3003_v40 = vld [vmem:[%s3684_s1 + $0x620] sm:$0xff]  }
  0x92   :  { %2695 = vmatprep.subr.bf16.mxu1 %v2946_v42  ;;  %v3005_v42 = vld [vmem:[%s3684_s1 + $0x610] sm:$0xff]  }
  0x94   :  { %2674 = vmatpush3.bf16.msra.mxu0 %v2945_v41  ;;  %v3004_v41 = vld [vmem:[%s3684_s1 + $0x618] sm:$0xff]  }
  0x95   :  { %2696 = vmatpush3.bf16.msra.mxu1 %v2947_v43  ;;  %2675 = vmatprep.subr.bf16.mxu0 %v2948_v44  ;;  %v3006_v43 = vld [vmem:[%s3684_s1 + $0x608] sm:$0xff]   ;;  %v3007_v44 = vld [vmem:[%s3684_s1 + $0x600] sm:$0xff]  }
  0x96   :  { %2697 = vmatprep.subr.bf16.mxu1 %v2950_v46 }
  0x98   :  { %2676 = vmatpush3.bf16.msra.mxu0 %v2949_v45  ;;  %v3008_v45 = vld [vmem:[%s3685_s0 + $0x60] ss:$0 sps:$4 sm:$0xff]  }
  0x99   :  { %2698 = vmatpush3.bf16.msra.mxu1 %v2951_v47  ;;  %2677 = vmatprep.subr.bf16.mxu0 %v2952_v48 }
  0x9a   :  { %2699 = vmatprep.subr.bf16.mxu1 %v2954_v50 }
  0x9c   :  { %2678 = vmatpush3.bf16.msra.mxu0 %v2953_v49 }
  0x9d   :  { %2700 = vmatpush3.bf16.msra.mxu1 %v2955_v51  ;;  %2679 = vmatprep.subr.bf16.mxu0 %v2956_v52 }
  0x9e   :  { %2701 = vmatprep.subr.bf16.mxu1 %v2958_v54 }
  0xa0   :  { %2680 = vmatpush3.bf16.msra.mxu0 %v2957_v53 }
  0xa1   :  { %2702 = vmatpush3.bf16.msra.mxu1 %v2961_v58  ;;  %2709 = vmatprep.subr.bf16.mxu0 %v2962_v59 }
  0xa2   :  { %2731 = vmatprep.subr.bf16.mxu1 %v2966_v0 }
  0xa3   :  { %2072 = vmatmul.mubr.bf16.vlgmr.msra.gmra.mxu0 %v2278_v56 }
  0xa4   :  { %2710 = vmatpush3.bf16.msra.mxu0 %v2965_v63  ;;  %2112 = vmatmul.mubr.bf16.vlgmr.msra.gmra.mxu1 %v2280_v61 }
  0xa5   :  { %2732 = vmatpush3.bf16.msra.mxu1 %v2967_v1  ;;  %2711 = vmatprep.subr.bf16.mxu0 %v2968_v2 }
  0xa6   :  { %2733 = vmatprep.subr.bf16.mxu1 %v2970_v4  ;;  %2151 = vmatprep.mubr.bf16.mxu0 %v2283_v31 }
  0xa7   :  { %2191 = vmatprep.mubr.bf16.mxu1 %v2285_v36 }
  0xa8   :  { %2712 = vmatpush3.bf16.msra.mxu0 %v2969_v3 }
  0xa9   :  { %2734 = vmatpush3.bf16.msra.mxu1 %v2971_v5  ;;  %2713 = vmatprep.subr.bf16.mxu0 %v2972_v6 }
  0xaa   :  { %2735 = vmatprep.subr.bf16.mxu1 %v2974_v8 }
  0xac   :  { %2714 = vmatpush3.bf16.msra.mxu0 %v2973_v7 }
  0xad   :  { %2736 = vmatpush3.bf16.msra.mxu1 %v2975_v9  ;;  %2715 = vmatprep.subr.bf16.mxu0 %v2976_v10 }
  0xae   :  { %2737 = vmatprep.subr.bf16.mxu1 %v2978_v12 }
  0xb0   :  { %2716 = vmatpush3.bf16.msra.mxu0 %v2977_v11 }
  0xb1   :  { %2738 = vmatpush3.bf16.msra.mxu1 %v2979_v13  ;;  %2717 = vmatprep.subr.bf16.mxu0 %v2980_v14 }
  0xb2   :  { %2739 = vmatprep.subr.bf16.mxu1 %v2982_v16 }
  0xb4   :  { %2718 = vmatpush3.bf16.msra.mxu0 %v2981_v15 }
  0xb5   :  { %2740 = vmatpush3.bf16.msra.mxu1 %v2983_v17  ;;  %2719 = vmatprep.subr.bf16.mxu0 %v2984_v18 }
  0xb6   :  { %2741 = vmatprep.subr.bf16.mxu1 %v2986_v20 }
  0xb8   :  { %2720 = vmatpush3.bf16.msra.mxu0 %v2985_v19 }
  0xb9   :  { %2742 = vmatpush3.bf16.msra.mxu1 %v2987_v21  ;;  %2721 = vmatprep.subr.bf16.mxu0 %v2988_v22 }
  0xba   :  { %2743 = vmatprep.subr.bf16.mxu1 %v2990_v24 }
  0xbc   :  { %2722 = vmatpush3.bf16.msra.mxu0 %v2989_v23 }
  0xbd   :  { %2744 = vmatpush3.bf16.msra.mxu1 %v2991_v25  ;;  %2723 = vmatprep.subr.bf16.mxu0 %v2992_v26 }
  0xbe   :  { %2745 = vmatprep.subr.bf16.mxu1 %v2994_v28 }
  0xc0   :  { %2724 = vmatpush3.bf16.msra.mxu0 %v2993_v27 }
  0xc1   :  { %2762 = vmatprep.subr.bf16.mxu0 %v3009_v34  ;;  %2746 = vmatpush3.bf16.msra.mxu1 %v2997_v32 }
  0xc3   :  { %2152 = vmatmul.mubr.bf16.vlgmr.msra.gmra.mxu0 %v2282_v30 }
  0xc4   :  { %2763 = vmatpush3.bf16.msra.mxu0 %v3000_v37  ;;  %2778 = vmatprep.mubr.msk.bf16.mxu0 %vm3010_vm0, %v3009_v34 }
  0xc5   :  { %2192 = vmatmul.mubr.bf16.vlgmr.msra.gmra.mxu1 %v2284_v35  ;;  %2764 = vmatprep.subr.bf16.mxu0 %v3009_v34 }
  0xc8   :  { %2765 = vmatpush3.bf16.msra.mxu0 %v3001_v38 }
  0xc9   :  { %2766 = vmatprep.subr.bf16.mxu0 %v3009_v34 }
  0xcc   :  { %2767 = vmatpush3.bf16.msra.mxu0 %v3002_v39 }
  0xcd   :  { %2768 = vmatprep.subr.bf16.mxu0 %v3009_v34 }
  0xd0   :  { %2769 = vmatpush3.bf16.msra.mxu0 %v3003_v40 }
  0xd1   :  { %2770 = vmatprep.subr.bf16.mxu0 %v3009_v34 }
  0xd4   :  { %2771 = vmatpush3.bf16.msra.mxu0 %v3004_v41 }
  0xd5   :  { %2772 = vmatprep.subr.bf16.mxu0 %v3009_v34 }
  0xd8   :  { %2773 = vmatpush3.bf16.msra.mxu0 %v3005_v42 }
  0xd9   :  { %2774 = vmatprep.subr.bf16.mxu0 %v3009_v34 }
  0xdc   :  { %2775 = vmatpush3.bf16.msra.mxu0 %v3006_v43 }
  0xdd   :  { %2776 = vmatprep.subr.bf16.mxu0 %v3009_v34 }
  0xe0   :  { %2777 = vmatpush3.bf16.msra.mxu0 %v3007_v44 }
  0xe3   :  { %v2505_v46 = vpop.f32.mrf.mxu0  ;;  %2779 = vmatmul.mubr.bf16.vlgmr.msra.gmra.mxu0 %v3008_v45 }
  0xe4   :  { %v2527_v47 = vpop.f32.mrf.mxu1 }
  0xe5   :  { %v2506_v48 = vpop.f32.mrf.mxu0 }
  0xe6   :  { %v2528_v49 = vpop.f32.mrf.mxu1  ;;  %v2507_v50 = vadd.f32 %v2506_v48, %v2505_v46 }
  0xe7   :  { %v2529_v51 = vadd.f32 %v2528_v49, %v2527_v47  ;;  %v2508_v52 = vpop.f32.mrf.mxu0 }
  0xe8   :  { %v2530_v53 = vpop.f32.mrf.mxu1 }
  0xe9   :  { %v1794_v54 = vadd.f32 %v2529_v51, %v2507_v50  ;;  %v2509_v55 = vpop.f32.mrf.mxu0 }
  0xea   :  { %v2531_v56 = vpop.f32.mrf.mxu1 }
  0xeb   :  { %v2488_v56 = vld [vmem:[%s3687_s3] ss:$0 sm:$0xff] }
 0x103   :  { %v2549_v57 = vpop.f32.mrf.mxu0 }
 0x104   :  { %v2571_v58 = vpop.f32.mrf.mxu1 }
 0x105   :  { %v2550_v59 = vpop.f32.mrf.mxu0 }
 0x106   :  { %v2551_v60 = vadd.f32 %v2550_v59, %v2549_v57  ;;  %v2572_v61 = vpop.f32.mrf.mxu1 }
 0x107   :  { %v2552_v62 = vpop.f32.mrf.mxu0  ;;  %v2573_v63 = vadd.f32 %v2572_v61, %v2571_v58 }
 0x108   :  { %v1834_v0 = vadd.f32 %v2551_v60, %v1794_v54  ;;  %v2574_v1 = vpop.f32.mrf.mxu1  ;;  %v2487_v54 = vld [vmem:[%s3686_s2] ss:$0 sm:$0xff] }
 0x109   :  { %v2553_v2 = vpop.f32.mrf.mxu0 }
 0x10a   :  { %v1874_v3 = vadd.f32 %v2573_v63, %v1834_v0  ;;  %v2575_v4 = vpop.f32.mrf.mxu1 }
 0x123   :  { %v2593_v5 = vpop.f32.mrf.mxu0 }
 0x124   :  { %v2615_v7 = vpop.f32.mrf.mxu1 }
 0x125   :  { %v2594_v6 = vpop.f32.mrf.mxu0 }
 0x126   :  { %v2595_v8 = vadd.f32 %v2594_v6, %v2593_v5  ;;  %v2616_v10 = vpop.f32.mrf.mxu1 }
 0x127   :  { %v2596_v9 = vpop.f32.mrf.mxu0  ;;  %v2617_v12 = vadd.f32 %v2616_v10, %v2615_v7 }
 0x128   :  { %v1914_v11 = vadd.f32 %v2595_v8, %v1874_v3  ;;  %v2618_v14 = vpop.f32.mrf.mxu1 }
 0x129   :  { %v2597_v13 = vpop.f32.mrf.mxu0 }
 0x12a   :  { %v1954_v15 = vadd.f32 %v2617_v12, %v1914_v11  ;;  %v2619_v16 = vpop.f32.mrf.mxu1 }
 0x143   :  { %v2637_v17 = vpop.f32.mrf.mxu0 }
 0x144   :  { %v2659_v19 = vpop.f32.mrf.mxu1 }
 0x145   :  { %v2638_v18 = vpop.f32.mrf.mxu0 }
 0x146   :  { %v2639_v20 = vadd.f32 %v2638_v18, %v2637_v17  ;;  %v2660_v22 = vpop.f32.mrf.mxu1 }
 0x147   :  { %v2640_v21 = vpop.f32.mrf.mxu0  ;;  %v2661_v24 = vadd.f32 %v2660_v22, %v2659_v19 }
 0x148   :  { %v1994_v23 = vadd.f32 %v2639_v20, %v1954_v15  ;;  %v2662_v26 = vpop.f32.mrf.mxu1 }
 0x149   :  { %v2641_v25 = vpop.f32.mrf.mxu0 }
 0x14a   :  { %v2034_v27 = vadd.f32 %v2661_v24, %v1994_v23  ;;  %v2663_v28 = vpop.f32.mrf.mxu1 }
 0x163   :  { %v2681_v29 = vpop.f32.mrf.mxu0 }
 0x164   :  { %v2703_v31 = vpop.f32.mrf.mxu1 }
 0x165   :  { %v2682_v30 = vpop.f32.mrf.mxu0 }
 0x166   :  { %v2704_v33 = vpop.f32.mrf.mxu1  ;;  %v2683_v45 = vadd.f32 %v2682_v30, %v2681_v29 }
 0x167   :  { %v2684_v32 = vpop.f32.mrf.mxu0  ;;  %v2705_v47 = vadd.f32 %v2704_v33, %v2703_v31 }
 0x168   :  { %v2706_v35 = vpop.f32.mrf.mxu1  ;;  %v2074_v46 = vadd.f32 %v2683_v45, %v2034_v27 }
 0x169   :  { %v2685_v34 = vpop.f32.mrf.mxu0 }
 0x16a   :  { %v2707_v36 = vpop.f32.mrf.mxu1  ;;  %v2114_v49 = vadd.f32 %v2705_v47, %v2074_v46 }
 0x183   :  { %v2725_v37 = vpop.f32.mrf.mxu0 }
 0x185   :  { %v2726_v38 = vpop.f32.mrf.mxu0  ;;  %v2747_v39 = vpop.f32.mrf.mxu1 }
 0x186   :  { %v2727_v48 = vadd.f32 %v2726_v38, %v2725_v37 }
 0x187   :  { %v2728_v40 = vpop.f32.mrf.mxu0  ;;  %v2748_v41 = vpop.f32.mrf.mxu1 }
 0x188   :  { %v2154_v50 = vadd.f32 %v2727_v48, %v2114_v49  ;;  %v2749_v51 = vadd.f32 %v2748_v41, %v2747_v39 }
 0x189   :  { %v2729_v42 = vpop.f32.mrf.mxu0  ;;  %v2750_v43 = vpop.f32.mrf.mxu1 }
 0x18a   :  { %v2194_v52 = vadd.f32 %v2749_v51, %v2154_v50 }
 0x18b   :  { %v2751_v44 = vpop.f32.mrf.mxu1 }
 0x1a3   :  { %v2233_v53 = vpop.f32.mrf.mxu0 }
 0x1a4   :  { %v2234_v55 = vadd.f32 %v2233_v53, %v2194_v52 }
 0x1a5   :  { %v2780_v57 = vpop.f32.mrf.mxu0 }
 0x1a6   :  { %v2246_v58 = vmul.f32 %v2487_v54, %v2234_v55 }
 0x1a7   :  { %v2236_v59 = vpop.f32.mrf.mxu0 }
 0x1a8   :  { %v2254_v60 = vadd.f32 %v2488_v56, %v2246_v58 }
 0x1a9   :  { %v2781_v61 = vpop.f32.mrf.mxu0 }
 0x1aa   :  { %v2255_v62 = vmax.f32 %v2254_v60, 0.0 }
 0x1ac   :  { %v2256_v63 = vpack.c.bf16 %v2255_v62, %v2255_v62 }
 0x1ae   :  { %2257 = vst [vmem:[%s3688_s4] sm:$0xf] %v2256_v63 }

// kernel: lednet_forward.120
= control target key start
LH: loop header
LB: loop body
LE: loop exit
PB: predicated region body
PF: predicated region fallthrough
CT: control target
= control target key end

     0   :  { %vm5818_vm0 = vmmov 0   ;;  %s7119_s1 = inlined_call_operand.vmem [shape: bf16[6272,128], index: 1, kind: input, shape index: {}]   ;;  %s7120_s0 = inlined_call_operand.vmem [shape: bf16[8,6272], index: 0, kind: input, shape index: {}]   ;;  %s7121_s2 = inlined_call_operand.vmem [shape: f32[1,128], index: 2, kind: input, shape index: {}]   ;;  %s7122_s3 = inlined_call_operand.vmem [shape: f32[1,128], index: 3, kind: input, shape index: {}]   ;;  %s7123_s4 = inlined_call_operand.vmem [shape: bf16[8,128], index: 4, kind: output, shape index: {}]  }
   0x1   :  { %v5376_v0 = vld [vmem:[%s7119_s1 + $0x78] sm:$0xff]   ;;  %v5380_v4 = vld [vmem:[%s7119_s1 + $0x70] sm:$0xff]   ;;  %v5384_v8 = vld [vmem:[%s7119_s1 + $0x68] sm:$0xff]  }
   0x2   :  { %v5377_v1 = vld [vmem:[%s7119_s1 + $0xf8] sm:$0xff]   ;;  %4817 = vmatprep.subr.bf16.mxu0 %v5376_v0  ;;  %v5381_v5 = vld [vmem:[%s7119_s1 + $0xf0] sm:$0xff]   ;;  %v5385_v9 = vld [vmem:[%s7119_s1 + $0xe8] sm:$0xff]  }
   0x3   :  { %v5378_v2 = vld [vmem:[%s7119_s1 + $0x38] sm:$0xff]   ;;  %4839 = vmatprep.subr.bf16.mxu1 %v5377_v1  ;;  %v5382_v6 = vld [vmem:[%s7119_s1 + $0x30] sm:$0xff]   ;;  %v5386_v10 = vld [vmem:[%s7119_s1 + $0x28] sm:$0xff]  }
   0x4   :  { %v5379_v3 = vld [vmem:[%s7119_s1 + $0xb8] sm:$0xff]   ;;  %4818 = vmatpush3.bf16.msra.mxu0 %v5378_v2  ;;  %v5383_v7 = vld [vmem:[%s7119_s1 + $0xb0] sm:$0xff]   ;;  %v5387_v11 = vld [vmem:[%s7119_s1 + $0xa8] sm:$0xff]  }
   0x5   :  { %4840 = vmatpush3.bf16.msra.mxu1 %v5379_v3  ;;  %4819 = vmatprep.subr.bf16.mxu0 %v5380_v4  ;;  %v5388_v12 = vld [vmem:[%s7119_s1 + $0x60] sm:$0xff]   ;;  %v5392_v16 = vld [vmem:[%s7119_s1 + $0x58] sm:$0xff]   ;;  %v5396_v20 = vld [vmem:[%s7119_s1 + $0x50] sm:$0xff]  }
   0x6   :  { %4841 = vmatprep.subr.bf16.mxu1 %v5381_v5  ;;  %v5389_v13 = vld [vmem:[%s7119_s1 + $0xe0] sm:$0xff]   ;;  %v5393_v17 = vld [vmem:[%s7119_s1 + $0xd8] sm:$0xff]   ;;  %v5397_v21 = vld [vmem:[%s7119_s1 + $0xd0] sm:$0xff]  }
   0x7   :  { %v5390_v14 = vld [vmem:[%s7119_s1 + $0x20] sm:$0xff]   ;;  %v5394_v18 = vld [vmem:[%s7119_s1 + $0x18] sm:$0xff]   ;;  %v5398_v22 = vld [vmem:[%s7119_s1 + $0x10] sm:$0xff]  }
   0x8   :  { %4820 = vmatpush3.bf16.msra.mxu0 %v5382_v6  ;;  %v5391_v15 = vld [vmem:[%s7119_s1 + $0xa0] sm:$0xff]   ;;  %v5395_v19 = vld [vmem:[%s7119_s1 + $0x98] sm:$0xff]   ;;  %v5399_v23 = vld [vmem:[%s7119_s1 + $0x90] sm:$0xff]  }
   0x9   :  { %4842 = vmatpush3.bf16.msra.mxu1 %v5383_v7  ;;  %4821 = vmatprep.subr.bf16.mxu0 %v5384_v8  ;;  %v5400_v24 = vld [vmem:[%s7119_s1 + $0x48] sm:$0xff]   ;;  %v5404_v28 = vld [vmem:[%s7119_s1 + $0x40] sm:$0xff]   ;;  %v5412_v38 = vld [vmem:[%s7119_s1 + $0x178] sm:$0xff]  }
   0xa   :  { %4843 = vmatprep.subr.bf16.mxu1 %v5385_v9  ;;  %v5401_v25 = vld [vmem:[%s7119_s1 + $0xc8] sm:$0xff]   ;;  %v5405_v29 = vld [vmem:[%s7119_s1 + $0xc0] sm:$0xff]   ;;  %v5413_v39 = vld [vmem:[%s7119_s1 + $0x138] sm:$0xff]  }
   0xb   :  { %v5402_v26 = vld [vmem:[%s7119_s1 + $0x8] sm:$0xff]   ;;  %v5406_v30 = vld [vmem:[%s7119_s1] sm:$0xff]   ;;  %v5414_v40 = vld [vmem:[%s7119_s1 + $0x1f8] sm:$0xff]  }
   0xc   :  { %4822 = vmatpush3.bf16.msra.mxu0 %v5386_v10  ;;  %v5403_v27 = vld [vmem:[%s7119_s1 + $0x88] sm:$0xff]   ;;  %v5407_v31 = vld [vmem:[%s7119_s1 + $0x80] sm:$0xff]   ;;  %v5415_v41 = vld [vmem:[%s7119_s1 + $0x1b8] sm:$0xff]  }
   0xd   :  { %4844 = vmatpush3.bf16.msra.mxu1 %v5387_v11  ;;  %4823 = vmatprep.subr.bf16.mxu0 %v5388_v12  ;;  %v18_v32 = vld [vmem:[%s7120_s0] sm:$0xff]  ;;  %v19_v33 = vld [vmem:[%s7120_s0 + $0x8] sm:$0xff]  ;;  %v5416_v42 = vld [vmem:[%s7119_s1 + $0x170] sm:$0xff]  }
   0xe   :  { %4845 = vmatprep.subr.bf16.mxu1 %v5389_v13  ;;  %v4374_v34 = vcombine.low %v18_v32, %v18_v32  ;;  %v4375_v35 = vcombine.high %v18_v32, %v18_v32  ;;  %v4376_v36 = vcombine.low %v19_v33, %v19_v33  ;;  %v4377_v37 = vcombine.high %v19_v33, %v19_v33  ;;  %v5417_v43 = vld [vmem:[%s7119_s1 + $0x130] sm:$0xff]   ;;  %v5420_v46 = vld [vmem:[%s7119_s1 + $0x168] sm:$0xff]   ;;  %v5424_v50 = vld [vmem:[%s7119_s1 + $0x160] sm:$0xff]  }
   0xf   :  { %v5418_v44 = vld [vmem:[%s7119_s1 + $0x1f0] sm:$0xff]   ;;  %v5421_v47 = vld [vmem:[%s7119_s1 + $0x128] sm:$0xff]   ;;  %v5425_v51 = vld [vmem:[%s7119_s1 + $0x120] sm:$0xff]  }
  0x10   :  { %4824 = vmatpush3.bf16.msra.mxu0 %v5390_v14  ;;  %3383 = vmatprep.mubr.bf16.mxu0 %v4375_v35  ;;  %v5419_v45 = vld [vmem:[%s7119_s1 + $0x1b0] sm:$0xff]   ;;  %v5422_v48 = vld [vmem:[%s7119_s1 + $0x1e8] sm:$0xff]   ;;  %v5426_v52 = vld [vmem:[%s7119_s1 + $0x1e0] sm:$0xff]  }
  0x11   :  { %4846 = vmatpush3.bf16.msra.mxu1 %v5391_v15  ;;  %4825 = vmatprep.subr.bf16.mxu0 %v5392_v16  ;;  %v5423_v49 = vld [vmem:[%s7119_s1 + $0x1a8] sm:$0xff]   ;;  %v5427_v53 = vld [vmem:[%s7119_s1 + $0x1a0] sm:$0xff]   ;;  %v5428_v54 = vld [vmem:[%s7119_s1 + $0x158] sm:$0xff]  }
  0x12   :  { %4847 = vmatprep.subr.bf16.mxu1 %v5393_v17  ;;  %3423 = vmatprep.mubr.bf16.mxu1 %v4377_v37  ;;  %v5429_v55 = vld [vmem:[%s7119_s1 + $0x118] sm:$0xff]   ;;  %v5432_v58 = vld [vmem:[%s7119_s1 + $0x150] sm:$0xff]   ;;  %v5436_v62 = vld [vmem:[%s7119_s1 + $0x148] sm:$0xff]  }
  0x13   :  { %v5430_v56 = vld [vmem:[%s7119_s1 + $0x1d8] sm:$0xff]   ;;  %v5433_v59 = vld [vmem:[%s7119_s1 + $0x110] sm:$0xff]   ;;  %v5437_v63 = vld [vmem:[%s7119_s1 + $0x108] sm:$0xff]  }
  0x14   :  { %4826 = vmatpush3.bf16.msra.mxu0 %v5394_v18  ;;  %v5431_v57 = vld [vmem:[%s7119_s1 + $0x198] sm:$0xff]   ;;  %v5434_v60 = vld [vmem:[%s7119_s1 + $0x1d0] sm:$0xff]   ;;  %v5438_v0 = vld [vmem:[%s7119_s1 + $0x1c8] sm:$0xff]  }
  0x15   :  { %4848 = vmatpush3.bf16.msra.mxu1 %v5395_v19  ;;  %4827 = vmatprep.subr.bf16.mxu0 %v5396_v20  ;;  %v5435_v61 = vld [vmem:[%s7119_s1 + $0x190] sm:$0xff]   ;;  %v5439_v1 = vld [vmem:[%s7119_s1 + $0x188] sm:$0xff]   ;;  %v5440_v2 = vld [vmem:[%s7119_s1 + $0x140] sm:$0xff]  }
  0x16   :  { %4849 = vmatprep.subr.bf16.mxu1 %v5397_v21  ;;  %v5441_v3 = vld [vmem:[%s7119_s1 + $0x100] sm:$0xff]   ;;  %v20_v5 = vld [vmem:[%s7120_s0 + $0x10] sm:$0xff]  ;;  %v5446_v9 = vld [vmem:[%s7119_s1 + $0x278] sm:$0xff]  }
  0x17   :  { %v5442_v4 = vld [vmem:[%s7119_s1 + $0x1c0] sm:$0xff]   ;;  %v4379_v6 = vcombine.high %v20_v5, %v20_v5  ;;  %v4378_v8 = vcombine.low %v20_v5, %v20_v5  ;;  %v21_v10 = vld [vmem:[%s7120_s0 + $0x18] sm:$0xff]  ;;  %v5452_v16 = vld [vmem:[%s7119_s1 + $0x270] sm:$0xff]  }
  0x18   :  { %4828 = vmatpush3.bf16.msra.mxu0 %v5398_v22  ;;  %v5445_v7 = vld [vmem:[%s7119_s1 + $0x180] sm:$0xff]   ;;  %v4380_v11 = vcombine.low %v21_v10, %v21_v10  ;;  %v4381_v12 = vcombine.high %v21_v10, %v21_v10  ;;  %v5449_v13 = vld [vmem:[%s7119_s1 + $0x238] sm:$0xff]   ;;  %v5453_v17 = vld [vmem:[%s7119_s1 + $0x230] sm:$0xff]  }
  0x19   :  { %4850 = vmatpush3.bf16.msra.mxu1 %v5399_v23  ;;  %4829 = vmatprep.subr.bf16.mxu0 %v5400_v24  ;;  %v5450_v14 = vld [vmem:[%s7119_s1 + $0x2f8] sm:$0xff]   ;;  %v5454_v18 = vld [vmem:[%s7119_s1 + $0x2f0] sm:$0xff]   ;;  %v5456_v20 = vld [vmem:[%s7119_s1 + $0x268] sm:$0xff]  }
  0x1a   :  { %4851 = vmatprep.subr.bf16.mxu1 %v5401_v25  ;;  %v5451_v15 = vld [vmem:[%s7119_s1 + $0x2b8] sm:$0xff]   ;;  %v5455_v19 = vld [vmem:[%s7119_s1 + $0x2b0] sm:$0xff]   ;;  %v5457_v21 = vld [vmem:[%s7119_s1 + $0x228] sm:$0xff]  }
  0x1b   :  { %v5458_v22 = vld [vmem:[%s7119_s1 + $0x2e8] sm:$0xff]   ;;  %v5460_v24 = vld [vmem:[%s7119_s1 + $0x260] sm:$0xff]   ;;  %v5468_v32 = vld [vmem:[%s7119_s1 + $0x250] sm:$0xff]  }
  0x1c   :  { %4830 = vmatpush3.bf16.msra.mxu0 %v5402_v26  ;;  %v5459_v23 = vld [vmem:[%s7119_s1 + $0x2a8] sm:$0xff]   ;;  %v5461_v25 = vld [vmem:[%s7119_s1 + $0x220] sm:$0xff]   ;;  %v5469_v33 = vld [vmem:[%s7119_s1 + $0x210] sm:$0xff]  }
  0x1d   :  { %4852 = vmatpush3.bf16.msra.mxu1 %v5403_v27  ;;  %4831 = vmatprep.subr.bf16.mxu0 %v5404_v28  ;;  %v5462_v26 = vld [vmem:[%s7119_s1 + $0x2e0] sm:$0xff]   ;;  %v5464_v28 = vld [vmem:[%s7119_s1 + $0x258] sm:$0xff]   ;;  %v5471_v35 = vld [vmem:[%s7119_s1 + $0x290] sm:$0xff]  }
  0x1e   :  { %4853 = vmatprep.subr.bf16.mxu1 %v5405_v29  ;;  %v5463_v27 = vld [vmem:[%s7119_s1 + $0x2a0] sm:$0xff]   ;;  %v5465_v29 = vld [vmem:[%s7119_s1 + $0x218] sm:$0xff]   ;;  %v5473_v37 = vld [vmem:[%s7119_s1 + $0x208] sm:$0xff]  }
  0x1f   :  { %v5503_v5 = vld [vmem:[%s7119_s1 + $0x398] sm:$0xff]   ;;  %v5508_v10 = vld [vmem:[%s7119_s1 + $0x348] sm:$0xff]  }
  0x20   :  { %4832 = vmatpush3.bf16.msra.mxu0 %v5406_v30  ;;  %v5466_v30 = vld [vmem:[%s7119_s1 + $0x2d8] sm:$0xff]  }
  0x21   :  { %4854 = vmatpush3.bf16.msra.mxu1 %v5407_v31  ;;  %4861 = vmatprep.subr.bf16.mxu0 %v5412_v38  ;;  %v5467_v31 = vld [vmem:[%s7119_s1 + $0x298] sm:$0xff]   ;;  %v5474_v38 = vld [vmem:[%s7119_s1 + $0x2c8] sm:$0xff]  }
  0x22   :  { %4883 = vmatprep.subr.bf16.mxu1 %v5414_v40  ;;  %v5476_v40 = vld [vmem:[%s7119_s1 + $0x240] sm:$0xff]  }
  0x23   :  { %3384 = vmatmul.mubr.bf16.vlgmr.msra.gmra.mxu0 %v4374_v34  ;;  %v5470_v34 = vld [vmem:[%s7119_s1 + $0x2d0] sm:$0xff]  }
  0x24   :  { %3424 = vmatmul.mubr.bf16.vlgmr.msra.gmra.mxu1 %v4376_v36  ;;  %4862 = vmatpush3.bf16.msra.mxu0 %v5413_v39  ;;  %v5472_v36 = vld [vmem:[%s7119_s1 + $0x248] sm:$0xff]  }
  0x25   :  { %4884 = vmatpush3.bf16.msra.mxu1 %v5415_v41  ;;  %4863 = vmatprep.subr.bf16.mxu0 %v5416_v42  ;;  %v5475_v39 = vld [vmem:[%s7119_s1 + $0x288] sm:$0xff]   ;;  %v5477_v41 = vld [vmem:[%s7119_s1 + $0x200] sm:$0xff]  }
  0x26   :  { %4885 = vmatprep.subr.bf16.mxu1 %v5418_v44  ;;  %3463 = vmatprep.mubr.bf16.mxu0 %v4379_v6  ;;  %v5478_v42 = vld [vmem:[%s7119_s1 + $0x2c0] sm:$0xff]   ;;  %v5504_v6 = vld [vmem:[%s7119_s1 + $0x350] sm:$0xff]  }
  0x27   :  { %3503 = vmatprep.mubr.bf16.mxu1 %v4381_v12  ;;  %v5510_v12 = vld [vmem:[%s7119_s1 + $0x3c8] sm:$0xff]  }
  0x28   :  { %4864 = vmatpush3.bf16.msra.mxu0 %v5417_v43  ;;  %v22_v43 = vld [vmem:[%s7120_s0 + $0x20] sm:$0xff] }
  0x29   :  { %4886 = vmatpush3.bf16.msra.mxu1 %v5419_v45  ;;  %4865 = vmatprep.subr.bf16.mxu0 %v5420_v46  ;;  %v4382_v44 = vcombine.low %v22_v43, %v22_v43  ;;  %v4383_v45 = vcombine.high %v22_v43, %v22_v43  ;;  %v5481_v46 = vld [vmem:[%s7119_s1 + $0x280] sm:$0xff]   ;;  %v5539_v43 = vld [vmem:[%s7119_s1 + $0x498] sm:$0xff]  }
  0x2a   :  { %4887 = vmatprep.subr.bf16.mxu1 %v5422_v48  ;;  %v23_v48 = vld [vmem:[%s7120_s0 + $0x28] sm:$0xff] }
  0x2c   :  { %4866 = vmatpush3.bf16.msra.mxu0 %v5421_v47  ;;  %v5482_v47 = vld [vmem:[%s7119_s1 + $0x378] sm:$0xff]  }
  0x2d   :  { %4888 = vmatpush3.bf16.msra.mxu1 %v5423_v49  ;;  %4867 = vmatprep.subr.bf16.mxu0 %v5424_v50  ;;  %v4384_v49 = vcombine.low %v23_v48, %v23_v48  ;;  %v4385_v50 = vcombine.high %v23_v48, %v23_v48  ;;  %v5544_v48 = vld [vmem:[%s7119_s1 + $0x448] sm:$0xff]  }
  0x2e   :  { %4889 = vmatprep.subr.bf16.mxu1 %v5426_v52  ;;  %v5486_v52 = vld [vmem:[%s7119_s1 + $0x3f8] sm:$0xff]  }
  0x30   :  { %4868 = vmatpush3.bf16.msra.mxu0 %v5425_v51  ;;  %v5485_v51 = vld [vmem:[%s7119_s1 + $0x338] sm:$0xff]  }
  0x31   :  { %4890 = vmatpush3.bf16.msra.mxu1 %v5427_v53  ;;  %4869 = vmatprep.subr.bf16.mxu0 %v5428_v54  ;;  %v5487_v53 = vld [vmem:[%s7119_s1 + $0x3b8] sm:$0xff]   ;;  %v5488_v54 = vld [vmem:[%s7119_s1 + $0x370] sm:$0xff]  }
  0x32   :  { %4891 = vmatprep.subr.bf16.mxu1 %v5430_v56  ;;  %v5490_v56 = vld [vmem:[%s7119_s1 + $0x3f0] sm:$0xff]  }
  0x34   :  { %4870 = vmatpush3.bf16.msra.mxu0 %v5429_v55  ;;  %v5489_v55 = vld [vmem:[%s7119_s1 + $0x330] sm:$0xff]  }
  0x35   :  { %4892 = vmatpush3.bf16.msra.mxu1 %v5431_v57  ;;  %4871 = vmatprep.subr.bf16.mxu0 %v5432_v58  ;;  %v5491_v57 = vld [vmem:[%s7119_s1 + $0x3b0] sm:$0xff]   ;;  %v5492_v58 = vld [vmem:[%s7119_s1 + $0x368] sm:$0xff]  }
  0x36   :  { %4893 = vmatprep.subr.bf16.mxu1 %v5434_v60  ;;  %v5494_v60 = vld [vmem:[%s7119_s1 + $0x3e8] sm:$0xff]  }
  0x38   :  { %4872 = vmatpush3.bf16.msra.mxu0 %v5433_v59  ;;  %v5493_v59 = vld [vmem:[%s7119_s1 + $0x328] sm:$0xff]  }
  0x39   :  { %4894 = vmatpush3.bf16.msra.mxu1 %v5435_v61  ;;  %4873 = vmatprep.subr.bf16.mxu0 %v5436_v62  ;;  %v5495_v61 = vld [vmem:[%s7119_s1 + $0x3a8] sm:$0xff]   ;;  %v5496_v62 = vld [vmem:[%s7119_s1 + $0x360] sm:$0xff]  }
  0x3a   :  { %4895 = vmatprep.subr.bf16.mxu1 %v5438_v0  ;;  %v5498_v0 = vld [vmem:[%s7119_s1 + $0x3e0] sm:$0xff]  }
  0x3c   :  { %4874 = vmatpush3.bf16.msra.mxu0 %v5437_v63  ;;  %v5497_v63 = vld [vmem:[%s7119_s1 + $0x320] sm:$0xff]  }
  0x3d   :  { %4896 = vmatpush3.bf16.msra.mxu1 %v5439_v1  ;;  %4875 = vmatprep.subr.bf16.mxu0 %v5440_v2  ;;  %v5499_v1 = vld [vmem:[%s7119_s1 + $0x3a0] sm:$0xff]   ;;  %v5500_v2 = vld [vmem:[%s7119_s1 + $0x358] sm:$0xff]  }
  0x3e   :  { %4897 = vmatprep.subr.bf16.mxu1 %v5442_v4  ;;  %v5502_v4 = vld [vmem:[%s7119_s1 + $0x3d8] sm:$0xff]  }
  0x40   :  { %4876 = vmatpush3.bf16.msra.mxu0 %v5441_v3  ;;  %v5501_v3 = vld [vmem:[%s7119_s1 + $0x318] sm:$0xff]  }
  0x41   :  { %4898 = vmatpush3.bf16.msra.mxu1 %v5445_v7  ;;  %4905 = vmatprep.subr.bf16.mxu0 %v5446_v9  ;;  %v5505_v7 = vld [vmem:[%s7119_s1 + $0x310] sm:$0xff]  }
  0x42   :  { %4927 = vmatprep.subr.bf16.mxu1 %v5450_v14  ;;  %v5507_v9 = vld [vmem:[%s7119_s1 + $0x390] sm:$0xff]   ;;  %v5512_v14 = vld [vmem:[%s7119_s1 + $0x340] sm:$0xff]  }
  0x43   :  { %3464 = vmatmul.mubr.bf16.vlgmr.msra.gmra.mxu0 %v4378_v8  ;;  %v5506_v8 = vld [vmem:[%s7119_s1 + $0x3d0] sm:$0xff]  }
  0x44   :  { %4906 = vmatpush3.bf16.msra.mxu0 %v5449_v13  ;;  %3504 = vmatmul.mubr.bf16.vlgmr.msra.gmra.mxu1 %v4380_v11  ;;  %v5509_v11 = vld [vmem:[%s7119_s1 + $0x308] sm:$0xff]  }
  0x45   :  { %4928 = vmatpush3.bf16.msra.mxu1 %v5451_v15  ;;  %4907 = vmatprep.subr.bf16.mxu0 %v5452_v16  ;;  %v5511_v13 = vld [vmem:[%s7119_s1 + $0x388] sm:$0xff]   ;;  %v5513_v15 = vld [vmem:[%s7119_s1 + $0x300] sm:$0xff]  }
  0x46   :  { %4929 = vmatprep.subr.bf16.mxu1 %v5454_v18  ;;  %3543 = vmatprep.mubr.bf16.mxu0 %v4383_v45  ;;  %v5514_v16 = vld [vmem:[%s7119_s1 + $0x3c0] sm:$0xff]   ;;  %v5541_v45 = vld [vmem:[%s7119_s1 + $0x410] sm:$0xff]  }
  0x47   :  { %3583 = vmatprep.mubr.bf16.mxu1 %v4385_v50  ;;  %v5546_v50 = vld [vmem:[%s7119_s1 + $0x4c8] sm:$0xff]  }
  0x48   :  { %4908 = vmatpush3.bf16.msra.mxu0 %v5453_v17  ;;  %v24_v17 = vld [vmem:[%s7120_s0 + $0x30] sm:$0xff] }
  0x49   :  { %4930 = vmatpush3.bf16.msra.mxu1 %v5455_v19  ;;  %4909 = vmatprep.subr.bf16.mxu0 %v5456_v20  ;;  %v4386_v18 = vcombine.low %v24_v17, %v24_v17  ;;  %v4387_v19 = vcombine.high %v24_v17, %v24_v17  ;;  %v5517_v20 = vld [vmem:[%s7119_s1 + $0x380] sm:$0xff]   ;;  %v5575_v17 = vld [vmem:[%s7119_s1 + $0x598] sm:$0xff]  }
  0x4a   :  { %4931 = vmatprep.subr.bf16.mxu1 %v5458_v22  ;;  %v25_v22 = vld [vmem:[%s7120_s0 + $0x38] sm:$0xff] }
  0x4c   :  { %4910 = vmatpush3.bf16.msra.mxu0 %v5457_v21  ;;  %v5518_v21 = vld [vmem:[%s7119_s1 + $0x478] sm:$0xff]  }
  0x4d   :  { %4932 = vmatpush3.bf16.msra.mxu1 %v5459_v23  ;;  %4911 = vmatprep.subr.bf16.mxu0 %v5460_v24  ;;  %v4388_v23 = vcombine.low %v25_v22, %v25_v22  ;;  %v4389_v24 = vcombine.high %v25_v22, %v25_v22  ;;  %v5580_v22 = vld [vmem:[%s7119_s1 + $0x548] sm:$0xff]  }
  0x4e   :  { %4933 = vmatprep.subr.bf16.mxu1 %v5462_v26  ;;  %v5522_v26 = vld [vmem:[%s7119_s1 + $0x4f8] sm:$0xff]  }
  0x50   :  { %4912 = vmatpush3.bf16.msra.mxu0 %v5461_v25  ;;  %v5521_v25 = vld [vmem:[%s7119_s1 + $0x438] sm:$0xff]  }
  0x51   :  { %4934 = vmatpush3.bf16.msra.mxu1 %v5463_v27  ;;  %4913 = vmatprep.subr.bf16.mxu0 %v5464_v28  ;;  %v5523_v27 = vld [vmem:[%s7119_s1 + $0x4b8] sm:$0xff]   ;;  %v5524_v28 = vld [vmem:[%s7119_s1 + $0x470] sm:$0xff]  }
  0x52   :  { %4935 = vmatprep.subr.bf16.mxu1 %v5466_v30  ;;  %v5526_v30 = vld [vmem:[%s7119_s1 + $0x4f0] sm:$0xff]  }
  0x54   :  { %4914 = vmatpush3.bf16.msra.mxu0 %v5465_v29  ;;  %v5525_v29 = vld [vmem:[%s7119_s1 + $0x430] sm:$0xff]  }
  0x55   :  { %4936 = vmatpush3.bf16.msra.mxu1 %v5467_v31  ;;  %4915 = vmatprep.subr.bf16.mxu0 %v5468_v32  ;;  %v5527_v31 = vld [vmem:[%s7119_s1 + $0x4b0] sm:$0xff]   ;;  %v5528_v32 = vld [vmem:[%s7119_s1 + $0x468] sm:$0xff]  }
  0x56   :  { %4937 = vmatprep.subr.bf16.mxu1 %v5470_v34  ;;  %v5530_v34 = vld [vmem:[%s7119_s1 + $0x4e8] sm:$0xff]  }
  0x58   :  { %4916 = vmatpush3.bf16.msra.mxu0 %v5469_v33  ;;  %v5529_v33 = vld [vmem:[%s7119_s1 + $0x428] sm:$0xff]  }
  0x59   :  { %4938 = vmatpush3.bf16.msra.mxu1 %v5471_v35  ;;  %4917 = vmatprep.subr.bf16.mxu0 %v5472_v36  ;;  %v5531_v35 = vld [vmem:[%s7119_s1 + $0x4a8] sm:$0xff]   ;;  %v5532_v36 = vld [vmem:[%s7119_s1 + $0x460] sm:$0xff]  }
  0x5a   :  { %4939 = vmatprep.subr.bf16.mxu1 %v5474_v38  ;;  %v5534_v38 = vld [vmem:[%s7119_s1 + $0x4e0] sm:$0xff]  }
  0x5c   :  { %4918 = vmatpush3.bf16.msra.mxu0 %v5473_v37  ;;  %v5533_v37 = vld [vmem:[%s7119_s1 + $0x420] sm:$0xff]  }
  0x5d   :  { %4940 = vmatpush3.bf16.msra.mxu1 %v5475_v39  ;;  %4919 = vmatprep.subr.bf16.mxu0 %v5476_v40  ;;  %v5535_v39 = vld [vmem:[%s7119_s1 + $0x4a0] sm:$0xff]   ;;  %v5536_v40 = vld [vmem:[%s7119_s1 + $0x458] sm:$0xff]  }
  0x5e   :  { %4941 = vmatprep.subr.bf16.mxu1 %v5478_v42  ;;  %v5538_v42 = vld [vmem:[%s7119_s1 + $0x4d8] sm:$0xff]  }
  0x60   :  { %4920 = vmatpush3.bf16.msra.mxu0 %v5477_v41  ;;  %v5537_v41 = vld [vmem:[%s7119_s1 + $0x418] sm:$0xff]  }
  0x61   :  { %4942 = vmatpush3.bf16.msra.mxu1 %v5481_v46  ;;  %4949 = vmatprep.subr.bf16.mxu0 %v5482_v47  ;;  %v5542_v46 = vld [vmem:[%s7119_s1 + $0x4d0] sm:$0xff]  }
  0x62   :  { %4971 = vmatprep.subr.bf16.mxu1 %v5486_v52  ;;  %v5543_v47 = vld [vmem:[%s7119_s1 + $0x490] sm:$0xff]   ;;  %v5548_v52 = vld [vmem:[%s7119_s1 + $0x440] sm:$0xff]  }
  0x63   :  { %3544 = vmatmul.mubr.bf16.vlgmr.msra.gmra.mxu0 %v4382_v44  ;;  %v5540_v44 = vld [vmem:[%s7119_s1 + $0x450] sm:$0xff]  }
  0x64   :  { %4950 = vmatpush3.bf16.msra.mxu0 %v5485_v51  ;;  %3584 = vmatmul.mubr.bf16.vlgmr.msra.gmra.mxu1 %v4384_v49  ;;  %v5545_v49 = vld [vmem:[%s7119_s1 + $0x408] sm:$0xff]  }
  0x65   :  { %4972 = vmatpush3.bf16.msra.mxu1 %v5487_v53  ;;  %4951 = vmatprep.subr.bf16.mxu0 %v5488_v54  ;;  %v5547_v51 = vld [vmem:[%s7119_s1 + $0x488] sm:$0xff]   ;;  %v5549_v53 = vld [vmem:[%s7119_s1 + $0x400] sm:$0xff]  }
  0x66   :  { %4973 = vmatprep.subr.bf16.mxu1 %v5490_v56  ;;  %3623 = vmatprep.mubr.bf16.mxu0 %v4387_v19  ;;  %v5550_v54 = vld [vmem:[%s7119_s1 + $0x4c0] sm:$0xff]   ;;  %v5577_v19 = vld [vmem:[%s7119_s1 + $0x510] sm:$0xff]  }
  0x67   :  { %3663 = vmatprep.mubr.bf16.mxu1 %v4389_v24  ;;  %v5582_v24 = vld [vmem:[%s7119_s1 + $0x5c8] sm:$0xff]  }
  0x68   :  { %4952 = vmatpush3.bf16.msra.mxu0 %v5489_v55  ;;  %v26_v55 = vld [vmem:[%s7120_s0 + $0x40] sm:$0xff] }
  0x69   :  { %4974 = vmatpush3.bf16.msra.mxu1 %v5491_v57  ;;  %4953 = vmatprep.subr.bf16.mxu0 %v5492_v58  ;;  %v4390_v56 = vcombine.low %v26_v55, %v26_v55  ;;  %v4391_v57 = vcombine.high %v26_v55, %v26_v55  ;;  %v5553_v58 = vld [vmem:[%s7119_s1 + $0x480] sm:$0xff]   ;;  %v5611_v55 = vld [vmem:[%s7119_s1 + $0x698] sm:$0xff]  }
  0x6a   :  { %4975 = vmatprep.subr.bf16.mxu1 %v5494_v60  ;;  %v27_v60 = vld [vmem:[%s7120_s0 + $0x48] sm:$0xff] }
  0x6c   :  { %4954 = vmatpush3.bf16.msra.mxu0 %v5493_v59  ;;  %v5554_v59 = vld [vmem:[%s7119_s1 + $0x578] sm:$0xff]  }
  0x6d   :  { %4976 = vmatpush3.bf16.msra.mxu1 %v5495_v61  ;;  %4955 = vmatprep.subr.bf16.mxu0 %v5496_v62  ;;  %v4392_v61 = vcombine.low %v27_v60, %v27_v60  ;;  %v4393_v62 = vcombine.high %v27_v60, %v27_v60  ;;  %v5616_v60 = vld [vmem:[%s7119_s1 + $0x648] sm:$0xff]  }
  0x6e   :  { %4977 = vmatprep.subr.bf16.mxu1 %v5498_v0  ;;  %v5558_v0 = vld [vmem:[%s7119_s1 + $0x5f8] sm:$0xff]  }
  0x70   :  { %4956 = vmatpush3.bf16.msra.mxu0 %v5497_v63  ;;  %v5557_v63 = vld [vmem:[%s7119_s1 + $0x538] sm:$0xff]  }
  0x71   :  { %4978 = vmatpush3.bf16.msra.mxu1 %v5499_v1  ;;  %4957 = vmatprep.subr.bf16.mxu0 %v5500_v2  ;;  %v5559_v1 = vld [vmem:[%s7119_s1 + $0x5b8] sm:$0xff]   ;;  %v5560_v2 = vld [vmem:[%s7119_s1 + $0x570] sm:$0xff]  }
  0x72   :  { %4979 = vmatprep.subr.bf16.mxu1 %v5502_v4  ;;  %v5562_v4 = vld [vmem:[%s7119_s1 + $0x5f0] sm:$0xff]  }
  0x74   :  { %4958 = vmatpush3.bf16.msra.mxu0 %v5501_v3  ;;  %v5561_v3 = vld [vmem:[%s7119_s1 + $0x530] sm:$0xff]  }
  0x75   :  { %4980 = vmatpush3.bf16.msra.mxu1 %v5503_v5  ;;  %4959 = vmatprep.subr.bf16.mxu0 %v5504_v6  ;;  %v5563_v5 = vld [vmem:[%s7119_s1 + $0x5b0] sm:$0xff]   ;;  %v5564_v6 = vld [vmem:[%s7119_s1 + $0x568] sm:$0xff]  }
  0x76   :  { %4981 = vmatprep.subr.bf16.mxu1 %v5506_v8  ;;  %v5566_v8 = vld [vmem:[%s7119_s1 + $0x5e8] sm:$0xff]  }
  0x78   :  { %4960 = vmatpush3.bf16.msra.mxu0 %v5505_v7  ;;  %v5565_v7 = vld [vmem:[%s7119_s1 + $0x528] sm:$0xff]  }
  0x79   :  { %4982 = vmatpush3.bf16.msra.mxu1 %v5507_v9  ;;  %4961 = vmatprep.subr.bf16.mxu0 %v5508_v10  ;;  %v5567_v9 = vld [vmem:[%s7119_s1 + $0x5a8] sm:$0xff]   ;;  %v5568_v10 = vld [vmem:[%s7119_s1 + $0x560] sm:$0xff]  }
  0x7a   :  { %4983 = vmatprep.subr.bf16.mxu1 %v5510_v12  ;;  %v5570_v12 = vld [vmem:[%s7119_s1 + $0x5e0] sm:$0xff]  }
  0x7c   :  { %4962 = vmatpush3.bf16.msra.mxu0 %v5509_v11  ;;  %v5569_v11 = vld [vmem:[%s7119_s1 + $0x520] sm:$0xff]  }
  0x7d   :  { %4984 = vmatpush3.bf16.msra.mxu1 %v5511_v13  ;;  %4963 = vmatprep.subr.bf16.mxu0 %v5512_v14  ;;  %v5571_v13 = vld [vmem:[%s7119_s1 + $0x5a0] sm:$0xff]   ;;  %v5572_v14 = vld [vmem:[%s7119_s1 + $0x558] sm:$0xff]  }
  0x7e   :  { %4985 = vmatprep.subr.bf16.mxu1 %v5514_v16  ;;  %v5574_v16 = vld [vmem:[%s7119_s1 + $0x5d8] sm:$0xff]  }
  0x80   :  { %4964 = vmatpush3.bf16.msra.mxu0 %v5513_v15  ;;  %v5573_v15 = vld [vmem:[%s7119_s1 + $0x518] sm:$0xff]  }
  0x81   :  { %4986 = vmatpush3.bf16.msra.mxu1 %v5517_v20  ;;  %4993 = vmatprep.subr.bf16.mxu0 %v5518_v21  ;;  %v5578_v20 = vld [vmem:[%s7119_s1 + $0x5d0] sm:$0xff]  }
  0x82   :  { %5015 = vmatprep.subr.bf16.mxu1 %v5522_v26  ;;  %v5579_v21 = vld [vmem:[%s7119_s1 + $0x590] sm:$0xff]   ;;  %v5584_v26 = vld [vmem:[%s7119_s1 + $0x540] sm:$0xff]  }
  0x83   :  { %3624 = vmatmul.mubr.bf16.vlgmr.msra.gmra.mxu0 %v4386_v18  ;;  %v5576_v18 = vld [vmem:[%s7119_s1 + $0x550] sm:$0xff]  }
  0x84   :  { %4994 = vmatpush3.bf16.msra.mxu0 %v5521_v25  ;;  %3664 = vmatmul.mubr.bf16.vlgmr.msra.gmra.mxu1 %v4388_v23  ;;  %v5581_v23 = vld [vmem:[%s7119_s1 + $0x508] sm:$0xff]  }
  0x85   :  { %5016 = vmatpush3.bf16.msra.mxu1 %v5523_v27  ;;  %4995 = vmatprep.subr.bf16.mxu0 %v5524_v28  ;;  %v5583_v25 = vld [vmem:[%s7119_s1 + $0x588] sm:$0xff]   ;;  %v5585_v27 = vld [vmem:[%s7119_s1 + $0x500] sm:$0xff]  }
  0x86   :  { %5017 = vmatprep.subr.bf16.mxu1 %v5526_v30  ;;  %3703 = vmatprep.mubr.bf16.mxu0 %v4391_v57  ;;  %v5586_v28 = vld [vmem:[%s7119_s1 + $0x5c0] sm:$0xff]   ;;  %v5613_v57 = vld [vmem:[%s7119_s1 + $0x610] sm:$0xff]  }
  0x87   :  { %3743 = vmatprep.mubr.bf16.mxu1 %v4393_v62  ;;  %v5618_v62 = vld [vmem:[%s7119_s1 + $0x6c8] sm:$0xff]  }
  0x88   :  { %4996 = vmatpush3.bf16.msra.mxu0 %v5525_v29  ;;  %v28_v29 = vld [vmem:[%s7120_s0 + $0x50] sm:$0xff] }
  0x89   :  { %5018 = vmatpush3.bf16.msra.mxu1 %v5527_v31  ;;  %4997 = vmatprep.subr.bf16.mxu0 %v5528_v32  ;;  %v4394_v30 = vcombine.low %v28_v29, %v28_v29  ;;  %v4395_v31 = vcombine.high %v28_v29, %v28_v29  ;;  %v5589_v32 = vld [vmem:[%s7119_s1 + $0x580] sm:$0xff]   ;;  %v5636_v29 = vld [vmem:[%s7119_s1 + $0x768] sm:$0xff]  }
  0x8a   :  { %5019 = vmatprep.subr.bf16.mxu1 %v5530_v34  ;;  %v29_v34 = vld [vmem:[%s7120_s0 + $0x58] sm:$0xff] }
  0x8c   :  { %4998 = vmatpush3.bf16.msra.mxu0 %v5529_v33  ;;  %v5590_v33 = vld [vmem:[%s7119_s1 + $0x678] sm:$0xff]  }
  0x8d   :  { %5020 = vmatpush3.bf16.msra.mxu1 %v5531_v35  ;;  %4999 = vmatprep.subr.bf16.mxu0 %v5532_v36  ;;  %v4396_v35 = vcombine.low %v29_v34, %v29_v34  ;;  %v4397_v36 = vcombine.high %v29_v34, %v29_v34  ;;  %v5641_v34 = vld [vmem:[%s7119_s1 + $0x720] sm:$0xff]  }
  0x8e   :  { %5021 = vmatprep.subr.bf16.mxu1 %v5534_v38  ;;  %v5594_v38 = vld [vmem:[%s7119_s1 + $0x6f8] sm:$0xff]  }
  0x90   :  { %5000 = vmatpush3.bf16.msra.mxu0 %v5533_v37  ;;  %v5593_v37 = vld [vmem:[%s7119_s1 + $0x638] sm:$0xff]  }
  0x91   :  { %5022 = vmatpush3.bf16.msra.mxu1 %v5535_v39  ;;  %5001 = vmatprep.subr.bf16.mxu0 %v5536_v40  ;;  %v5595_v39 = vld [vmem:[%s7119_s1 + $0x6b8] sm:$0xff]   ;;  %v5596_v40 = vld [vmem:[%s7119_s1 + $0x670] sm:$0xff]  }
  0x92   :  { %5023 = vmatprep.subr.bf16.mxu1 %v5538_v42  ;;  %v5598_v42 = vld [vmem:[%s7119_s1 + $0x6f0] sm:$0xff]  }
  0x94   :  { %5002 = vmatpush3.bf16.msra.mxu0 %v5537_v41  ;;  %v5597_v41 = vld [vmem:[%s7119_s1 + $0x630] sm:$0xff]  }
  0x95   :  { %5024 = vmatpush3.bf16.msra.mxu1 %v5539_v43  ;;  %5003 = vmatprep.subr.bf16.mxu0 %v5540_v44  ;;  %v5599_v43 = vld [vmem:[%s7119_s1 + $0x6b0] sm:$0xff]   ;;  %v5600_v44 = vld [vmem:[%s7119_s1 + $0x668] sm:$0xff]  }
  0x96   :  { %5025 = vmatprep.subr.bf16.mxu1 %v5542_v46  ;;  %v5602_v46 = vld [vmem:[%s7119_s1 + $0x6e8] sm:$0xff]  }
  0x98   :  { %5004 = vmatpush3.bf16.msra.mxu0 %v5541_v45  ;;  %v5601_v45 = vld [vmem:[%s7119_s1 + $0x628] sm:$0xff]  }
  0x99   :  { %5026 = vmatpush3.bf16.msra.mxu1 %v5543_v47  ;;  %5005 = vmatprep.subr.bf16.mxu0 %v5544_v48  ;;  %v5603_v47 = vld [vmem:[%s7119_s1 + $0x6a8] sm:$0xff]   ;;  %v5604_v48 = vld [vmem:[%s7119_s1 + $0x660] sm:$0xff]  }
  0x9a   :  { %5027 = vmatprep.subr.bf16.mxu1 %v5546_v50  ;;  %v5606_v50 = vld [vmem:[%s7119_s1 + $0x6e0] sm:$0xff]  }
  0x9c   :  { %5006 = vmatpush3.bf16.msra.mxu0 %v5545_v49  ;;  %v5605_v49 = vld [vmem:[%s7119_s1 + $0x620] sm:$0xff]  }
  0x9d   :  { %5028 = vmatpush3.bf16.msra.mxu1 %v5547_v51  ;;  %5007 = vmatprep.subr.bf16.mxu0 %v5548_v52  ;;  %v5607_v51 = vld [vmem:[%s7119_s1 + $0x6a0] sm:$0xff]   ;;  %v5608_v52 = vld [vmem:[%s7119_s1 + $0x658] sm:$0xff]  }
  0x9e   :  { %5029 = vmatprep.subr.bf16.mxu1 %v5550_v54  ;;  %v5610_v54 = vld [vmem:[%s7119_s1 + $0x6d8] sm:$0xff]  }
  0xa0   :  { %5008 = vmatpush3.bf16.msra.mxu0 %v5549_v53  ;;  %v5609_v53 = vld [vmem:[%s7119_s1 + $0x618] sm:$0xff]  }
  0xa1   :  { %5030 = vmatpush3.bf16.msra.mxu1 %v5553_v58  ;;  %5037 = vmatprep.subr.bf16.mxu0 %v5554_v59  ;;  %v5614_v58 = vld [vmem:[%s7119_s1 + $0x6d0] sm:$0xff]  }
  0xa2   :  { %5059 = vmatprep.subr.bf16.mxu1 %v5558_v0  ;;  %v5615_v59 = vld [vmem:[%s7119_s1 + $0x690] sm:$0xff]   ;;  %v5620_v0 = vld [vmem:[%s7119_s1 + $0x640] sm:$0xff]  }
  0xa3   :  { %3704 = vmatmul.mubr.bf16.vlgmr.msra.gmra.mxu0 %v4390_v56  ;;  %v5612_v56 = vld [vmem:[%s7119_s1 + $0x650] sm:$0xff]  }
  0xa4   :  { %5038 = vmatpush3.bf16.msra.mxu0 %v5557_v63  ;;  %3744 = vmatmul.mubr.bf16.vlgmr.msra.gmra.mxu1 %v4392_v61  ;;  %v5617_v61 = vld [vmem:[%s7119_s1 + $0x608] sm:$0xff]  }
  0xa5   :  { %5060 = vmatpush3.bf16.msra.mxu1 %v5559_v1  ;;  %5039 = vmatprep.subr.bf16.mxu0 %v5560_v2  ;;  %v5619_v63 = vld [vmem:[%s7119_s1 + $0x688] sm:$0xff]   ;;  %v5621_v1 = vld [vmem:[%s7119_s1 + $0x600] sm:$0xff]  }
  0xa6   :  { %5061 = vmatprep.subr.bf16.mxu1 %v5562_v4  ;;  %3783 = vmatprep.mubr.bf16.mxu0 %v4395_v31  ;;  %v5622_v2 = vld [vmem:[%s7119_s1 + $0x6c0] sm:$0xff]   ;;  %v5638_v31 = vld [vmem:[%s7119_s1 + $0x7e8] sm:$0xff]  }
  0xa7   :  { %3823 = vmatprep.mubr.bf16.mxu1 %v4397_v36  ;;  %v5643_v36 = vld [vmem:[%s7119_s1 + $0x7a0] sm:$0xff]  }
  0xa8   :  { %5040 = vmatpush3.bf16.msra.mxu0 %v5561_v3  ;;  %v30_v3 = vld [vmem:[%s7120_s0 + $0x60] sm:$0xff] }
  0xa9   :  { %5062 = vmatpush3.bf16.msra.mxu1 %v5563_v5  ;;  %5041 = vmatprep.subr.bf16.mxu0 %v5564_v6  ;;  %v4398_v4 = vcombine.low %v30_v3, %v30_v3  ;;  %v4399_v5 = vcombine.high %v30_v3, %v30_v3  ;;  %v5625_v6 = vld [vmem:[%s7119_s1 + $0x680] sm:$0xff]   ;;  %v5667_v3 = vld [vmem:[%s7119_s1 + $0x8b8] sm:$0xff]  }
  0xaa   :  { %5063 = vmatprep.subr.bf16.mxu1 %v5566_v8 }
  0xac   :  { %5042 = vmatpush3.bf16.msra.mxu0 %v5565_v7 }
  0xad   :  { %5064 = vmatpush3.bf16.msra.mxu1 %v5567_v9  ;;  %5043 = vmatprep.subr.bf16.mxu0 %v5568_v10  ;;  %v5626_v9 = vld [vmem:[%s7119_s1 + $0x778] sm:$0xff]   ;;  %v31_v10 = vld [vmem:[%s7120_s0 + $0x68] sm:$0xff] }
  0xae   :  { %5065 = vmatprep.subr.bf16.mxu1 %v5570_v12  ;;  %v4401_v12 = vcombine.high %v31_v10, %v31_v10 }
  0xb0   :  { %5044 = vmatpush3.bf16.msra.mxu0 %v5569_v11  ;;  %v4400_v11 = vcombine.low %v31_v10, %v31_v10 }
  0xb1   :  { %5066 = vmatpush3.bf16.msra.mxu1 %v5571_v13  ;;  %5045 = vmatprep.subr.bf16.mxu0 %v5572_v14  ;;  %v5629_v13 = vld [vmem:[%s7119_s1 + $0x738] sm:$0xff]  }
  0xb2   :  { %5067 = vmatprep.subr.bf16.mxu1 %v5574_v16 }
  0xb4   :  { %5046 = vmatpush3.bf16.msra.mxu0 %v5573_v15 }
  0xb5   :  { %5068 = vmatpush3.bf16.msra.mxu1 %v5575_v17  ;;  %5047 = vmatprep.subr.bf16.mxu0 %v5576_v18  ;;  %v5630_v18 = vld [vmem:[%s7119_s1 + $0x7f8] sm:$0xff]  }
  0xb6   :  { %5069 = vmatprep.subr.bf16.mxu1 %v5578_v20 }
  0xb8   :  { %5048 = vmatpush3.bf16.msra.mxu0 %v5577_v19  ;;  %v5631_v19 = vld [vmem:[%s7119_s1 + $0x7b8] sm:$0xff]  }
  0xb9   :  { %5070 = vmatpush3.bf16.msra.mxu1 %v5579_v21  ;;  %5049 = vmatprep.subr.bf16.mxu0 %v5580_v22 }
  0xba   :  { %5071 = vmatprep.subr.bf16.mxu1 %v5582_v24  ;;  %v5633_v24 = vld [vmem:[%s7119_s1 + $0x730] sm:$0xff]  }
  0xbc   :  { %5050 = vmatpush3.bf16.msra.mxu0 %v5581_v23  ;;  %v5632_v23 = vld [vmem:[%s7119_s1 + $0x770] sm:$0xff]  }
  0xbd   :  { %5072 = vmatpush3.bf16.msra.mxu1 %v5583_v25  ;;  %5051 = vmatprep.subr.bf16.mxu0 %v5584_v26 }
  0xbe   :  { %5073 = vmatprep.subr.bf16.mxu1 %v5586_v28  ;;  %v5635_v28 = vld [vmem:[%s7119_s1 + $0x7b0] sm:$0xff]  }
  0xc0   :  { %5052 = vmatpush3.bf16.msra.mxu0 %v5585_v27  ;;  %v5634_v27 = vld [vmem:[%s7119_s1 + $0x7f0] sm:$0xff]  }
  0xc1   :  { %5074 = vmatpush3.bf16.msra.mxu1 %v5589_v32  ;;  %5081 = vmatprep.subr.bf16.mxu0 %v5590_v33  ;;  %v5639_v32 = vld [vmem:[%s7119_s1 + $0x7a8] sm:$0xff]   ;;  %v5640_v33 = vld [vmem:[%s7119_s1 + $0x760] sm:$0xff]  }
  0xc2   :  { %5103 = vmatprep.subr.bf16.mxu1 %v5594_v38  ;;  %v5645_v38 = vld [vmem:[%s7119_s1 + $0x718] sm:$0xff]  }
  0xc3   :  { %3784 = vmatmul.mubr.bf16.vlgmr.msra.gmra.mxu0 %v4394_v30  ;;  %v5637_v30 = vld [vmem:[%s7119_s1 + $0x728] sm:$0xff]  }
  0xc4   :  { %5082 = vmatpush3.bf16.msra.mxu0 %v5593_v37  ;;  %3824 = vmatmul.mubr.bf16.vlgmr.msra.gmra.mxu1 %v4396_v35  ;;  %v5642_v35 = vld [vmem:[%s7119_s1 + $0x7e0] sm:$0xff]   ;;  %v5644_v37 = vld [vmem:[%s7119_s1 + $0x758] sm:$0xff]  }
  0xc5   :  { %5104 = vmatpush3.bf16.msra.mxu1 %v5595_v39  ;;  %5083 = vmatprep.subr.bf16.mxu0 %v5596_v40  ;;  %v5646_v39 = vld [vmem:[%s7119_s1 + $0x7d8] sm:$0xff]  }
  0xc6   :  { %5105 = vmatprep.subr.bf16.mxu1 %v5598_v42  ;;  %3863 = vmatprep.mubr.bf16.mxu0 %v4399_v5  ;;  %v5647_v40 = vld [vmem:[%s7119_s1 + $0x798] sm:$0xff]   ;;  %v5649_v42 = vld [vmem:[%s7119_s1 + $0x710] sm:$0xff]  }
  0xc7   :  { %3903 = vmatprep.mubr.bf16.mxu1 %v4401_v12  ;;  %v5670_v12 = vld [vmem:[%s7119_s1 + $0x8f0] sm:$0xff]  }
  0xc8   :  { %5084 = vmatpush3.bf16.msra.mxu0 %v5597_v41  ;;  %v5648_v41 = vld [vmem:[%s7119_s1 + $0x750] sm:$0xff]  }
  0xc9   :  { %5106 = vmatpush3.bf16.msra.mxu1 %v5599_v43  ;;  %5085 = vmatprep.subr.bf16.mxu0 %v5600_v44  ;;  %v5650_v43 = vld [vmem:[%s7119_s1 + $0x7d0] sm:$0xff]  }
  0xca   :  { %5107 = vmatprep.subr.bf16.mxu1 %v5602_v46  ;;  %v5651_v44 = vld [vmem:[%s7119_s1 + $0x790] sm:$0xff]   ;;  %v5653_v46 = vld [vmem:[%s7119_s1 + $0x708] sm:$0xff]  }
  0xcc   :  { %5086 = vmatpush3.bf16.msra.mxu0 %v5601_v45  ;;  %v5652_v45 = vld [vmem:[%s7119_s1 + $0x748] sm:$0xff]  }
  0xcd   :  { %5108 = vmatpush3.bf16.msra.mxu1 %v5603_v47  ;;  %5087 = vmatprep.subr.bf16.mxu0 %v5604_v48  ;;  %v5654_v47 = vld [vmem:[%s7119_s1 + $0x7c8] sm:$0xff]  }
  0xce   :  { %5109 = vmatprep.subr.bf16.mxu1 %v5606_v50  ;;  %v5655_v48 = vld [vmem:[%s7119_s1 + $0x788] sm:$0xff]   ;;  %v5657_v50 = vld [vmem:[%s7119_s1 + $0x700] sm:$0xff]  }
  0xd0   :  { %5088 = vmatpush3.bf16.msra.mxu0 %v5605_v49  ;;  %v5656_v49 = vld [vmem:[%s7119_s1 + $0x740] sm:$0xff]  }
  0xd1   :  { %5110 = vmatpush3.bf16.msra.mxu1 %v5607_v51  ;;  %5089 = vmatprep.subr.bf16.mxu0 %v5608_v52  ;;  %v5658_v51 = vld [vmem:[%s7119_s1 + $0x7c0] sm:$0xff]   ;;  %v32_v52 = vld [vmem:[%s7120_s0 + $0x70] sm:$0xff] }
  0xd2   :  { %5111 = vmatprep.subr.bf16.mxu1 %v5610_v54  ;;  %v4403_v54 = vcombine.high %v32_v52, %v32_v52 }
  0xd4   :  { %5090 = vmatpush3.bf16.msra.mxu0 %v5609_v53  ;;  %v4402_v53 = vcombine.low %v32_v52, %v32_v52  ;;  %v5703_v52 = vld [vmem:[%s7119_s1 + $0x9b8] sm:$0xff]  }
  0xd5   :  { %5112 = vmatpush3.bf16.msra.mxu1 %v5611_v55  ;;  %5091 = vmatprep.subr.bf16.mxu0 %v5612_v56  ;;  %v5661_v55 = vld [vmem:[%s7119_s1 + $0x780] sm:$0xff]  }
  0xd6   :  { %5113 = vmatprep.subr.bf16.mxu1 %v5614_v58  ;;  %v33_v58 = vld [vmem:[%s7120_s0 + $0x78] sm:$0xff] }
  0xd8   :  { %5092 = vmatpush3.bf16.msra.mxu0 %v5613_v57  ;;  %v5662_v57 = vld [vmem:[%s7119_s1 + $0x878] sm:$0xff]  }
  0xd9   :  { %5114 = vmatpush3.bf16.msra.mxu1 %v5615_v59  ;;  %5093 = vmatprep.subr.bf16.mxu0 %v5616_v60  ;;  %v4404_v60 = vcombine.low %v33_v58, %v33_v58 }
  0xda   :  { %5115 = vmatprep.subr.bf16.mxu1 %v5618_v62  ;;  %v5665_v62 = vld [vmem:[%s7119_s1 + $0x838] sm:$0xff]  }
  0xdc   :  { %5094 = vmatpush3.bf16.msra.mxu0 %v5617_v61  ;;  %v4405_v61 = vcombine.high %v33_v58, %v33_v58  ;;  %v5705_v58 = vld [vmem:[%s7119_s1 + $0x930] sm:$0xff]  }
  0xdd   :  { %5116 = vmatpush3.bf16.msra.mxu1 %v5619_v63  ;;  %5095 = vmatprep.subr.bf16.mxu0 %v5620_v0 }
  0xde   :  { %5117 = vmatprep.subr.bf16.mxu1 %v5622_v2 }
  0xe0   :  { %5096 = vmatpush3.bf16.msra.mxu0 %v5621_v1  ;;  %v5666_v1 = vld [vmem:[%s7119_s1 + $0x8f8] sm:$0xff]  }
  0xe1   :  { %5118 = vmatpush3.bf16.msra.mxu1 %v5625_v6  ;;  %5125 = vmatprep.subr.bf16.mxu0 %v5626_v9  ;;  %v5669_v9 = vld [vmem:[%s7119_s1 + $0x830] sm:$0xff]  }
  0xe2   :  { %5147 = vmatprep.subr.bf16.mxu1 %v5630_v18  ;;  %v5675_v18 = vld [vmem:[%s7119_s1 + $0x8a8] sm:$0xff]  }
  0xe3   :  { %v4833_v7 = vpop.f32.mrf.mxu0  ;;  %3864 = vmatmul.mubr.bf16.vlgmr.msra.gmra.mxu0 %v4398_v4 }
  0xe4   :  { %v4855_v8 = vpop.f32.mrf.mxu1  ;;  %5126 = vmatpush3.bf16.msra.mxu0 %v5629_v13  ;;  %3904 = vmatmul.mubr.bf16.vlgmr.msra.gmra.mxu1 %v4400_v11 }
  0xe5   :  { %v4834_v14 = vpop.f32.mrf.mxu0  ;;  %5148 = vmatpush3.bf16.msra.mxu1 %v5631_v19  ;;  %5127 = vmatprep.subr.bf16.mxu0 %v5632_v23  ;;  %v5676_v19 = vld [vmem:[%s7119_s1 + $0x860] sm:$0xff]   ;;  %v5680_v23 = vld [vmem:[%s7119_s1 + $0x858] sm:$0xff]  }
  0xe6   :  { %v4856_v15 = vpop.f32.mrf.mxu1  ;;  %v4835_v16 = vadd.f32 %v4834_v14, %v4833_v7  ;;  %5149 = vmatprep.subr.bf16.mxu1 %v5634_v27  ;;  %3943 = vmatprep.mubr.bf16.mxu0 %v4403_v54  ;;  %v5668_v7 = vld [vmem:[%s7119_s1 + $0x870] sm:$0xff]  }
  0xe7   :  { %v4857_v17 = vadd.f32 %v4856_v15, %v4855_v8  ;;  %v4836_v20 = vpop.f32.mrf.mxu0  ;;  %3983 = vmatprep.mubr.bf16.mxu1 %v4405_v61  ;;  %v5671_v14 = vld [vmem:[%s7119_s1 + $0x8b0] sm:$0xff]   ;;  %v5672_v15 = vld [vmem:[%s7119_s1 + $0x868] sm:$0xff]  }
  0xe8   :  { %v4858_v21 = vpop.f32.mrf.mxu1  ;;  %5128 = vmatpush3.bf16.msra.mxu0 %v5633_v24  ;;  %v5677_v20 = vld [vmem:[%s7119_s1 + $0x820] sm:$0xff]   ;;  %v5681_v24 = vld [vmem:[%s7119_s1 + $0x818] sm:$0xff]   ;;  %v5684_v27 = vld [vmem:[%s7119_s1 + $0x850] sm:$0xff]  }
  0xe9   :  { %v6570_v22 = vadd.f32 %v4857_v17, %v4835_v16  ;;  %v4837_v25 = vpop.f32.mrf.mxu0  ;;  %5150 = vmatpush3.bf16.msra.mxu1 %v5635_v28  ;;  %5129 = vmatprep.subr.bf16.mxu0 %v5636_v29  ;;  %v5673_v16 = vld [vmem:[%s7119_s1 + $0x828] sm:$0xff]   ;;  %v5678_v21 = vld [vmem:[%s7119_s1 + $0x8e0] sm:$0xff]   ;;  %v5685_v28 = vld [vmem:[%s7119_s1 + $0x810] sm:$0xff]  }
  0xea   :  { %v4859_v26 = vpop.f32.mrf.mxu1  ;;  %5151 = vmatprep.subr.bf16.mxu1 %v5638_v31  ;;  %v5674_v17 = vld [vmem:[%s7119_s1 + $0x8e8] sm:$0xff]   ;;  %v5682_v25 = vld [vmem:[%s7119_s1 + $0x8d8] sm:$0xff]   ;;  %v5686_v29 = vld [vmem:[%s7119_s1 + $0x8d0] sm:$0xff]  }
  0xeb   :  { %v5683_v26 = vld [vmem:[%s7119_s1 + $0x898] sm:$0xff]   ;;  %v5688_v31 = vld [vmem:[%s7119_s1 + $0x848] sm:$0xff]  }
  0xec   :  { %5130 = vmatpush3.bf16.msra.mxu0 %v5637_v30  ;;  %v5687_v30 = vld [vmem:[%s7119_s1 + $0x890] sm:$0xff]  }
  0xed   :  { %5152 = vmatpush3.bf16.msra.mxu1 %v5639_v32  ;;  %5131 = vmatprep.subr.bf16.mxu0 %v5640_v33  ;;  %v5689_v32 = vld [vmem:[%s7119_s1 + $0x808] sm:$0xff]  }
  0xee   :  { %5153 = vmatprep.subr.bf16.mxu1 %v5642_v35  ;;  %v5690_v33 = vld [vmem:[%s7119_s1 + $0x8c8] sm:$0xff]   ;;  %v5692_v35 = vld [vmem:[%s7119_s1 + $0x840] sm:$0xff]  }
  0xf0   :  { %5132 = vmatpush3.bf16.msra.mxu0 %v5641_v34  ;;  %v5691_v34 = vld [vmem:[%s7119_s1 + $0x888] sm:$0xff]  }
  0xf1   :  { %5154 = vmatpush3.bf16.msra.mxu1 %v5643_v36  ;;  %5133 = vmatprep.subr.bf16.mxu0 %v5644_v37  ;;  %v5693_v36 = vld [vmem:[%s7119_s1 + $0x800] sm:$0xff]  }
  0xf2   :  { %5155 = vmatprep.subr.bf16.mxu1 %v5646_v39  ;;  %v5694_v37 = vld [vmem:[%s7119_s1 + $0x8c0] sm:$0xff]  }
  0xf4   :  { %5134 = vmatpush3.bf16.msra.mxu0 %v5645_v38  ;;  %v34_v38 = vld [vmem:[%s7120_s0 + $0x80] sm:$0xff] }
  0xf5   :  { %5156 = vmatpush3.bf16.msra.mxu1 %v5647_v40  ;;  %5135 = vmatprep.subr.bf16.mxu0 %v5648_v41  ;;  %v4406_v39 = vcombine.low %v34_v38, %v34_v38  ;;  %v4407_v40 = vcombine.high %v34_v38, %v34_v38  ;;  %v5697_v41 = vld [vmem:[%s7119_s1 + $0x880] sm:$0xff]  }
  0xf6   :  { %5157 = vmatprep.subr.bf16.mxu1 %v5650_v43  ;;  %v5698_v43 = vld [vmem:[%s7119_s1 + $0x978] sm:$0xff]  }
  0xf8   :  { %5136 = vmatpush3.bf16.msra.mxu0 %v5649_v42 }
  0xf9   :  { %5158 = vmatpush3.bf16.msra.mxu1 %v5651_v44  ;;  %5137 = vmatprep.subr.bf16.mxu0 %v5652_v45  ;;  %v35_v44 = vld [vmem:[%s7120_s0 + $0x88] sm:$0xff] }
  0xfa   :  { %5159 = vmatprep.subr.bf16.mxu1 %v5654_v47  ;;  %v4408_v45 = vcombine.low %v35_v44, %v35_v44  ;;  %v5701_v47 = vld [vmem:[%s7119_s1 + $0x938] sm:$0xff]  }
  0xfc   :  { %5138 = vmatpush3.bf16.msra.mxu0 %v5653_v46  ;;  %v4409_v46 = vcombine.high %v35_v44, %v35_v44 }
  0xfd   :  { %5160 = vmatpush3.bf16.msra.mxu1 %v5655_v48  ;;  %5139 = vmatprep.subr.bf16.mxu0 %v5656_v49 }
  0xfe   :  { %5161 = vmatprep.subr.bf16.mxu1 %v5658_v51  ;;  %v5702_v51 = vld [vmem:[%s7119_s1 + $0x9f8] sm:$0xff]  }
 0x100   :  { %5140 = vmatpush3.bf16.msra.mxu0 %v5657_v50 }
 0x101   :  { %5162 = vmatpush3.bf16.msra.mxu1 %v5661_v55  ;;  %5169 = vmatprep.subr.bf16.mxu0 %v5662_v57  ;;  %v5704_v57 = vld [vmem:[%s7119_s1 + $0x970] sm:$0xff]  }
 0x102   :  { %5191 = vmatprep.subr.bf16.mxu1 %v5666_v1  ;;  %v5708_v1 = vld [vmem:[%s7119_s1 + $0x968] sm:$0xff]  }
 0x103   :  { %v4877_v56 = vpop.f32.mrf.mxu0  ;;  %3944 = vmatmul.mubr.bf16.vlgmr.msra.gmra.mxu0 %v4402_v53 }
 0x104   :  { %v4899_v59 = vpop.f32.mrf.mxu1  ;;  %5170 = vmatpush3.bf16.msra.mxu0 %v5665_v62  ;;  %3984 = vmatmul.mubr.bf16.vlgmr.msra.gmra.mxu1 %v4404_v60  ;;  %v5706_v62 = vld [vmem:[%s7119_s1 + $0x9f0] sm:$0xff]  }
 0x105   :  { %v4878_v63 = vpop.f32.mrf.mxu0  ;;  %5192 = vmatpush3.bf16.msra.mxu1 %v5667_v3  ;;  %5171 = vmatprep.subr.bf16.mxu0 %v5668_v7  ;;  %v5710_v3 = vld [vmem:[%s7119_s1 + $0x9e8] sm:$0xff]   ;;  %v5714_v7 = vld [vmem:[%s7119_s1 + $0x9e0] sm:$0xff]  }
 0x106   :  { %v4879_v0 = vadd.f32 %v4878_v63, %v4877_v56  ;;  %v4900_v2 = vpop.f32.mrf.mxu1  ;;  %5193 = vmatprep.subr.bf16.mxu1 %v5670_v12  ;;  %4023 = vmatprep.mubr.bf16.mxu0 %v4407_v40  ;;  %v5707_v63 = vld [vmem:[%s7119_s1 + $0x9b0] sm:$0xff]   ;;  %v5719_v12 = vld [vmem:[%s7119_s1 + $0x998] sm:$0xff]  }
 0x107   :  { %v4880_v4 = vpop.f32.mrf.mxu0  ;;  %v4901_v5 = vadd.f32 %v4900_v2, %v4899_v59  ;;  %4063 = vmatprep.mubr.bf16.mxu1 %v4409_v46  ;;  %v5709_v2 = vld [vmem:[%s7119_s1 + $0x928] sm:$0xff]  }
 0x108   :  { %v3466_v6 = vadd.f32 %v4879_v0, %v6570_v22  ;;  %v4902_v8 = vpop.f32.mrf.mxu1  ;;  %5172 = vmatpush3.bf16.msra.mxu0 %v5669_v9  ;;  %v5679_v22 = vld [vmem:[%s7119_s1 + $0x8a0] sm:$0xff]   ;;  %v5711_v4 = vld [vmem:[%s7119_s1 + $0x9a8] sm:$0xff]   ;;  %v5716_v9 = vld [vmem:[%s7119_s1 + $0x958] sm:$0xff]  }
 0x109   :  { %v4881_v10 = vpop.f32.mrf.mxu0  ;;  %5194 = vmatpush3.bf16.msra.mxu1 %v5671_v14  ;;  %5173 = vmatprep.subr.bf16.mxu0 %v5672_v15  ;;  %v5715_v8 = vld [vmem:[%s7119_s1 + $0x9a0] sm:$0xff]   ;;  %v5721_v14 = vld [vmem:[%s7119_s1 + $0x910] sm:$0xff]  }
 0x10a   :  { %v6681_v11 = vadd.f32 %v4901_v5, %v3466_v6  ;;  %v4903_v13 = vpop.f32.mrf.mxu1  ;;  %5195 = vmatprep.subr.bf16.mxu1 %v5674_v17  ;;  %v5712_v5 = vld [vmem:[%s7119_s1 + $0x960] sm:$0xff]   ;;  %v5717_v10 = vld [vmem:[%s7119_s1 + $0x918] sm:$0xff]   ;;  %v5722_v15 = vld [vmem:[%s7119_s1 + $0x9d0] sm:$0xff]  }
 0x10b   :  { %v5713_v6 = vld [vmem:[%s7119_s1 + $0x920] sm:$0xff]   ;;  %v5720_v13 = vld [vmem:[%s7119_s1 + $0x950] sm:$0xff]   ;;  %v5724_v17 = vld [vmem:[%s7119_s1 + $0x948] sm:$0xff]  }
 0x10c   :  { %5174 = vmatpush3.bf16.msra.mxu0 %v5673_v16  ;;  %v5723_v16 = vld [vmem:[%s7119_s1 + $0x990] sm:$0xff]  }
 0x10d   :  { %5196 = vmatpush3.bf16.msra.mxu1 %v5675_v18  ;;  %5175 = vmatprep.subr.bf16.mxu0 %v5676_v19  ;;  %v5725_v18 = vld [vmem:[%s7119_s1 + $0x908] sm:$0xff]  }
 0x10e   :  { %5197 = vmatprep.subr.bf16.mxu1 %v5678_v21  ;;  %v5726_v19 = vld [vmem:[%s7119_s1 + $0x9c8] sm:$0xff]   ;;  %v5728_v21 = vld [vmem:[%s7119_s1 + $0x940] sm:$0xff]  }
 0x110   :  { %5176 = vmatpush3.bf16.msra.mxu0 %v5677_v20  ;;  %v5727_v20 = vld [vmem:[%s7119_s1 + $0x988] sm:$0xff]  }
 0x111   :  { %5198 = vmatpush3.bf16.msra.mxu1 %v5679_v22  ;;  %5177 = vmatprep.subr.bf16.mxu0 %v5680_v23  ;;  %v5729_v22 = vld [vmem:[%s7119_s1 + $0x900] sm:$0xff]  }
 0x112   :  { %5199 = vmatprep.subr.bf16.mxu1 %v5682_v25  ;;  %v5730_v23 = vld [vmem:[%s7119_s1 + $0x9c0] sm:$0xff]  }
 0x114   :  { %5178 = vmatpush3.bf16.msra.mxu0 %v5681_v24  ;;  %v36_v24 = vld [vmem:[%s7120_s0 + $0x90] sm:$0xff] }
 0x115   :  { %5200 = vmatpush3.bf16.msra.mxu1 %v5683_v26  ;;  %5179 = vmatprep.subr.bf16.mxu0 %v5684_v27  ;;  %v4410_v26 = vcombine.low %v36_v24, %v36_v24  ;;  %v4411_v27 = vcombine.high %v36_v24, %v36_v24 }
 0x116   :  { %5201 = vmatprep.subr.bf16.mxu1 %v5686_v29  ;;  %v5734_v29 = vld [vmem:[%s7119_s1 + $0xa78] sm:$0xff]  }
 0x118   :  { %5180 = vmatpush3.bf16.msra.mxu0 %v5685_v28  ;;  %v5733_v28 = vld [vmem:[%s7119_s1 + $0x980] sm:$0xff]  }
 0x119   :  { %5202 = vmatpush3.bf16.msra.mxu1 %v5687_v30  ;;  %5181 = vmatprep.subr.bf16.mxu0 %v5688_v31  ;;  %v37_v30 = vld [vmem:[%s7120_s0 + $0x98] sm:$0xff] }
 0x11a   :  { %5203 = vmatprep.subr.bf16.mxu1 %v5690_v33  ;;  %v4412_v33 = vcombine.low %v37_v30, %v37_v30 }
 0x11c   :  { %5182 = vmatpush3.bf16.msra.mxu0 %v5689_v32 }
 0x11d   :  { %5204 = vmatpush3.bf16.msra.mxu1 %v5691_v34  ;;  %5183 = vmatprep.subr.bf16.mxu0 %v5692_v35  ;;  %v4413_v34 = vcombine.high %v37_v30, %v37_v30  ;;  %v5737_v35 = vld [vmem:[%s7119_s1 + $0xa38] sm:$0xff]   ;;  %v5776_v30 = vld [vmem:[%s7119_s1 + $0xb70] sm:$0xff]  }
 0x11e   :  { %5205 = vmatprep.subr.bf16.mxu1 %v5694_v37  ;;  %v5738_v37 = vld [vmem:[%s7119_s1 + $0xaf8] sm:$0xff]  }
 0x120   :  { %5184 = vmatpush3.bf16.msra.mxu0 %v5693_v36 }
 0x121   :  { %5206 = vmatpush3.bf16.msra.mxu1 %v5697_v41  ;;  %5213 = vmatprep.subr.bf16.mxu0 %v5698_v43  ;;  %v5739_v41 = vld [vmem:[%s7119_s1 + $0xab8] sm:$0xff]   ;;  %v5740_v43 = vld [vmem:[%s7119_s1 + $0xa70] sm:$0xff]  }
 0x122   :  { %5235 = vmatprep.subr.bf16.mxu1 %v5702_v51  ;;  %v5744_v51 = vld [vmem:[%s7119_s1 + $0xa68] sm:$0xff]  }
 0x123   :  { %v4921_v42 = vpop.f32.mrf.mxu0  ;;  %4024 = vmatmul.mubr.bf16.vlgmr.msra.gmra.mxu0 %v4406_v39 }
 0x124   :  { %v4943_v49 = vpop.f32.mrf.mxu1  ;;  %5214 = vmatpush3.bf16.msra.mxu0 %v5701_v47  ;;  %4064 = vmatmul.mubr.bf16.vlgmr.msra.gmra.mxu1 %v4408_v45  ;;  %v5741_v47 = vld [vmem:[%s7119_s1 + $0xa30] sm:$0xff]  }
 0x125   :  { %v4922_v48 = vpop.f32.mrf.mxu0  ;;  %5236 = vmatpush3.bf16.msra.mxu1 %v5703_v52  ;;  %5215 = vmatprep.subr.bf16.mxu0 %v5704_v57  ;;  %v5745_v52 = vld [vmem:[%s7119_s1 + $0xa28] sm:$0xff]   ;;  %v5750_v57 = vld [vmem:[%s7119_s1 + $0xae0] sm:$0xff]  }
 0x126   :  { %v4923_v50 = vadd.f32 %v4922_v48, %v4921_v42  ;;  %v4944_v54 = vpop.f32.mrf.mxu1  ;;  %5237 = vmatprep.subr.bf16.mxu1 %v5706_v62  ;;  %4103 = vmatprep.mubr.bf16.mxu0 %v4411_v27  ;;  %v5742_v48 = vld [vmem:[%s7119_s1 + $0xaf0] sm:$0xff]   ;;  %v5755_v62 = vld [vmem:[%s7119_s1 + $0xa98] sm:$0xff]  }
 0x127   :  { %v4924_v53 = vpop.f32.mrf.mxu0  ;;  %v4945_v56 = vadd.f32 %v4944_v54, %v4943_v49  ;;  %4143 = vmatprep.mubr.bf16.mxu1 %v4413_v34  ;;  %v5747_v54 = vld [vmem:[%s7119_s1 + $0xaa8] sm:$0xff]   ;;  %v5775_v27 = vld [vmem:[%s7119_s1 + $0xbb8] sm:$0xff]   ;;  %v5778_v34 = vld [vmem:[%s7119_s1 + $0xbf0] sm:$0xff]  }
 0x128   :  { %v3546_v55 = vadd.f32 %v4923_v50, %v6681_v11  ;;  %v4946_v60 = vpop.f32.mrf.mxu1  ;;  %5216 = vmatpush3.bf16.msra.mxu0 %v5705_v58  ;;  %v5718_v11 = vld [vmem:[%s7119_s1 + $0x9d8] sm:$0xff]   ;;  %v5743_v50 = vld [vmem:[%s7119_s1 + $0xab0] sm:$0xff]   ;;  %v5746_v53 = vld [vmem:[%s7119_s1 + $0xae8] sm:$0xff]  }
 0x129   :  { %v4925_v59 = vpop.f32.mrf.mxu0  ;;  %5238 = vmatpush3.bf16.msra.mxu1 %v5707_v63  ;;  %5217 = vmatprep.subr.bf16.mxu0 %v5708_v1  ;;  %v5751_v58 = vld [vmem:[%s7119_s1 + $0xaa0] sm:$0xff]   ;;  %v5753_v60 = vld [vmem:[%s7119_s1 + $0xa18] sm:$0xff]   ;;  %v5756_v63 = vld [vmem:[%s7119_s1 + $0xa50] sm:$0xff]  }
 0x12a   :  { %v6786_v61 = vadd.f32 %v4945_v56, %v3546_v55  ;;  %v4947_v0 = vpop.f32.mrf.mxu1  ;;  %5239 = vmatprep.subr.bf16.mxu1 %v5710_v3  ;;  %v5748_v55 = vld [vmem:[%s7119_s1 + $0xa60] sm:$0xff]   ;;  %v5752_v59 = vld [vmem:[%s7119_s1 + $0xa58] sm:$0xff]   ;;  %v5758_v1 = vld [vmem:[%s7119_s1 + $0xad0] sm:$0xff]  }
 0x12b   :  { %v5749_v56 = vld [vmem:[%s7119_s1 + $0xa20] sm:$0xff]   ;;  %v5757_v0 = vld [vmem:[%s7119_s1 + $0xa10] sm:$0xff]   ;;  %v5760_v3 = vld [vmem:[%s7119_s1 + $0xa48] sm:$0xff]  }
 0x12c   :  { %5218 = vmatpush3.bf16.msra.mxu0 %v5709_v2  ;;  %v5759_v2 = vld [vmem:[%s7119_s1 + $0xa90] sm:$0xff]  }
 0x12d   :  { %5240 = vmatpush3.bf16.msra.mxu1 %v5711_v4  ;;  %5219 = vmatprep.subr.bf16.mxu0 %v5712_v5  ;;  %v5761_v4 = vld [vmem:[%s7119_s1 + $0xa08] sm:$0xff]  }
 0x12e   :  { %5241 = vmatprep.subr.bf16.mxu1 %v5714_v7  ;;  %v5762_v5 = vld [vmem:[%s7119_s1 + $0xac8] sm:$0xff]   ;;  %v5764_v7 = vld [vmem:[%s7119_s1 + $0xa40] sm:$0xff]  }
 0x130   :  { %5220 = vmatpush3.bf16.msra.mxu0 %v5713_v6  ;;  %v5763_v6 = vld [vmem:[%s7119_s1 + $0xa88] sm:$0xff]  }
 0x131   :  { %5242 = vmatpush3.bf16.msra.mxu1 %v5715_v8  ;;  %5221 = vmatprep.subr.bf16.mxu0 %v5716_v9  ;;  %v5765_v8 = vld [vmem:[%s7119_s1 + $0xa00] sm:$0xff]  }
 0x132   :  { %5243 = vmatprep.subr.bf16.mxu1 %v5718_v11  ;;  %v5766_v9 = vld [vmem:[%s7119_s1 + $0xac0] sm:$0xff]  }
 0x134   :  { %5222 = vmatpush3.bf16.msra.mxu0 %v5717_v10  ;;  %v38_v10 = vld [vmem:[%s7120_s0 + $0xa0] sm:$0xff] }
 0x135   :  { %5244 = vmatpush3.bf16.msra.mxu1 %v5719_v12  ;;  %5223 = vmatprep.subr.bf16.mxu0 %v5720_v13  ;;  %v4414_v12 = vcombine.low %v38_v10, %v38_v10  ;;  %v4415_v13 = vcombine.high %v38_v10, %v38_v10 }
 0x136   :  { %5245 = vmatprep.subr.bf16.mxu1 %v5722_v15  ;;  %v5770_v15 = vld [vmem:[%s7119_s1 + $0xb78] sm:$0xff]  }
 0x138   :  { %5224 = vmatpush3.bf16.msra.mxu0 %v5721_v14  ;;  %v5769_v14 = vld [vmem:[%s7119_s1 + $0xa80] sm:$0xff]  }
 0x139   :  { %5246 = vmatpush3.bf16.msra.mxu1 %v5723_v16  ;;  %5225 = vmatprep.subr.bf16.mxu0 %v5724_v17  ;;  %v39_v17 = vld [vmem:[%s7120_s0 + $0xa8] sm:$0xff] }
 0x13a   :  { %5247 = vmatprep.subr.bf16.mxu1 %v5726_v19 }
 0x13c   :  { %5226 = vmatpush3.bf16.msra.mxu0 %v5725_v18 }
 0x13d   :  { %5248 = vmatpush3.bf16.msra.mxu1 %v5727_v20  ;;  %5227 = vmatprep.subr.bf16.mxu0 %v5728_v21  ;;  %v4416_v20 = vcombine.low %v39_v17, %v39_v17  ;;  %v4417_v21 = vcombine.high %v39_v17, %v39_v17 }
 0x13e   :  { %5249 = vmatprep.subr.bf16.mxu1 %v5730_v23 }
 0x140   :  { %5228 = vmatpush3.bf16.msra.mxu0 %v5729_v22  ;;  %v5773_v22 = vld [vmem:[%s7119_s1 + $0xb38] sm:$0xff]  }
 0x141   :  { %5250 = vmatpush3.bf16.msra.mxu1 %v5733_v28  ;;  %5257 = vmatprep.subr.bf16.mxu0 %v5734_v29 }
 0x142   :  { %5279 = vmatprep.subr.bf16.mxu1 %v5738_v37  ;;  %v5780_v37 = vld [vmem:[%s7119_s1 + $0xb68] sm:$0xff]  }
 0x143   :  { %v4965_v25 = vpop.f32.mrf.mxu0  ;;  %4104 = vmatmul.mubr.bf16.vlgmr.msra.gmra.mxu0 %v4410_v26 }
 0x144   :  { %v4987_v32 = vpop.f32.mrf.mxu1  ;;  %5258 = vmatpush3.bf16.msra.mxu0 %v5737_v35  ;;  %4144 = vmatmul.mubr.bf16.vlgmr.msra.gmra.mxu1 %v4412_v33  ;;  %v5777_v33 = vld [vmem:[%s7119_s1 + $0xb30] sm:$0xff]  }
 0x145   :  { %v4966_v31 = vpop.f32.mrf.mxu0  ;;  %5280 = vmatpush3.bf16.msra.mxu1 %v5739_v41  ;;  %5259 = vmatprep.subr.bf16.mxu0 %v5740_v43  ;;  %v5784_v41 = vld [vmem:[%s7119_s1 + $0xb60] sm:$0xff]  }
 0x146   :  { %v4967_v36 = vadd.f32 %v4966_v31, %v4965_v25  ;;  %v4988_v39 = vpop.f32.mrf.mxu1  ;;  %5281 = vmatprep.subr.bf16.mxu1 %v5742_v48  ;;  %4183 = vmatprep.mubr.bf16.mxu0 %v4415_v13  ;;  %v5774_v25 = vld [vmem:[%s7119_s1 + $0xbf8] sm:$0xff]   ;;  %v5786_v43 = vld [vmem:[%s7119_s1 + $0xbe0] sm:$0xff]   ;;  %v5809_v13 = vld [vmem:[%s7119_s1 + $0xc30] sm:$0xff]  }
 0x147   :  { %v4968_v38 = vpop.f32.mrf.mxu0  ;;  %v4989_v42 = vadd.f32 %v4988_v39, %v4987_v32  ;;  %4223 = vmatprep.mubr.bf16.mxu1 %v4417_v21  ;;  %v5782_v39 = vld [vmem:[%s7119_s1 + $0xbe8] sm:$0xff]   ;;  %v5791_v48 = vld [vmem:[%s7119_s1 + $0xb98] sm:$0xff]   ;;  %v5813_v21 = vld [vmem:[%s7119_s1 + $0xc10] sm:$0xff]  }
 0x148   :  { %v3626_v40 = vadd.f32 %v4967_v36, %v6786_v61  ;;  %v4990_v45 = vpop.f32.mrf.mxu1  ;;  %5260 = vmatpush3.bf16.msra.mxu0 %v5741_v47  ;;  %v5754_v61 = vld [vmem:[%s7119_s1 + $0xad8] sm:$0xff]   ;;  %v5779_v36 = vld [vmem:[%s7119_s1 + $0xbb0] sm:$0xff]   ;;  %v5781_v38 = vld [vmem:[%s7119_s1 + $0xb28] sm:$0xff]  }
 0x149   :  { %v4969_v44 = vpop.f32.mrf.mxu0  ;;  %5282 = vmatpush3.bf16.msra.mxu1 %v5743_v50  ;;  %5261 = vmatprep.subr.bf16.mxu0 %v5744_v51  ;;  %v5788_v45 = vld [vmem:[%s7119_s1 + $0xb58] sm:$0xff]   ;;  %v5793_v50 = vld [vmem:[%s7119_s1 + $0xb10] sm:$0xff]  }
 0x14a   :  { %v6888_v46 = vadd.f32 %v4989_v42, %v3626_v40  ;;  %v4991_v49 = vpop.f32.mrf.mxu1  ;;  %5283 = vmatprep.subr.bf16.mxu1 %v5746_v53  ;;  %v5783_v40 = vld [vmem:[%s7119_s1 + $0xba8] sm:$0xff]   ;;  %v5785_v42 = vld [vmem:[%s7119_s1 + $0xb20] sm:$0xff]   ;;  %v5790_v47 = vld [vmem:[%s7119_s1 + $0xbd8] sm:$0xff]  }
 0x14b   :  { %v5787_v44 = vld [vmem:[%s7119_s1 + $0xba0] sm:$0xff]   ;;  %v5792_v49 = vld [vmem:[%s7119_s1 + $0xb50] sm:$0xff]   ;;  %v5796_v53 = vld [vmem:[%s7119_s1 + $0xb48] sm:$0xff]  }
 0x14c   :  { %5262 = vmatpush3.bf16.msra.mxu0 %v5745_v52  ;;  %v5794_v51 = vld [vmem:[%s7119_s1 + $0xbd0] sm:$0xff]  }
 0x14d   :  { %5284 = vmatpush3.bf16.msra.mxu1 %v5747_v54  ;;  %5263 = vmatprep.subr.bf16.mxu0 %v5748_v55  ;;  %v5795_v52 = vld [vmem:[%s7119_s1 + $0xb90] sm:$0xff]   ;;  %v5797_v54 = vld [vmem:[%s7119_s1 + $0xb08] sm:$0xff]  }
 0x14e   :  { %5285 = vmatprep.subr.bf16.mxu1 %v5750_v57  ;;  %v5798_v55 = vld [vmem:[%s7119_s1 + $0xbc8] sm:$0xff]   ;;  %v5800_v57 = vld [vmem:[%s7119_s1 + $0xb40] sm:$0xff]  }
 0x150   :  { %5264 = vmatpush3.bf16.msra.mxu0 %v5749_v56  ;;  %v5799_v56 = vld [vmem:[%s7119_s1 + $0xb88] sm:$0xff]  }
 0x151   :  { %5286 = vmatpush3.bf16.msra.mxu1 %v5751_v58  ;;  %5265 = vmatprep.subr.bf16.mxu0 %v5752_v59  ;;  %v5801_v58 = vld [vmem:[%s7119_s1 + $0xb00] sm:$0xff]  }
 0x152   :  { %5287 = vmatprep.subr.bf16.mxu1 %v5754_v61  ;;  %v5802_v59 = vld [vmem:[%s7119_s1 + $0xbc0] sm:$0xff]  }
 0x154   :  { %5266 = vmatpush3.bf16.msra.mxu0 %v5753_v60  ;;  %v40_v60 = vld [vmem:[%s7120_s0 + $0xb0] sm:$0xff] }
 0x155   :  { %5288 = vmatpush3.bf16.msra.mxu1 %v5755_v62  ;;  %5267 = vmatprep.subr.bf16.mxu0 %v5756_v63  ;;  %v4418_v62 = vcombine.low %v40_v60, %v40_v60  ;;  %v4419_v63 = vcombine.high %v40_v60, %v40_v60 }
 0x156   :  { %5289 = vmatprep.subr.bf16.mxu1 %v5758_v1  ;;  %v41_v1 = vld [vmem:[%s7120_s0 + $0xb8] sm:$0xff] }
 0x158   :  { %5268 = vmatpush3.bf16.msra.mxu0 %v5757_v0  ;;  %v5805_v0 = vld [vmem:[%s7119_s1 + $0xb80] sm:$0xff]  }
 0x159   :  { %5290 = vmatpush3.bf16.msra.mxu1 %v5759_v2  ;;  %5269 = vmatprep.subr.bf16.mxu0 %v5760_v3  ;;  %v5817_v2 = vmov 0.0   ;;  %v4420_v3 = vcombine.low %v41_v1, %v41_v1 }
 0x15a   :  { %5291 = vmatprep.subr.bf16.mxu1 %v5762_v5  ;;  %v5808_v5 = vld [vmem:[%s7119_s1 + $0xc38] sm:$0xff]  }
 0x15c   :  { %5270 = vmatpush3.bf16.msra.mxu0 %v5761_v4  ;;  %v4421_v4 = vcombine.high %v41_v1, %v41_v1 }
 0x15d   :  { %5292 = vmatpush3.bf16.msra.mxu1 %v5763_v6  ;;  %5271 = vmatprep.subr.bf16.mxu0 %v5764_v7 }
 0x15e   :  { %5293 = vmatprep.subr.bf16.mxu1 %v5766_v9 }
 0x160   :  { %5272 = vmatpush3.bf16.msra.mxu0 %v5765_v8 }
 0x161   :  { %5294 = vmatpush3.bf16.msra.mxu1 %v5769_v14  ;;  %5301 = vmatprep.subr.bf16.mxu0 %v5770_v15 }
 0x162   :  { %5323 = vmatprep.subr.bf16.mxu1 %v5774_v25 }
 0x163   :  { %v5009_v11 = vpop.f32.mrf.mxu0  ;;  %4184 = vmatmul.mubr.bf16.vlgmr.msra.gmra.mxu0 %v4414_v12 }
 0x164   :  { %v5031_v19 = vpop.f32.mrf.mxu1  ;;  %5302 = vmatpush3.bf16.msra.mxu0 %v5773_v22  ;;  %4224 = vmatmul.mubr.bf16.vlgmr.msra.gmra.mxu1 %v4416_v20  ;;  %v5812_v20 = vld [vmem:[%s7119_s1 + $0xc18] sm:$0xff]   ;;  %v5814_v22 = vld [vmem:[%s7119_s1 + $0xc08] sm:$0xff]  }
 0x165   :  { %v5010_v16 = vpop.f32.mrf.mxu0  ;;  %5324 = vmatpush3.bf16.msra.mxu1 %v5775_v27  ;;  %5303 = vmatprep.subr.bf16.mxu0 %v5776_v30 }
 0x166   :  { %v5011_v18 = vadd.f32 %v5010_v16, %v5009_v11  ;;  %v5032_v26 = vpop.f32.mrf.mxu1  ;;  %5325 = vmatprep.subr.bf16.mxu1 %v5778_v34  ;;  %4263 = vmatprep.mubr.bf16.mxu0 %v4419_v63 }
 0x167   :  { %v5012_v23 = vpop.f32.mrf.mxu0  ;;  %v5033_v28 = vadd.f32 %v5032_v26, %v5031_v19  ;;  %4303 = vmatprep.mubr.bf16.mxu1 %v4421_v4  ;;  %v5811_v19 = vld [vmem:[%s7119_s1 + $0xc20] sm:$0xff]  }
 0x168   :  { %v3706_v24 = vadd.f32 %v5011_v18, %v6888_v46  ;;  %v5034_v31 = vpop.f32.mrf.mxu1  ;;  %5304 = vmatpush3.bf16.msra.mxu0 %v5777_v33  ;;  %v5789_v46 = vld [vmem:[%s7119_s1 + $0xb18] sm:$0xff]   ;;  %v5810_v18 = vld [vmem:[%s7119_s1 + $0xc28] sm:$0xff]   ;;  %v5815_v23 = vld [vmem:[%s7119_s1 + $0xc00] sm:$0xff]  }
 0x169   :  { %v5013_v29 = vpop.f32.mrf.mxu0  ;;  %5326 = vmatpush3.bf16.msra.mxu1 %v5779_v36  ;;  %5305 = vmatprep.subr.bf16.mxu0 %v5780_v37 }
 0x16a   :  { %v6993_v32 = vadd.f32 %v5033_v28, %v3706_v24  ;;  %v5035_v35 = vpop.f32.mrf.mxu1  ;;  %5327 = vmatprep.subr.bf16.mxu1 %v5782_v39  ;;  %v5816_v24 = vld [vmem:[%s7120_s0 + $0xc0] ss:$0 sps:$4 sm:$0xff]  }
 0x16c   :  { %5306 = vmatpush3.bf16.msra.mxu0 %v5781_v38 }
 0x16d   :  { %5328 = vmatpush3.bf16.msra.mxu1 %v5783_v40  ;;  %5307 = vmatprep.subr.bf16.mxu0 %v5784_v41 }
 0x16e   :  { %5329 = vmatprep.subr.bf16.mxu1 %v5786_v43 }
 0x170   :  { %5308 = vmatpush3.bf16.msra.mxu0 %v5785_v42 }
 0x171   :  { %5330 = vmatpush3.bf16.msra.mxu1 %v5787_v44  ;;  %5309 = vmatprep.subr.bf16.mxu0 %v5788_v45 }
 0x172   :  { %5331 = vmatprep.subr.bf16.mxu1 %v5790_v47 }
 0x174   :  { %5310 = vmatpush3.bf16.msra.mxu0 %v5789_v46 }
 0x175   :  { %5332 = vmatpush3.bf16.msra.mxu1 %v5791_v48  ;;  %5311 = vmatprep.subr.bf16.mxu0 %v5792_v49 }
 0x176   :  { %5333 = vmatprep.subr.bf16.mxu1 %v5794_v51 }
 0x178   :  { %5312 = vmatpush3.bf16.msra.mxu0 %v5793_v50 }
 0x179   :  { %5334 = vmatpush3.bf16.msra.mxu1 %v5795_v52  ;;  %5313 = vmatprep.subr.bf16.mxu0 %v5796_v53 }
 0x17a   :  { %5335 = vmatprep.subr.bf16.mxu1 %v5798_v55 }
 0x17c   :  { %5314 = vmatpush3.bf16.msra.mxu0 %v5797_v54 }
 0x17d   :  { %5336 = vmatpush3.bf16.msra.mxu1 %v5799_v56  ;;  %5315 = vmatprep.subr.bf16.mxu0 %v5800_v57 }
 0x17e   :  { %5337 = vmatprep.subr.bf16.mxu1 %v5802_v59 }
 0x180   :  { %5316 = vmatpush3.bf16.msra.mxu0 %v5801_v58 }
 0x181   :  { %5354 = vmatprep.subr.bf16.mxu0 %v5817_v2  ;;  %5338 = vmatpush3.bf16.msra.mxu1 %v5805_v0 }
 0x183   :  { %v5053_v61 = vpop.f32.mrf.mxu0  ;;  %4264 = vmatmul.mubr.bf16.vlgmr.msra.gmra.mxu0 %v4418_v62 }
 0x184   :  { %v5075_v7 = vpop.f32.mrf.mxu1  ;;  %5355 = vmatpush3.bf16.msra.mxu0 %v5808_v5  ;;  %5370 = vmatprep.mubr.msk.bf16.mxu0 %vm5818_vm0, %v5817_v2 }
 0x185   :  { %v5054_v6 = vpop.f32.mrf.mxu0  ;;  %4304 = vmatmul.mubr.bf16.vlgmr.msra.gmra.mxu1 %v4420_v3  ;;  %5356 = vmatprep.subr.bf16.mxu0 %v5817_v2 }
 0x186   :  { %v5055_v8 = vadd.f32 %v5054_v6, %v5053_v61  ;;  %v5076_v10 = vpop.f32.mrf.mxu1 }
 0x187   :  { %v5056_v9 = vpop.f32.mrf.mxu0  ;;  %v5077_v12 = vadd.f32 %v5076_v10, %v5075_v7 }
 0x188   :  { %v3786_v11 = vadd.f32 %v5055_v8, %v6993_v32  ;;  %v5078_v15 = vpop.f32.mrf.mxu1  ;;  %5357 = vmatpush3.bf16.msra.mxu0 %v5809_v13 }
 0x189   :  { %v5057_v14 = vpop.f32.mrf.mxu0  ;;  %5358 = vmatprep.subr.bf16.mxu0 %v5817_v2 }
 0x18a   :  { %v3826_v16 = vadd.f32 %v5077_v12, %v3786_v11  ;;  %v5079_v17 = vpop.f32.mrf.mxu1 }
 0x18c   :  { %5359 = vmatpush3.bf16.msra.mxu0 %v5810_v18 }
 0x18d   :  { %5360 = vmatprep.subr.bf16.mxu0 %v5817_v2 }
 0x190   :  { %5361 = vmatpush3.bf16.msra.mxu0 %v5811_v19 }
 0x191   :  { %5362 = vmatprep.subr.bf16.mxu0 %v5817_v2 }
 0x194   :  { %5363 = vmatpush3.bf16.msra.mxu0 %v5812_v20 }
 0x195   :  { %5364 = vmatprep.subr.bf16.mxu0 %v5817_v2 }
 0x198   :  { %5365 = vmatpush3.bf16.msra.mxu0 %v5813_v21 }
 0x199   :  { %5366 = vmatprep.subr.bf16.mxu0 %v5817_v2 }
 0x19c   :  { %5367 = vmatpush3.bf16.msra.mxu0 %v5814_v22 }
 0x19d   :  { %5368 = vmatprep.subr.bf16.mxu0 %v5817_v2 }
 0x1a0   :  { %5369 = vmatpush3.bf16.msra.mxu0 %v5815_v23 }
 0x1a3   :  { %v5097_v25 = vpop.f32.mrf.mxu0  ;;  %5371 = vmatmul.mubr.bf16.vlgmr.msra.gmra.mxu0 %v5816_v24 }
 0x1a4   :  { %v5119_v27 = vpop.f32.mrf.mxu1 }
 0x1a5   :  { %v5098_v26 = vpop.f32.mrf.mxu0 }
 0x1a6   :  { %v5099_v28 = vadd.f32 %v5098_v26, %v5097_v25  ;;  %v5120_v30 = vpop.f32.mrf.mxu1 }
 0x1a7   :  { %v5100_v29 = vpop.f32.mrf.mxu0  ;;  %v5121_v32 = vadd.f32 %v5120_v30, %v5119_v27 }
 0x1a8   :  { %v3866_v31 = vadd.f32 %v5099_v28, %v3826_v16  ;;  %v5122_v34 = vpop.f32.mrf.mxu1 }
 0x1a9   :  { %v5101_v33 = vpop.f32.mrf.mxu0  ;;  %v4815_v34 = vld [vmem:[%s7121_s2] ss:$0 sm:$0xff] }
 0x1aa   :  { %v3906_v35 = vadd.f32 %v5121_v32, %v3866_v31  ;;  %v5123_v36 = vpop.f32.mrf.mxu1 }
 0x1ab   :  { %v4816_v36 = vld [vmem:[%s7122_s3] ss:$0 sm:$0xff] }
 0x1c3   :  { %v5141_v37 = vpop.f32.mrf.mxu0 }
 0x1c4   :  { %v5163_v40 = vpop.f32.mrf.mxu1 }
 0x1c5   :  { %v5142_v38 = vpop.f32.mrf.mxu0 }
 0x1c6   :  { %v5143_v39 = vadd.f32 %v5142_v38, %v5141_v37  ;;  %v5164_v43 = vpop.f32.mrf.mxu1 }
 0x1c7   :  { %v5144_v41 = vpop.f32.mrf.mxu0  ;;  %v5165_v44 = vadd.f32 %v5164_v43, %v5163_v40 }
 0x1c8   :  { %v3946_v42 = vadd.f32 %v5143_v39, %v3906_v35  ;;  %v5166_v46 = vpop.f32.mrf.mxu1 }
 0x1c9   :  { %v5145_v45 = vpop.f32.mrf.mxu0 }
 0x1ca   :  { %v3986_v47 = vadd.f32 %v5165_v44, %v3946_v42  ;;  %v5167_v48 = vpop.f32.mrf.mxu1 }
 0x1e3   :  { %v5185_v49 = vpop.f32.mrf.mxu0 }
 0x1e4   :  { %v5207_v51 = vpop.f32.mrf.mxu1 }
 0x1e5   :  { %v5186_v50 = vpop.f32.mrf.mxu0 }
 0x1e6   :  { %v5187_v52 = vadd.f32 %v5186_v50, %v5185_v49  ;;  %v5208_v54 = vpop.f32.mrf.mxu1 }
 0x1e7   :  { %v5188_v53 = vpop.f32.mrf.mxu0  ;;  %v5209_v56 = vadd.f32 %v5208_v54, %v5207_v51 }
 0x1e8   :  { %v4026_v55 = vadd.f32 %v5187_v52, %v3986_v47  ;;  %v5210_v58 = vpop.f32.mrf.mxu1 }
 0x1e9   :  { %v5189_v57 = vpop.f32.mrf.mxu0 }
 0x1ea   :  { %v4066_v59 = vadd.f32 %v5209_v56, %v4026_v55  ;;  %v5211_v60 = vpop.f32.mrf.mxu1 }
 0x203   :  { %v5229_v61 = vpop.f32.mrf.mxu0 }
 0x204   :  { %v5251_v63 = vpop.f32.mrf.mxu1 }
 0x205   :  { %v5230_v62 = vpop.f32.mrf.mxu0 }
 0x206   :  { %v5231_v0 = vadd.f32 %v5230_v62, %v5229_v61  ;;  %v5252_v2 = vpop.f32.mrf.mxu1 }
 0x207   :  { %v5232_v1 = vpop.f32.mrf.mxu0  ;;  %v5253_v4 = vadd.f32 %v5252_v2, %v5251_v63 }
 0x208   :  { %v4106_v3 = vadd.f32 %v5231_v0, %v4066_v59  ;;  %v5254_v6 = vpop.f32.mrf.mxu1 }
 0x209   :  { %v5233_v5 = vpop.f32.mrf.mxu0 }
 0x20a   :  { %v4146_v7 = vadd.f32 %v5253_v4, %v4106_v3  ;;  %v5255_v8 = vpop.f32.mrf.mxu1 }
 0x223   :  { %v5273_v9 = vpop.f32.mrf.mxu0 }
 0x224   :  { %v5295_v11 = vpop.f32.mrf.mxu1 }
 0x225   :  { %v5274_v10 = vpop.f32.mrf.mxu0 }
 0x226   :  { %v5296_v13 = vpop.f32.mrf.mxu1  ;;  %v5275_v25 = vadd.f32 %v5274_v10, %v5273_v9 }
 0x227   :  { %v5276_v12 = vpop.f32.mrf.mxu0  ;;  %v5297_v27 = vadd.f32 %v5296_v13, %v5295_v11 }
 0x228   :  { %v5298_v15 = vpop.f32.mrf.mxu1  ;;  %v4186_v26 = vadd.f32 %v5275_v25, %v4146_v7 }
 0x229   :  { %v5277_v14 = vpop.f32.mrf.mxu0 }
 0x22a   :  { %v5299_v16 = vpop.f32.mrf.mxu1  ;;  %v4226_v29 = vadd.f32 %v5297_v27, %v4186_v26 }
 0x243   :  { %v5317_v17 = vpop.f32.mrf.mxu0 }
 0x245   :  { %v5318_v18 = vpop.f32.mrf.mxu0  ;;  %v5339_v19 = vpop.f32.mrf.mxu1 }
 0x246   :  { %v5319_v28 = vadd.f32 %v5318_v18, %v5317_v17 }
 0x247   :  { %v5320_v20 = vpop.f32.mrf.mxu0  ;;  %v5340_v21 = vpop.f32.mrf.mxu1 }
 0x248   :  { %v4266_v30 = vadd.f32 %v5319_v28, %v4226_v29  ;;  %v5341_v31 = vadd.f32 %v5340_v21, %v5339_v19 }
 0x249   :  { %v5321_v22 = vpop.f32.mrf.mxu0  ;;  %v5342_v23 = vpop.f32.mrf.mxu1 }
 0x24a   :  { %v4306_v32 = vadd.f32 %v5341_v31, %v4266_v30 }
 0x24b   :  { %v5343_v24 = vpop.f32.mrf.mxu1 }
 0x263   :  { %v4345_v33 = vpop.f32.mrf.mxu0 }
 0x264   :  { %v4346_v35 = vadd.f32 %v4345_v33, %v4306_v32 }
 0x265   :  { %v5372_v37 = vpop.f32.mrf.mxu0 }
 0x266   :  { %v4358_v38 = vmul.f32 %v4815_v34, %v4346_v35 }
 0x267   :  { %v4348_v39 = vpop.f32.mrf.mxu0 }
 0x268   :  { %v4366_v40 = vadd.f32 %v4816_v36, %v4358_v38 }
 0x269   :  { %v5373_v41 = vpop.f32.mrf.mxu0 }
 0x26a   :  { %v4367_v42 = vmax.f32 %v4366_v40, 0.0 }
 0x26c   :  { %v4368_v43 = vpack.c.bf16 %v4367_v42, %v4367_v42 }
 0x26e   :  { %4369 = vst [vmem:[%s7123_s4] sm:$0xf] %v4368_v43 }

</bundles_post_ra>
